<compile_context>
chip_gen: v7x
topology: tpu7x:2x2x1
jax: 0.10.0
libtpu: 0.0.40
codegen_flags: <defaults>
</compile_context>

<pallas_src>
import functools
import math

import jax
import jax.numpy as jnp
from jax import lax
from jax.experimental import pallas as pl
from jax.experimental.pallas import tpu as pltpu


_VMEM_SPEC = pl.BlockSpec(memory_space=pltpu.MemorySpace.VMEM)
_SMEM_SPEC = pl.BlockSpec(memory_space=pltpu.MemorySpace.SMEM)


# ----------------------------------------------------------------------------
# Kernel 1: combine_rwr / rand_walk  (runs once per forward)
#   P  = row-normalize(A with zero diagonal)
#   W1 = 0.3 * P^T @ A  + 0.7 * A
#   W2 = 0.3 * P^T @ W1 + 0.7 * A
#   rg = eta1 * A + eta2 * W1^T + eta3 * W2^T
# ----------------------------------------------------------------------------
def rg_kernel(a_ref, eta_ref, rg_ref):
    A = a_ref[...]
    n = A.shape[0]
    row = lax.broadcasted_iota(jnp.int32, (n, n), 0)
    col = lax.broadcasted_iota(jnp.int32, (n, n), 1)
    P = jnp.where(row == col, 0.0, A)                       # fill_diagonal_(0)
    s = jnp.sum(P, axis=1, keepdims=True)                   # line_normalization
    s = jnp.where(s == 0.0, 1.0, s)
    P = P * pl.reciprocal(s, approx=True)
    alpha = 0.7
    # P^T @ X without materializing P.T: contract dim 0 of P with dim 0 of X.
    dn = (((0,), (0,)), ((), ()))
    W1 = (1.0 - alpha) * lax.dot_general(
        P, A, dn, preferred_element_type=jnp.float32) + alpha * A
    W2 = (1.0 - alpha) * lax.dot_general(
        P, W1, dn, preferred_element_type=jnp.float32) + alpha * A
    # rg = eta1*A + eta2*W1^T + eta3*W2^T, with a single fused transpose.
    rg_ref[...] = eta_ref[0] * A + (eta_ref[1] * W1 + eta_ref[2] * W2).T


def compute_rg(feature, etas):
    n = feature.shape[0]
    return pl.pallas_call(
        rg_kernel,
        out_shape=jax.ShapeDtypeStruct((n, n), jnp.float32),
        in_specs=[_VMEM_SPEC, _SMEM_SPEC],
        out_specs=_VMEM_SPEC,
    )(feature, etas)


# ----------------------------------------------------------------------------
# Kernel 2: all MultiHeadSelfAttention layers + residual adds, fused.
#   grid = (num_layers, num_query_row_tiles), both "arbitrary" (sequential).
#   H persists in a VMEM scratch across the whole grid; K/V (bf16) are built
#   for every node once per layer at query-tile 0; each grid step then does
#   the attention for one tile of tq query rows and updates H in place.
# ----------------------------------------------------------------------------
def fused_layers_kernel(h0_ref, rg_ref,
                        wq_ref, wk_ref, wv_ref, wo_ref,
                        bq_ref, bk_ref, bv_ref, bo_ref,
                        out_ref,
                        h_vmem, k_vmem, v_vmem, q_vmem, acc_vmem,
                        *, num_heads, d_k, tq, n_row_tiles):
    layer = pl.program_id(0)
    qi = pl.program_id(1)

    # Load the initial node features into the persistent H scratch once.
    @pl.when(jnp.logical_and(layer == 0, qi == 0))
    def _():
        h_vmem[...] = h0_ref[...]

    # At the start of each layer: K/V projections for ALL rows, tiled to keep
    # intermediates small, stored in bf16 VMEM scratch.
    @pl.when(qi == 0)
    def _():
        @pl.loop(0, n_row_tiles)
        def _(r):
            r0 = pl.multiple_of(r * tq, tq)
            hb = h_vmem[pl.ds(r0, tq), :].astype(jnp.bfloat16)
            k_vmem[pl.ds(r0, tq), :] = (
                jnp.dot(hb, wk_ref[0], preferred_element_type=jnp.float32)
                + bk_ref[0]).astype(jnp.bfloat16)
            v_vmem[pl.ds(r0, tq), :] = (
                jnp.dot(hb, wv_ref[0], preferred_element_type=jnp.float32)
                + bv_ref[0]).astype(jnp.bfloat16)

    row0 = pl.multiple_of(qi * tq, tq)
    h_tile = h_vmem[pl.ds(row0, tq), :]                      # (tq, d) f32

    # Q projection for this query-row tile (bf16 in VMEM scratch).
    q_vmem[...] = (jnp.dot(h_tile.astype(jnp.bfloat16), wq_ref[0],
                           preferred_element_type=jnp.float32)
                   + bq_ref[0]).astype(jnp.bfloat16)

    rg = rg_ref[...]                                         # (tq, N) f32
    inv_sqrt_dk = 1.0 / math.sqrt(float(d_k))

    # Per-head attention; fold the output projection per head (no concat).
    acc_vmem[...] = jnp.zeros_like(acc_vmem)
    for h in range(num_heads):                               # static unroll
        lo = h * d_k
        qh = q_vmem[:, lo:lo + d_k]                          # (tq, d_k) bf16
        kh = k_vmem[:, lo:lo + d_k]                          # (N,  d_k) bf16
        vh = v_vmem[:, lo:lo + d_k]                          # (N,  d_k) bf16
        scores = lax.dot_general(                            # Q @ K^T (MXU)
            qh, kh, (((1,), (1,)), ((), ())),
            preferred_element_type=jnp.float32) * inv_sqrt_dk
        scores = scores * rg
        m = jnp.max(scores, axis=-1, keepdims=True)
        p = jnp.exp(scores - m)
        denom = jnp.sum(p, axis=-1, keepdims=True)
        attn = (p * pl.reciprocal(denom, approx=True)).astype(jnp.bfloat16)
        ctx = jnp.dot(attn, vh, preferred_element_type=jnp.float32)
        acc_vmem[...] += jnp.dot(ctx.astype(jnp.bfloat16),
                                 wo_ref[0, lo:lo + d_k, :],
                                 preferred_element_type=jnp.float32)

    new_tile = h_tile + acc_vmem[...] + bo_ref[0]            # residual + bias
    h_vmem[pl.ds(row0, tq), :] = new_tile                    # update resident H
    out_ref[...] = new_tile                                  # final layer wins


def run_transformer_layers(feature, rg, params, *, num_heads, tq):
    n, d_model = feature.shape
    d_k = d_model // num_heads
    num_layers = params["wq"].shape[0]
    n_row_tiles = n // tq

    kern = functools.partial(fused_layers_kernel, num_heads=num_heads,
                             d_k=d_k, tq=tq, n_row_tiles=n_row_tiles)
    w_spec = pl.BlockSpec((1, d_model, d_model), lambda l, i: (l, 0, 0))
    b_spec = pl.BlockSpec((1, 1, d_model), lambda l, i: (l, 0, 0))

    return pl.pallas_call(
        kern,
        out_shape=jax.ShapeDtypeStruct((n, d_model), jnp.float32),
        grid_spec=pltpu.PrefetchScalarGridSpec(
            num_scalar_prefetch=0,
            grid=(num_layers, n_row_tiles),
            in_specs=[
                pl.BlockSpec((n, d_model), lambda l, i: (0, 0)),   # H0 resident
                pl.BlockSpec((tq, n), lambda l, i: (i, 0)),        # rg row tile
                w_spec, w_spec, w_spec, w_spec,                    # wq wk wv wo
                b_spec, b_spec, b_spec, b_spec,                    # bq bk bv bo
            ],
            out_specs=pl.BlockSpec((tq, d_model), lambda l, i: (i, 0)),
            scratch_shapes=[
                pltpu.VMEM((n, d_model), jnp.float32),    # H (persistent)
                pltpu.VMEM((n, d_model), jnp.bfloat16),   # K (per layer)
                pltpu.VMEM((n, d_model), jnp.bfloat16),   # V (per layer)
                pltpu.VMEM((tq, d_model), jnp.bfloat16),  # Q tile
                pltpu.VMEM((tq, d_model), jnp.float32),   # output accumulator
            ]),
        compiler_params=pltpu.CompilerParams(
            dimension_semantics=("arbitrary", "arbitrary")),
    )(feature, rg,
      params["wq"], params["wk"], params["wv"], params["wo"],
      params["bq"], params["bk"], params["bv"], params["bo"])


# ----------------------------------------------------------------------------
# Kernel 3: gate (tiled over rows, megacore-parallel)
#   g   = sigmoid(features @ Wg1 + feature @ Wg2 + bg)    (Wg split in halves,
#                                                          no concat needed)
#   out = (1 - g) * feature + g * faeture
# ----------------------------------------------------------------------------
def gate_kernel(features_ref, feature_ref, faeture_ref,
                wg1_ref, wg2_ref, bg_ref, out_ref):
    feats = features_ref[...]
    feat = feature_ref[...]
    logits = (jnp.dot(feats.astype(jnp.bfloat16), wg1_ref[...],
                      preferred_element_type=jnp.float32)
              + jnp.dot(feat.astype(jnp.bfloat16), wg2_ref[...],
                        preferred_element_type=jnp.float32)
              + bg_ref[...])
    g = jax.nn.sigmoid(logits)
    out_ref[...] = (1.0 - g) * feat + g * faeture_ref[...]


def gate_blend(features, feature, faeture, wg1, wg2, bg, *, tq):
    n, d_model = feature.shape
    row_spec = pl.BlockSpec((tq, d_model), lambda i: (i, 0))
    full_w = pl.BlockSpec((d_model, d_model), lambda i: (0, 0))
    return pl.pallas_call(
        gate_kernel,
        out_shape=jax.ShapeDtypeStruct((n, d_model), jnp.float32),
        grid_spec=pltpu.PrefetchScalarGridSpec(
            num_scalar_prefetch=0,
            grid=(n // tq,),
            in_specs=[row_spec, row_spec, row_spec, full_w, full_w,
                      pl.BlockSpec((1, d_model), lambda i: (0, 0))],
            out_specs=row_spec),
        compiler_params=pltpu.CompilerParams(
            dimension_semantics=("parallel",)),
    )(features, feature, faeture, wg1, wg2, bg)


# ----------------------------------------------------------------------------
# Full forward
# ----------------------------------------------------------------------------
def gate_graph_transformer_forward(feature, faeture, params, *, num_heads, tq=128):
    n, d_model = feature.shape
    assert n == d_model, "feature doubles as the adjacency matrix (square)"
    assert d_model % 128 == 0 and (d_model // num_heads) % 128 == 0, \
        "lane alignment required"   # TODO(synk): pad 1527 -> 1536 + key masking
    assert n % tq == 0 and tq % 8 == 0

    rg = compute_rg(feature, params["etas"])
    features = run_transformer_layers(feature, rg, params,
                                      num_heads=num_heads, tq=tq)
    return gate_blend(features, feature, faeture,
                      params["wg1"], params["wg2"], params["bg"], tq=tq)


# ----------------------------------------------------------------------------
# Deterministic parameter init (mirrors the PyTorch __init__); weights are
# stored pre-transposed (in_features, out_features) and in bf16 for the MXU.
# ----------------------------------------------------------------------------
def init_params(key, d_model, num_layers):
    xavier = math.sqrt(6.0 / (d_model + d_model))
    keys = jax.random.split(key, 7)

    def w_stack(k):
        w = jax.random.uniform(k, (num_layers, d_model, d_model),
                               jnp.float32, -xavier, xavier)
        return w.astype(jnp.bfloat16)

    gate_bound = 1.0 / math.sqrt(2 * d_model)
    return {
        "wq": w_stack(keys[0]),
        "wk": w_stack(keys[1]),
        "wv": w_stack(keys[2]),
        "wo": w_stack(keys[3]),
        "bq": jnp.zeros((num_layers, 1, d_model), jnp.float32),
        "bk": jnp.zeros((num_layers, 1, d_model), jnp.float32),
        "bv": jnp.zeros((num_layers, 1, d_model), jnp.float32),
        "bo": jnp.zeros((num_layers, 1, d_model), jnp.float32),
        "etas": jnp.ones((3,), jnp.float32),        # eta_1, eta_2, eta_3
        "wg1": jax.random.uniform(keys[4], (d_model, d_model), jnp.float32,
                                  -gate_bound, gate_bound).astype(jnp.bfloat16),
        "wg2": jax.random.uniform(keys[5], (d_model, d_model), jnp.float32,
                                  -gate_bound, gate_bound).astype(jnp.bfloat16),
        "bg": jax.random.uniform(keys[6], (1, d_model), jnp.float32,
                                 -gate_bound, gate_bound),
    }
    # TODO(synk): self.norm = nn.LayerNorm(d_model) is never used in forward().


# ----------------------------------------------------------------------------
# Pure-JAX f32 reference for a correctness check.
# ----------------------------------------------------------------------------
def _reference_forward(feature, faeture, params, *, num_heads):
    A = feature.astype(jnp.float32)
    n, d_model = A.shape
    d_k = d_model // num_heads
    P = A * (1.0 - jnp.eye(n, dtype=jnp.float32))
    s = jnp.sum(P, axis=1, keepdims=True)
    s = jnp.where(s == 0.0, 1.0, s)
    P = P / s
    alpha = 0.7
    W1 = (1.0 - alpha) * P.T @ A + alpha * A
    W2 = (1.0 - alpha) * P.T @ W1 + alpha * A
    etas = params["etas"]
    rg = etas[0] * A + etas[1] * W1.T + etas[2] * W2.T

    H = A
    for l in range(params["wq"].shape[0]):
        wq = params["wq"][l].astype(jnp.float32)
        wk = params["wk"][l].astype(jnp.float32)
        wv = params["wv"][l].astype(jnp.float32)
        wo = params["wo"][l].astype(jnp.float32)
        Q = H @ wq + params["bq"][l, 0]
        K = H @ wk + params["bk"][l, 0]
        V = H @ wv + params["bv"][l, 0]
        ctx = []
        for h in range(num_heads):
            lo = h * d_k
            sc = (Q[:, lo:lo + d_k] @ K[:, lo:lo + d_k].T) / math.sqrt(d_k) * rg
            attn = jax.nn.softmax(sc, axis=-1)
            ctx.append(attn @ V[:, lo:lo + d_k])
        H = H + jnp.concatenate(ctx, axis=1) @ wo + params["bo"][l, 0]

    logits = (H @ params["wg1"].astype(jnp.float32)
              + A @ params["wg2"].astype(jnp.float32) + params["bg"])
    g = jax.nn.sigmoid(logits)
    return (1.0 - g) * A + g * faeture


if __name__ == "__main__":
    # small, TPU-tile-aligned test sizes: feature is square (N == d_model)
    N = d_model = 256
    num_heads = 2          # d_k = 128 -> lane-aligned head slices
    num_layers = 2
    tq = 128               # query-row tile

    key = jax.random.PRNGKey(0)
    k_feat, k_faet, k_par = jax.random.split(key, 3)
    feature = jax.random.uniform(k_feat, (N, d_model), dtype=jnp.float32)
    faeture = jax.random.normal(k_faet, (N, d_model), dtype=jnp.float32)
    params = init_params(k_par, d_model, num_layers)

    out = gate_graph_transformer_forward(feature, faeture, params,
                                         num_heads=num_heads, tq=tq)
    out = jax.block_until_ready(out)

    ref = jax.block_until_ready(
        _reference_forward(feature, faeture, params, num_heads=num_heads))

    assert out.shape == (N, d_model)
    assert bool(jnp.all(jnp.isfinite(out)))
    err = float(jnp.max(jnp.abs(out - ref)))
    assert err < 0.15, f"kernel/reference mismatch: max abs err {err}"
    print("KERNEL_OK")
</pallas_src>

<mosaic_0001>
module attributes {stable_mosaic.version = 11 : i64} {
  func.func @rg_kernel(%arg0: memref<256x256xf32, #tpu.memory_space<vmem>>, %arg1: memref<3xf32, #tpu.memory_space<smem>>, %arg2: memref<256x256xf32, #tpu.memory_space<vmem>>) attributes {dimension_semantics = [], scalar_prefetch = 0 : i64, scratch_operands = 0 : i64, tpu.core_type = #tpu.core_type<tc>} {
    %c0 = arith.constant 0 : index
    %c0_0 = arith.constant 0 : index
    %0 = vector.load %arg0[%c0, %c0_0] : memref<256x256xf32, #tpu.memory_space<vmem>>, vector<256x256xf32>
    %1 = tpu.iota {dimensions = array<i32: 0>} : vector<256x256xi32>
    %2 = tpu.iota {dimensions = array<i32: 1>} : vector<256x256xi32>
    %3 = arith.cmpi eq, %1, %2 : vector<256x256xi32>
    %cst = arith.constant 0.000000e+00 : f32
    %4 = vector.broadcast %cst : f32 to vector<256x256xf32>
    %5 = arith.select %3, %4, %0 : vector<256x256xi1>, vector<256x256xf32>
    %cst_1 = arith.constant dense<0.000000e+00> : vector<256xf32>
    %6 = vector.multi_reduction <add>, %5, %cst_1 [1] : vector<256x256xf32> to vector<256xf32>
    %7 = vector.shape_cast %6 : vector<256xf32> to vector<256x1xf32>
    %cst_2 = arith.constant 0.000000e+00 : f32
    %8 = vector.broadcast %cst_2 : f32 to vector<256x1xf32>
    %9 = arith.cmpf oeq, %7, %8 : vector<256x1xf32>
    %cst_3 = arith.constant 1.000000e+00 : f32
    %10 = vector.broadcast %cst_3 : f32 to vector<256x1xf32>
    %11 = arith.select %9, %10, %7 : vector<256x1xi1>, vector<256x1xf32>
    %12 = tpu.reciprocal %11 {approx = true} : vector<256x1xf32> -> vector<256x1xf32>
    %13 = vector.broadcast %12 : vector<256x1xf32> to vector<256x256xf32>
    %14 = arith.mulf %5, %13 : vector<256x256xf32>
    %cst_4 = arith.constant dense<0.000000e+00> : vector<256x256xf32>
    %15 = tpu.matmul %14, %0, %cst_4 {dimension_numbers = #tpu.dot_dimension_numbers<[0], [0], [1], [1], [0, 1, 1, 1], [], []>} : vector<256x256xf32>, vector<256x256xf32>, vector<256x256xf32> -> vector<256x256xf32>
    %cst_5 = arith.constant 3.000000e-01 : f32
    %16 = vector.broadcast %cst_5 : f32 to vector<256x256xf32>
    %17 = arith.mulf %16, %15 : vector<256x256xf32>
    %cst_6 = arith.constant 0.699999988 : f32
    %18 = vector.broadcast %cst_6 : f32 to vector<256x256xf32>
    %19 = arith.mulf %18, %0 : vector<256x256xf32>
    %20 = arith.addf %17, %19 : vector<256x256xf32>
    %cst_7 = arith.constant dense<0.000000e+00> : vector<256x256xf32>
    %21 = tpu.matmul %14, %20, %cst_7 {dimension_numbers = #tpu.dot_dimension_numbers<[0], [0], [1], [1], [0, 1, 1, 1], [], []>} : vector<256x256xf32>, vector<256x256xf32>, vector<256x256xf32> -> vector<256x256xf32>
    %cst_8 = arith.constant 3.000000e-01 : f32
    %22 = vector.broadcast %cst_8 : f32 to vector<256x256xf32>
    %23 = arith.mulf %22, %21 : vector<256x256xf32>
    %cst_9 = arith.constant 0.699999988 : f32
    %24 = vector.broadcast %cst_9 : f32 to vector<256x256xf32>
    %25 = arith.mulf %24, %0 : vector<256x256xf32>
    %26 = arith.addf %23, %25 : vector<256x256xf32>
    %c0_10 = arith.constant 0 : index
    %27 = memref.load %arg1[%c0_10] : memref<3xf32, #tpu.memory_space<smem>>
    %28 = vector.broadcast %27 : f32 to vector<256x256xf32>
    %29 = arith.mulf %28, %0 : vector<256x256xf32>
    %c1 = arith.constant 1 : index
    %30 = memref.load %arg1[%c1] : memref<3xf32, #tpu.memory_space<smem>>
    %31 = vector.broadcast %30 : f32 to vector<256x256xf32>
    %32 = arith.mulf %31, %20 : vector<256x256xf32>
    %c2 = arith.constant 2 : index
    %33 = memref.load %arg1[%c2] : memref<3xf32, #tpu.memory_space<smem>>
    %34 = vector.broadcast %33 : f32 to vector<256x256xf32>
    %35 = arith.mulf %34, %26 : vector<256x256xf32>
    %36 = arith.addf %32, %35 : vector<256x256xf32>
    %37 = tpu.transpose %36, [1, 0] : vector<256x256xf32> -> vector<256x256xf32>
    %38 = arith.addf %29, %37 : vector<256x256xf32>
    %c0_11 = arith.constant 0 : index
    %c0_12 = arith.constant 0 : index
    %39 = vector.load %arg2[%c0_11, %c0_12] : memref<256x256xf32, #tpu.memory_space<vmem>>, vector<256x256xf32>
    tpu.vector_store %arg2[%c0_11, %c0_12], %38 {strides = array<i32>} : memref<256x256xf32, #tpu.memory_space<vmem>>, vector<256x256xf32>,
    return
  }
}

</mosaic_0001>

<bundles_post_ra>
// kernel: tpu_custom_call.1
= control target key start
LH: loop header
LB: loop body
LE: loop exit
PB: predicated region body
PF: predicated region fallthrough
CT: control target
= control target key end

     0   :  { %7 = vsyncpa [#allocation3], 0  ;;  %s4256_s0 = inlined_call_operand.hbm [shape: f32[256,256], index: 0, kind: input, shape index: {}]   ;;  %s4257_s1 = inlined_call_operand.vmem [shape: f32[3], index: 1, kind: input, shape index: {}]   ;;  %s4258_s2 = inlined_call_operand.hbm [shape: f32[256,256], index: 2, kind: output, shape index: {}]  }
   0x1   :  { %8 = vsyncpa [#allocation5], 0 }
   0x2   :  { %9 = vsyncpa [#allocation4], 0  ;;  %s2634_s9 = smov [#allocation2]   ;;  %s28_s13 = sshll.u32 %s4257_s1, 4  ;;  %s29_s13 = int_to_ptr.vmem [resolvable:$true] %s28_s13 }
   0x3   :  { %s15_s10 = sshll.u32 %s2634_s9, 4  ;;  %s2572_s16 = scalar_lea.hbm %s4256_s0, 8192  ;;  %s16_s10 = int_to_ptr.vmem [resolvable:$true] %s15_s10 }
   0x4   :  { %p2573_p0 = scmp.ne.s32.totalorder %s4256_s0, %s2572_s16  ;;  %p2576_p1 = scmp.lt.u32.totalorder %s2572_s16, %s4256_s0 }
   0x6   :  { %p2578_p2 = pnand %p2576_p1, %p2573_p0 }
   0x8   :  { %2581 = shalt.err (!%p2578_p2)
}
   0x9   :  { %s2582_s21 = scalar_lea.vmem %s16_s10, 8192  ;;  %p2587_p4 = scmp.lt.s32.totalorder %s16_s10, %s16_s10 }
   0xa   :  { %p2583_p3 = scmp.ne.s32.totalorder %s16_s10, %s2582_s21  ;;  %p2588_p5 = scmp.lt.s32.totalorder %s2582_s21, %s2582_s21 }
   0xc   :  { %p2589_p6 = por %p2588_p5, %p2587_p4 }
   0xe   :  { %p2590_p7 = pnand %p2589_p6, %p2583_p3 }
  0x10   :  { %2593 = shalt.err (!%p2590_p7)
}
  0x11   :  { %s2635_s1 = smov 256   ;;  %s2636_s22 = smov 16  }
  0x12   :  { %21 = dma.hbm_to_vmem [thread:$0]  %s4256_s0, 8192, %s16_s10, [#allocation3], %s2635_s1, %s2635_s1, %s2636_s22  }
  0x13   :  { %s2594_s25 = scalar_lea.vmem %s29_s13, 16  ;;  %p2599_p9 = scmp.lt.s32.totalorder %s29_s13, %s29_s13 }
  0x14   :  { %p2595_p8 = scmp.ne.s32.totalorder %s29_s13, %s2594_s25  ;;  %p2600_p10 = scmp.lt.s32.totalorder %s2594_s25, %s2594_s25 }
  0x16   :  { %p2601_p11 = por %p2600_p10, %p2599_p9 }
  0x18   :  { %p2602_p12 = pnand %p2601_p11, %p2595_p8 }
  0x1a   :  { %2605 = shalt.err (!%p2602_p12)
}
  0x1b   :  { %s2637_s26 = smov [#allocation6]  }
  0x1c   :  { %31 = dma.vmem_to_smem %s29_s13, 16, %s2637_s26, [#allocation5]  }
  0x1d   :  { %2628 = dma.done.wait [#allocation3], 8192  }
  0x1e   :  { %2629 = vsyncadd [#allocation3], 4294959104 }
  0x1f   :  { %2630 = dma.done.wait [#allocation5], 16  }
  0x20   :  { %2631 = vsyncadd [#allocation5], 4294967280 }
  0x21   :  { %38 = sfence }
  0x22   :  { %v103_v0 = vlaneseq  ;;  %v2672_v1 = vld [vmem:[#allocation2] sm:$0xff]  ;;  %v2678_v4 = vld [vmem:[#allocation2 + $0x8] sm:$0xff]  ;;  %v2682_v5 = vld [vmem:[#allocation2 + $0x110] sm:$0xff]  ;;  %s2021_s0 = sld [smem:[#allocation6 + $0x1]]  ;;  %s2022_s27 = sld [smem:[#allocation6 + $0x2]] }
  0x23   :  { %v2684_v6 = vld [vmem:[#allocation2 + $0x118] sm:$0xff]  ;;  %v2690_v9 = vld [vmem:[#allocation2 + $0x108] sm:$0xff]  ;;  %v2696_v12 = vld [vmem:[#allocation2 + $0x100] sm:$0xff]  ;;  %s1485_s28 = sld [smem:[#allocation6]]  ;;  %s2638_s29 = smov [#allocation7]  }
  0x24   :  { %v2674_v2 = vshrl.u32 %v103_v0, 7  ;;  %v2676_v3 = vand.u32 127, %v103_v0  ;;  %v2698_v13 = vld [vmem:[#allocation2 + $0x10] sm:$0xff]  ;;  %v2713_v20 = vld [vmem:[#allocation2 + $0x18] sm:$0xff]  ;;  %v2716_v21 = vld [vmem:[#allocation2 + $0x128] sm:$0xff]  ;;  %s2008_s30 = sshll.u32 %s2638_s29, 4  ;;  %s2009_s30 = int_to_ptr.vmem [resolvable:$true] %s2008_s30 }
  0x25   :  { %v2726_v26 = vld [vmem:[#allocation2 + $0x20] sm:$0xff]  ;;  %v2737_v30 = vld [vmem:[#allocation2 + $0x138] sm:$0xff]  ;;  %v2740_v32 = vld [vmem:[#allocation2 + $0x28] sm:$0xff]  ;;  %s2606_s3 = scalar_lea.vmem %s2009_s30, 8192  ;;  %p2611_p0 = scmp.lt.s32.totalorder %s2009_s30, %s2009_s30 }
  0x26   :  { %vm139_vm0 = vcmp.eq.s32.totalorder %v2674_v2, %v2676_v3  ;;  %v121_v7 = vadd.s32 136, %v2674_v2  ;;  %v2688_v8 = vadd.s32 128, %v2676_v3  ;;  %v120_v10 = vadd.s32 128, %v2674_v2  ;;  %v2729_v27 = vld [vmem:[#allocation2 + $0x120] sm:$0xff]  ;;  %v2748_v36 = vld [vmem:[#allocation2 + $0x30] sm:$0xff]  ;;  %v2760_v41 = vld [vmem:[#allocation2 + $0x148] sm:$0xff]  ;;  %p2607_p13 = scmp.ne.s32.totalorder %s2009_s30, %s2606_s3  ;;  %p2612_p1 = scmp.lt.s32.totalorder %s2606_s3, %s2606_s3 }
  0x27   :  { %v2694_v11 = vsel %vm139_vm0, 0.0, %v2672_v1  ;;  %v105_v14 = vadd.s32 8, %v2674_v2  ;;  %v106_v15 = vadd.s32 16, %v2674_v2  ;;  %v122_v16 = vadd.s32 144, %v2674_v2  ;;  %v2753_v38 = vld [vmem:[#allocation2 + $0x130] sm:$0xff]  ;;  %v2764_v43 = vld [vmem:[#allocation2 + $0x38] sm:$0xff] }
  0x28   :  { %4472 = vst [vmem:[#allocation11_spill] sm:$0xff] %v2694_v11  ;;  %v267_v17 = vadd.f32 %v2694_v11, %v2678_v4  ;;  %vm174_vm1 = vcmp.eq.s32.totalorder %v121_v7, %v2688_v8  ;;  %vm172_vm2 = vcmp.eq.s32.totalorder %v120_v10, %v2688_v8  ;;  %v107_v22 = vadd.s32 24, %v2674_v2  ;;  %v2771_v46 = vld [vmem:[#allocation2 + $0x40] sm:$0xff]  ;;  %v2782_v51 = vld [vmem:[#allocation2 + $0x158] sm:$0xff]  ;;  %v2786_v53 = vld [vmem:[#allocation2 + $0x48] sm:$0xff]  ;;  %p2613_p2 = por %p2612_p1, %p2611_p0 }
  0x29   :  { %v2708_v18 = vsel %vm174_vm1, 0.0, %v2684_v6  ;;  %v2711_v19 = vsel %vm172_vm2, 0.0, %v2690_v9  ;;  %vm141_vm3 = vcmp.eq.s32.totalorder %v105_v14, %v2676_v3  ;;  %vm143_vm4 = vcmp.eq.s32.totalorder %v106_v15, %v2676_v3  ;;  %v2775_v48 = vld [vmem:[#allocation2 + $0x140] sm:$0xff]  ;;  %v2793_v56 = vld [vmem:[#allocation2 + $0x50] sm:$0xff]  ;;  %v2804_v61 = vld [vmem:[#allocation2 + $0x168] sm:$0xff] }
  0x2a   :  { %4473 = vst [vmem:[#allocation12_spill] sm:$0xff] %v2708_v18  ;;  %4474 = vst [vmem:[#allocation13_spill] sm:$0xff] %v2711_v19  ;;  %268 = vadd.xlane.f32.xlu0 %v267_v17  ;;  %v318_v23 = vadd.f32 %v2708_v18, %v2682_v5  ;;  %v315_v24 = vadd.f32 %v2711_v19, %v2696_v12  ;;  %v2724_v25 = vsel %vm141_vm3, 0.0, %v2698_v13  ;;  %v123_v31 = vadd.s32 152, %v2674_v2  ;;  %v2797_v58 = vld [vmem:[#allocation2 + $0x150] sm:$0xff]  ;;  %v2808_v63 = vld [vmem:[#allocation2 + $0x58] sm:$0xff]  ;;  %p2614_p3 = pnand %p2613_p2, %p2607_p13 }
  0x2b   :  { %4475 = vst [vmem:[#allocation14_spill] sm:$0xff] %v2724_v25  ;;  %vm176_vm5 = vcmp.eq.s32.totalorder %v122_v16, %v2688_v8  ;;  %v270_v28 = vadd.f32 %v2724_v25, %v2713_v20  ;;  %v2743_v33 = vsel %vm143_vm4, 0.0, %v2726_v26  ;;  %v124_v34 = vadd.s32 160, %v2674_v2  ;;  %v2815_v10 = vld [vmem:[#allocation2 + $0x60] sm:$0xff]  ;;  %v2936_v25 = vld [vmem:[#allocation2 + $0x1c8] sm:$0xff] }
  0x2c   :  { %319 = vadd.xlane.f32.xlu1 %v318_v23  ;;  %v2735_v29 = vsel %vm176_vm5, 0.0, %v2716_v21  ;;  %4477 = vst [vmem:[#allocation16_spill] sm:$0xff] %v2743_v33  ;;  %vm145_vm6 = vcmp.eq.s32.totalorder %v107_v22, %v2676_v3  ;;  %vm178_vm7 = vcmp.eq.s32.totalorder %v123_v31, %v2688_v8  ;;  %v108_v37 = vadd.s32 32, %v2674_v2  ;;  %v2819_v15 = vld [vmem:[#allocation2 + $0x160] sm:$0xff]  ;;  %v2826_v22 = vld [vmem:[#allocation2 + $0x178] sm:$0xff]  ;;  %4501 = vst [vmem:[#allocation40_spill] sm:$0xff] %v2936_v25 }
  0x2d   :  { %4476 = vst [vmem:[#allocation15_spill] sm:$0xff] %v2735_v29  ;;  %v321_v35 = vadd.f32 %v2735_v29, %v2729_v27  ;;  %v2756_v39 = vsel %vm178_vm7, 0.0, %v2737_v30  ;;  %v273_v40 = vadd.f32 %v2743_v33, %v2740_v32  ;;  %vm180_vm8 = vcmp.eq.s32.totalorder %v124_v34, %v2688_v8  ;;  %v2837_v34 = vld [vmem:[#allocation2 + $0x70] sm:$0xff]  ;;  %v2947_v11 = vld [vmem:[#allocation2 + $0xc0] sm:$0xff] }
  0x2e   :  { %316 = vadd.xlane.f32.xlu0 %v315_v24  ;;  %4478 = vst [vmem:[#allocation17_spill] sm:$0xff] %v2756_v39  ;;  %v125_v42 = vadd.s32 168, %v2674_v2  ;;  %v2767_v44 = vsel %vm145_vm6, 0.0, %v2748_v36  ;;  %v324_v45 = vadd.f32 %v2756_v39, %v2753_v38  ;;  %vm147_vm9 = vcmp.eq.s32.totalorder %v108_v37, %v2676_v3  ;;  %v2830_v24 = vld [vmem:[#allocation2 + $0x68] sm:$0xff]  ;;  %v2841_v37 = vld [vmem:[#allocation2 + $0x170] sm:$0xff] }
  0x2f   :  { %4479 = vst [vmem:[#allocation18_spill] sm:$0xff] %v2767_v44  ;;  %v109_v47 = vadd.s32 40, %v2674_v2  ;;  %v2778_v49 = vsel %vm180_vm8, 0.0, %v2760_v41  ;;  %v276_v50 = vadd.f32 %v2767_v44, %v2764_v43  ;;  %v126_v52 = vadd.s32 176, %v2674_v2  ;;  %v2914_v44 = vld [vmem:[#allocation2 + $0x1b8] sm:$0xff]  ;;  %v2925_v33 = vld [vmem:[#allocation2 + $0xb0] sm:$0xff] }
  0x30   :  { %271 = vadd.xlane.f32.xlu1 %v270_v28  ;;  %4480 = vst [vmem:[#allocation19_spill] sm:$0xff] %v2778_v49  ;;  %vm182_vm10 = vcmp.eq.s32.totalorder %v125_v42, %v2688_v8  ;;  %v2789_v54 = vsel %vm147_vm9, 0.0, %v2771_v46  ;;  %v327_v55 = vadd.f32 %v2778_v49, %v2775_v48  ;;  %v110_v57 = vadd.s32 48, %v2674_v2  ;;  %4497 = vst [vmem:[#allocation36_spill] sm:$0xff] %v2914_v44 }
  0x31   :  { %4481 = vst [vmem:[#allocation20_spill] sm:$0xff] %v2789_v54  ;;  %vm149_vm11 = vcmp.eq.s32.totalorder %v109_v47, %v2676_v3  ;;  %v2800_v59 = vsel %vm182_vm10, 0.0, %v2782_v51  ;;  %v279_v60 = vadd.f32 %v2789_v54, %v2786_v53  ;;  %vm184_vm12 = vcmp.eq.s32.totalorder %v126_v52, %v2688_v8  ;;  %v2903_v54 = vld [vmem:[#allocation2 + $0xa0] sm:$0xff] }
  0x32   :  { %322 = vadd.xlane.f32.xlu0 %v321_v35  ;;  %4482 = vst [vmem:[#allocation21_spill] sm:$0xff] %v2800_v59  ;;  %v127_v62 = vadd.s32 184, %v2674_v2  ;;  %v2811_v0 = vsel %vm149_vm11, 0.0, %v2793_v56  ;;  %v330_v7 = vadd.f32 %v2800_v59, %v2797_v58  ;;  %vm151_vm13 = vcmp.eq.s32.totalorder %v110_v57, %v2676_v3  ;;  %v2859_v57 = vld [vmem:[#allocation2 + $0x80] sm:$0xff] }
  0x33   :  { %4483 = vst [vmem:[#allocation22_spill] sm:$0xff] %v2811_v0  ;;  %v111_v14 = vadd.s32 56, %v2674_v2  ;;  %v2822_v16 = vsel %vm184_vm12, 0.0, %v2804_v61  ;;  %v282_v17 = vadd.f32 %v2811_v0, %v2808_v63  ;;  %v128_v23 = vadd.s32 192, %v2674_v2  ;;  %v2892_v0 = vld [vmem:[#allocation2 + $0x1a8] sm:$0xff] }
  0x34   :  { %274 = vadd.xlane.f32.xlu1 %v273_v40  ;;  %4484 = vst [vmem:[#allocation23_spill] sm:$0xff] %v2822_v16  ;;  %vm186_vm14 = vcmp.eq.s32.totalorder %v127_v62, %v2688_v8  ;;  %v2833_v28 = vsel %vm151_vm13, 0.0, %v2815_v10  ;;  %v333_v31 = vadd.f32 %v2822_v16, %v2819_v15  ;;  %v112_v35 = vadd.s32 64, %v2674_v2  ;;  %v2863_v62 = vld [vmem:[#allocation2 + $0x180] sm:$0xff]  ;;  %4493 = vst [vmem:[#allocation32_spill] sm:$0xff] %v2892_v0 }
  0x35   :  { %4485 = vst [vmem:[#allocation24_spill] sm:$0xff] %v2833_v28  ;;  %vm153_vm15 = vcmp.eq.s32.totalorder %v111_v14, %v2676_v3  ;;  %v2844_v40 = vsel %vm186_vm14, 0.0, %v2826_v22  ;;  %v285_v42 = vadd.f32 %v2833_v28, %v2830_v24  ;;  %vm188_vm0 = vcmp.eq.s32.totalorder %v128_v23, %v2688_v8  ;;  %4488 = vst [vmem:[#allocation27_spill] sm:$0xff] %v2863_v62  ;;  %v2881_v28 = vld [vmem:[#allocation2 + $0x90] sm:$0xff] }
  0x36   :  { %325 = vadd.xlane.f32.xlu0 %v324_v45  ;;  %4486 = vst [vmem:[#allocation25_spill] sm:$0xff] %v2844_v40  ;;  %v2848_v45 = vld [vmem:[#allocation2 + $0x188] sm:$0xff]  ;;  %v129_v47 = vadd.s32 200, %v2674_v2  ;;  %v2855_v52 = vsel %vm153_vm15, 0.0, %v2837_v34  ;;  %vm155_vm1 = vcmp.eq.s32.totalorder %v112_v35, %v2676_v3  ;;  %v130_v23 = vadd.s32 208, %v2674_v2 }
  0x37   :  { %4487 = vst [vmem:[#allocation26_spill] sm:$0xff] %v2855_v52  ;;  %v2877_v35 = vsel %vm155_vm1, 0.0, %v2859_v57 }
  0x38   :  { %277 = vadd.xlane.f32.xlu1 %v276_v50  ;;  %v2852_v50 = vld [vmem:[#allocation2 + $0x78] sm:$0xff]  ;;  %vm190_vm2 = vcmp.eq.s32.totalorder %v129_v47, %v2688_v8  ;;  %4490 = vst [vmem:[#allocation29_spill] sm:$0xff] %v2877_v35  ;;  %vm192_vm4 = vcmp.eq.s32.totalorder %v130_v23, %v2688_v8 }
  0x39   :  { %v288_v14 = vadd.f32 %v2855_v52, %v2852_v50  ;;  %v2885_v52 = vld [vmem:[#allocation2 + $0x190] sm:$0xff]  ;;  %v2910_v23 = vsel %vm192_vm4, 0.0, %v2892_v0  ;;  %v2980_v0 = vld [vmem:[#allocation2 + $0x1e8] sm:$0xff] }
  0x3a   :  { %328 = vadd.xlane.f32.xlu0 %v327_v55  ;;  %v336_v55 = vadd.f32 %v2844_v40, %v2841_v37  ;;  %4491 = vst [vmem:[#allocation30_spill] sm:$0xff] %v2885_v52  ;;  %4496 = vst [vmem:[#allocation35_spill] sm:$0xff] %v2910_v23 }
  0x3b   :  { %4508 = vst [vmem:[#allocation47_spill] sm:$0xff] %v2980_v0 }
  0x3c   :  { %280 = vadd.xlane.f32.xlu1 %v279_v60  ;;  %v113_v60 = vadd.s32 72, %v2674_v2 }
  0x3e   :  { %331 = vadd.xlane.f32.xlu0 %v330_v7  ;;  %v2866_v7 = vsel %vm188_vm0, 0.0, %v2848_v45  ;;  %vm157_vm3 = vcmp.eq.s32.totalorder %v113_v60, %v2676_v3 }
  0x3f   :  { %4489 = vst [vmem:[#allocation28_spill] sm:$0xff] %v2866_v7  ;;  %v339_v40 = vadd.f32 %v2866_v7, %v2863_v62  ;;  %v2896_v7 = vld [vmem:[#allocation2 + $0x98] sm:$0xff]  ;;  %v2899_v60 = vsel %vm157_vm3, 0.0, %v2881_v28 }
  0x40   :  { %283 = vadd.xlane.f32.xlu1 %v282_v17  ;;  %v2870_v17 = vld [vmem:[#allocation2 + $0x198] sm:$0xff]  ;;  %4494 = vst [vmem:[#allocation33_spill] sm:$0xff] %v2899_v60  ;;  %v294_v49 = vadd.f32 %v2899_v60, %v2896_v7  ;;  %v2929_v60 = vld [vmem:[#allocation2 + $0x1b0] sm:$0xff] }
  0x41   :  { %v2888_v47 = vsel %vm190_vm2, 0.0, %v2870_v17  ;;  %4499 = vst [vmem:[#allocation38_spill] sm:$0xff] %v2929_v60  ;;  %v3000_v62 = vld [vmem:[#allocation2 + $0x1f8] sm:$0xff] }
  0x42   :  { %334 = vadd.xlane.f32.xlu0 %v333_v31  ;;  %v2874_v31 = vld [vmem:[#allocation2 + $0x88] sm:$0xff]  ;;  %4492 = vst [vmem:[#allocation31_spill] sm:$0xff] %v2888_v47  ;;  %v342_v59 = vadd.f32 %v2888_v47, %v2885_v52 }
  0x43   :  { %v291_v16 = vadd.f32 %v2877_v35, %v2874_v31  ;;  %v2907_v35 = vld [vmem:[#allocation2 + $0x1a0] sm:$0xff]  ;;  %v2918_v47 = vld [vmem:[#allocation2 + $0xa8] sm:$0xff] }
  0x44   :  { %286 = vadd.xlane.f32.xlu1 %v285_v42  ;;  %v114_v42 = vadd.s32 80, %v2674_v2  ;;  %4495 = vst [vmem:[#allocation34_spill] sm:$0xff] %v2907_v35  ;;  %v345_v39 = vadd.f32 %v2910_v23, %v2907_v35  ;;  %v2940_v23 = vld [vmem:[#allocation2 + $0xb8] sm:$0xff] }
  0x45   :  { %v2958_v35 = vld [vmem:[#allocation2 + $0x1d8] sm:$0xff] }
  0x46   :  { %337 = vadd.xlane.f32.xlu0 %v336_v55  ;;  %v131_v55 = vadd.s32 216, %v2674_v2  ;;  %vm159_vm5 = vcmp.eq.s32.totalorder %v114_v42, %v2676_v3  ;;  %4505 = vst [vmem:[#allocation44_spill] sm:$0xff] %v2958_v35 }
  0x47   :  { %v2921_v42 = vsel %vm159_vm5, 0.0, %v2903_v54 }
  0x48   :  { %289 = vadd.xlane.f32.xlu1 %v288_v14  ;;  %v115_v14 = vadd.s32 88, %v2674_v2  ;;  %vm194_vm6 = vcmp.eq.s32.totalorder %v131_v55, %v2688_v8  ;;  %4498 = vst [vmem:[#allocation37_spill] sm:$0xff] %v2921_v42  ;;  %v297_v29 = vadd.f32 %v2921_v42, %v2918_v47  ;;  %v2951_v42 = vld [vmem:[#allocation2 + $0x1c0] sm:$0xff] }
  0x49   :  { %v2932_v55 = vsel %vm194_vm6, 0.0, %v2914_v44  ;;  %4503 = vst [vmem:[#allocation42_spill] sm:$0xff] %v2951_v42 }
  0x4a   :  { %340 = vadd.xlane.f32.xlu0 %v339_v40  ;;  %v132_v40 = vadd.s32 224, %v2674_v2  ;;  %vm161_vm7 = vcmp.eq.s32.totalorder %v115_v14, %v2676_v3  ;;  %4500 = vst [vmem:[#allocation39_spill] sm:$0xff] %v2932_v55  ;;  %v348_v18 = vadd.f32 %v2932_v55, %v2929_v60  ;;  %v2962_v55 = vld [vmem:[#allocation2 + $0xc8] sm:$0xff]  ;;  %v2969_v60 = vld [vmem:[#allocation2 + $0xd0] sm:$0xff] }
  0x4b   :  { %v2943_v14 = vsel %vm161_vm7, 0.0, %v2925_v33 }
  0x4c   :  { %292 = vadd.xlane.f32.xlu1 %v291_v16  ;;  %v116_v16 = vadd.s32 96, %v2674_v2  ;;  %vm196_vm8 = vcmp.eq.s32.totalorder %v132_v40, %v2688_v8  ;;  %4502 = vst [vmem:[#allocation41_spill] sm:$0xff] %v2943_v14  ;;  %v300_v19 = vadd.f32 %v2943_v14, %v2940_v23  ;;  %v2973_v14 = vld [vmem:[#allocation2 + $0x1d0] sm:$0xff] }
  0x4d   :  { %v2954_v40 = vsel %vm196_vm8, 0.0, %v2936_v25 }
  0x4e   :  { %343 = vadd.xlane.f32.xlu0 %v342_v59  ;;  %v133_v59 = vadd.s32 232, %v2674_v2  ;;  %vm163_vm9 = vcmp.eq.s32.totalorder %v116_v16, %v2676_v3  ;;  %4504 = vst [vmem:[#allocation43_spill] sm:$0xff] %v2954_v40  ;;  %v351_v25 = vadd.f32 %v2954_v40, %v2951_v42  ;;  %v2984_v40 = vld [vmem:[#allocation2 + $0xd8] sm:$0xff] }
  0x4f   :  { %v2965_v16 = vsel %vm163_vm9, 0.0, %v2947_v11 }
  0x50   :  { %295 = vadd.xlane.f32.xlu1 %v294_v49  ;;  %v117_v49 = vadd.s32 104, %v2674_v2  ;;  %vm198_vm10 = vcmp.eq.s32.totalorder %v133_v59, %v2688_v8  ;;  %4506 = vst [vmem:[#allocation45_spill] sm:$0xff] %v2965_v16  ;;  %v303_v44 = vadd.f32 %v2965_v16, %v2962_v55  ;;  %v2993_v16 = vld [vmem:[#allocation2 + $0x1e0] sm:$0xff] }
  0x51   :  { %v2976_v59 = vsel %vm198_vm10, 0.0, %v2958_v35  ;;  %v67_v35 = vld [vmem:[#allocation2 + $0xe0] sm:$0xff] }
  0x52   :  { %346 = vadd.xlane.f32.xlu0 %v345_v39  ;;  %v134_v39 = vadd.s32 240, %v2674_v2  ;;  %vm165_vm11 = vcmp.eq.s32.totalorder %v117_v49, %v2676_v3  ;;  %4507 = vst [vmem:[#allocation46_spill] sm:$0xff] %v2976_v59  ;;  %v354_v42 = vadd.f32 %v2976_v59, %v2973_v14 }
  0x53   :  { %v2987_v49 = vsel %vm165_vm11, 0.0, %v2969_v60 }
  0x54   :  { %298 = vadd.xlane.f32.xlu1 %v297_v29  ;;  %v118_v29 = vadd.s32 112, %v2674_v2  ;;  %vm200_vm12 = vcmp.eq.s32.totalorder %v134_v39, %v2688_v8  ;;  %4509 = vst [vmem:[#allocation48_spill] sm:$0xff] %v2987_v49  ;;  %v306_v52 = vadd.f32 %v2987_v49, %v2984_v40 }
  0x55   :  { %v2996_v39 = vsel %vm200_vm12, 0.0, %v2980_v0  ;;  %v3010_v0 = vld [vmem:[#allocation2 + $0x1f0] sm:$0xff] }
  0x56   :  { %349 = vadd.xlane.f32.xlu0 %v348_v18  ;;  %v135_v18 = vadd.s32 248, %v2674_v2  ;;  %vm167_vm13 = vcmp.eq.s32.totalorder %v118_v29, %v2676_v3  ;;  %v69_v29 = vld [vmem:[#allocation2 + $0xf0] sm:$0xff] }
  0x57   :  { %v3005_v59 = vsel %vm167_vm13, 0.0, %v67_v35 }
  0x58   :  { %301 = vadd.xlane.f32.xlu1 %v300_v19  ;;  %v119_v19 = vadd.s32 120, %v2674_v2  ;;  %vm202_vm14 = vcmp.eq.s32.totalorder %v135_v18, %v2688_v8  ;;  %4510 = vst [vmem:[#allocation49_spill] sm:$0xff] %v3005_v59  ;;  %v357_v2 = vadd.f32 %v2996_v39, %v2993_v16  ;;  %v3017_v18 = vld [vmem:[#allocation2 + $0xf8] sm:$0xff] }
  0x5a   :  { %352 = vadd.xlane.f32.xlu0 %v351_v25  ;;  %v3003_v25 = vld [vmem:[#allocation2 + $0xe8] sm:$0xff]  ;;  %vm169_vm15 = vcmp.eq.s32.totalorder %v119_v19, %v2676_v3  ;;  %v2025_v19 = vpack.c.bf16 %v2698_v13, %v2672_v1  ;;  %v2035_v1 = vpack.c.bf16 %v2852_v50, %v2830_v24  ;;  %v2037_v13 = vpack.c.bf16 %v2837_v34, %v2815_v10 }
  0x5b   :  { %v309_v8 = vadd.f32 %v3005_v59, %v3003_v25  ;;  %v3019_v49 = vsel %vm169_vm15, 0.0, %v69_v29  ;;  %v2027_v59 = vpack.c.bf16 %v2764_v43, %v2740_v32  ;;  %v2047_v10 = vpack.c.bf16 %v2984_v40, %v2962_v55 }
  0x5c   :  { %304 = vadd.xlane.f32.xlu1 %v303_v44  ;;  %v3013_v44 = vsel %vm202_vm14, 0.0, %v3000_v62  ;;  %v312_v3 = vadd.f32 %v3019_v49, %v3017_v18  ;;  %v2049_v34 = vpack.c.bf16 %v2969_v60, %v2947_v11  ;;  %v2061_v11 = vpack.c.bf16 %v2753_v38, %v2729_v27 }
  0x5e   :  { %355 = vadd.xlane.f32.xlu0 %v354_v42  ;;  %v360_v42 = vadd.f32 %v3013_v44, %v3010_v0 }
  0x60   :  { %307 = vadd.xlane.f32.xlu1 %v306_v52  ;;  %v2023_v52 = vpack.c.bf16 %v2713_v20, %v2678_v4 }
  0x62   :  { %358 = vadd.xlane.f32.xlu0 %v357_v2  ;;  %2024 = vmatprep.subr.bf16.mxu0 %v2023_v52  ;;  %v2029_v2 = vpack.c.bf16 %v2748_v36, %v2726_v26  ;;  %v2039_v26 = vpack.c.bf16 %v2896_v7, %v2874_v31  ;;  %v2041_v36 = vpack.c.bf16 %v2881_v28, %v2859_v57 }
  0x63   :  { %2026 = vmatpush1.bf16.msra.mxu0 %v2025_v19  ;;  %v2051_v28 = vpack.c.bf16 %v3017_v18, %v3003_v25  ;;  %v2053_v57 = vpack.c.bf16 %v69_v29, %v67_v35  ;;  %v2063_v35 = vpack.c.bf16 %v2782_v51, %v2760_v41  ;;  %v4511_v41 = vld [vmem:[#allocation27_spill] sm:$0xff]  ;;  %v4512_v51 = vld [vmem:[#allocation30_spill] sm:$0xff]  ;;  %v4513_v19 = vld [vmem:[#allocation32_spill] sm:$0xff] }
  0x64   :  { %310 = vadd.xlane.f32.xlu1 %v309_v8  ;;  %2028 = vmatprep.subr.bf16.mxu0 %v2027_v59  ;;  %v2031_v8 = vpack.c.bf16 %v2808_v63, %v2786_v53  ;;  %v2055_v59 = vpack.c.bf16 %v2684_v6, %v2690_v9  ;;  %v2065_v6 = vpack.c.bf16 %v2797_v58, %v2775_v48 }
  0x65   :  { %v2067_v9 = vpack.c.bf16 %v2826_v22, %v2804_v61  ;;  %v2073_v29 = vpack.c.bf16 %v4512_v51, %v4511_v41 }
  0x66   :  { %361 = vadd.xlane.f32.xlu0 %v360_v42  ;;  %v2033_v42 = vpack.c.bf16 %v2793_v56, %v2771_v46  ;;  %v2043_v46 = vpack.c.bf16 %v2940_v23, %v2918_v47  ;;  %v2045_v56 = vpack.c.bf16 %v2925_v33, %v2903_v54  ;;  %v2057_v33 = vpack.c.bf16 %v2682_v5, %v2696_v12 }
  0x67   :  { %2030 = vmatpush1.bf16.msra.mxu0 %v2029_v2  ;;  %v2059_v54 = vpack.c.bf16 %v2737_v30, %v2716_v21  ;;  %v2069_v21 = vpack.c.bf16 %v2841_v37, %v2819_v15  ;;  %v2071_v30 = vpack.c.bf16 %v2870_v17, %v2848_v45  ;;  %v4514_v2 = vld [vmem:[#allocation36_spill] sm:$0xff]  ;;  %v4516_v45 = vld [vmem:[#allocation38_spill] sm:$0xff] }
  0x68   :  { %313 = vadd.xlane.f32.xlu1 %v312_v3  ;;  %2032 = vmatprep.subr.bf16.mxu0 %v2031_v8  ;;  %v2075_v61 = vpack.c.bf16 %v4514_v2, %v4513_v19  ;;  %v4521_v2 = vld [vmem:[#allocation13_spill] sm:$0xff] }
  0x6b   :  { %2034 = vmatpush1.bf16.msra.mxu0 %v2033_v42  ;;  %v4515_v42 = vld [vmem:[#allocation34_spill] sm:$0xff] }
  0x6c   :  { %2036 = vmatprep.subr.bf16.mxu0 %v2035_v1  ;;  %v2077_v17 = vpack.c.bf16 %v4516_v45, %v4515_v42 }
  0x6f   :  { %2038 = vmatpush1.bf16.msra.mxu0 %v2037_v13 }
  0x70   :  { %2040 = vmatprep.subr.bf16.mxu0 %v2039_v26  ;;  %v4517_v26 = vld [vmem:[#allocation40_spill] sm:$0xff] }
  0x73   :  { %2042 = vmatpush1.bf16.msra.mxu0 %v2041_v36  ;;  %v4518_v36 = vld [vmem:[#allocation44_spill] sm:$0xff] }
  0x74   :  { %2044 = vmatprep.subr.bf16.mxu0 %v2043_v46  ;;  %v2079_v46 = vpack.c.bf16 %v4518_v36, %v4517_v26 }
  0x77   :  { %2046 = vmatpush1.bf16.msra.mxu0 %v2045_v56 }
  0x78   :  { %2048 = vmatprep.subr.bf16.mxu0 %v2047_v10 }
  0x7b   :  { %2050 = vmatpush1.bf16.msra.mxu0 %v2049_v34  ;;  %v4519_v34 = vld [vmem:[#allocation42_spill] sm:$0xff] }
  0x7c   :  { %2052 = vmatprep.subr.bf16.mxu0 %v2051_v28  ;;  %v2081_v28 = vpack.c.bf16 %v2973_v14, %v4519_v34 }
  0x7f   :  { %2054 = vmatpush1.bf16.msra.mxu0 %v2053_v57 }
  0x80   :  { %2056 = vmatprep.subr.bf16.mxu0 %v2055_v59 }
  0x83   :  { %2058 = vmatpush1.bf16.msra.mxu0 %v2057_v33  ;;  %v4520_v33 = vld [vmem:[#allocation47_spill] sm:$0xff] }
  0x84   :  { %2060 = vmatprep.subr.bf16.mxu0 %v2059_v54  ;;  %v2083_v54 = vpack.c.bf16 %v3000_v62, %v4520_v33 }
  0x87   :  { %2062 = vmatpush1.bf16.msra.mxu0 %v2061_v11 }
  0x88   :  { %2064 = vmatprep.subr.bf16.mxu0 %v2063_v35 }
  0x8b   :  { %2066 = vmatpush1.bf16.msra.mxu0 %v2065_v6 }
  0x8c   :  { %2068 = vmatprep.subr.bf16.mxu0 %v2067_v9 }
  0x8f   :  { %2070 = vmatpush1.bf16.msra.mxu0 %v2069_v21 }
  0x90   :  { %2072 = vmatprep.subr.bf16.mxu0 %v2071_v30 }
  0x93   :  { %2074 = vmatpush1.bf16.msra.mxu0 %v2073_v29 }
  0x94   :  { %2076 = vmatprep.subr.bf16.mxu0 %v2075_v61 }
  0x97   :  { %2078 = vmatpush1.bf16.msra.mxu0 %v2077_v17 }
  0x98   :  { %2080 = vmatprep.subr.bf16.mxu0 %v2079_v46 }
  0x9b   :  { %2082 = vmatpush1.bf16.msra.mxu0 %v2081_v28 }
  0x9c   :  { %2084 = vmatprep.subr.bf16.mxu0 %v2083_v54 }
  0xb7   :  { %v269_v60 = vpop.xlane.xlu0 %268 }
  0xb8   :  { %vm363_vm0 = vcmp.eq.f32.partialorder %v269_v60, 0.0 }
  0xb9   :  { %v395_v3 = vsel %vm363_vm0, 1.0, %v269_v60  ;;  %v320_v52 = vpop.xlane.xlu1 %319 }
  0xba   :  { %vm380_vm1 = vcmp.eq.f32.partialorder %v320_v52, 0.0  ;;  %2380 = vrcp.f32 %v395_v3 }
  0xbb   :  { %v317_v22 = vpop.xlane.xlu0 %316  ;;  %v412_v8 = vsel %vm380_vm1, 1.0, %v320_v52 }
  0xbc   :  { %vm379_vm2 = vcmp.eq.f32.partialorder %v317_v22, 0.0 }
  0xbd   :  { %v411_v1 = vsel %vm379_vm2, 1.0, %v317_v22  ;;  %v272_v13 = vpop.xlane.xlu1 %271  ;;  %v4522_v22 = vld [vmem:[#allocation11_spill] sm:$0xff] }
  0xbe   :  { %2382 = vrcp.f32 %v411_v1  ;;  %vm364_vm3 = vcmp.eq.f32.partialorder %v272_v13, 0.0 }
  0xbf   :  { %2384 = vrcp.f32 %v412_v8  ;;  %v396_v56 = vsel %vm364_vm3, 1.0, %v272_v13  ;;  %v323_v10 = vpop.xlane.xlu0 %322 }
  0xc0   :  { %2386 = vrcp.f32 %v396_v56  ;;  %vm381_vm4 = vcmp.eq.f32.partialorder %v323_v10, 0.0 }
  0xc1   :  { %v275_v57 = vpop.xlane.xlu1 %274  ;;  %v413_v59 = vsel %vm381_vm4, 1.0, %v323_v10 }
  0xc2   :  { %vm365_vm5 = vcmp.eq.f32.partialorder %v275_v57, 0.0  ;;  %2388 = vrcp.f32 %v413_v59 }
  0xc3   :  { %v397_v11 = vsel %vm365_vm5, 1.0, %v275_v57  ;;  %v326_v35 = vpop.xlane.xlu0 %325  ;;  %v4524_v57 = vld [vmem:[#allocation14_spill] sm:$0xff] }
  0xc4   :  { %2390 = vrcp.f32 %v397_v11  ;;  %vm382_vm6 = vcmp.eq.f32.partialorder %v326_v35, 0.0  ;;  %v2381_v6 = vpop.eup %2380  ;;  %v4525_v11 = vld [vmem:[#allocation15_spill] sm:$0xff] }
  0xc5   :  { %v278_v9 = vpop.xlane.xlu1 %277  ;;  %v414_v21 = vsel %vm382_vm6, 1.0, %v326_v35  ;;  %v460_v62 = vmul.f32 %v2381_v6, %v2678_v4  ;;  %v459_v8 = vmul.f32 %v2381_v6, %v4522_v22  ;;  %v4523_v4 = vld [vmem:[#allocation12_spill] sm:$0xff]  ;;  %v4527_v22 = vld [vmem:[#allocation17_spill] sm:$0xff] }
  0xc6   :  { %vm366_vm7 = vcmp.eq.f32.partialorder %v278_v9, 0.0  ;;  %2392 = vrcp.f32 %v414_v21  ;;  %v2085_v21 = vpack.c.bf16 %v3010_v0, %v2993_v16 }
  0xc7   :  { %v398_v30 = vsel %vm366_vm7, 1.0, %v278_v9  ;;  %v329_v60 = vpop.xlane.xlu0 %328 }
  0xc8   :  { %v2383_v29 = vpop.eup %2382  ;;  %2394 = vrcp.f32 %v398_v30  ;;  %vm383_vm8 = vcmp.eq.f32.partialorder %v329_v60, 0.0  ;;  %2086 = vmatpush1.bf16.msra.mxu0 %v2085_v21 }
  0xc9   :  { %v2385_v3 = vpop.eup %2384  ;;  %v281_v52 = vpop.xlane.xlu1 %280  ;;  %v415_v19 = vsel %vm383_vm8, 1.0, %v329_v60  ;;  %v492_v61 = vmul.f32 %v2383_v29, %v4521_v2  ;;  %v491_v17 = vmul.f32 %v2383_v29, %v2696_v12 }
  0xca   :  { %v2387_v1 = vpop.eup %2386  ;;  %vm367_vm9 = vcmp.eq.f32.partialorder %v281_v52, 0.0  ;;  %2396 = vrcp.f32 %v415_v19  ;;  %v494_v28 = vmul.f32 %v2385_v3, %v4523_v4  ;;  %v493_v54 = vmul.f32 %v2385_v3, %v2682_v5 }
  0xcb   :  { %v399_v13 = vsel %vm367_vm9, 1.0, %v281_v52  ;;  %v2268_v26 = vpack.i.bf16 %v460_v62, %v492_v61  ;;  %v2156_v36 = vpack.i.bf16 %v459_v8, %v491_v17  ;;  %v332_v46 = vpop.xlane.xlu0 %331  ;;  %v462_v56 = vmul.f32 %v2387_v1, %v2713_v20  ;;  %v4526_v52 = vld [vmem:[#allocation16_spill] sm:$0xff] }
  0xcc   :  { %v2389_v10 = vpop.eup %2388  ;;  %2398 = vrcp.f32 %v399_v13  ;;  %vm384_vm10 = vcmp.eq.f32.partialorder %v332_v46, 0.0  ;;  %v461_v59 = vmul.f32 %v2387_v1, %v4524_v57 }
  0xcd   :  { %2269 = vxpose.xlu1.b32.start [1/16] %v2268_v26, 128  ;;  %2157 = vxpose.xlu0.b32.start [1/16] %v2156_v36, 128  ;;  %v284_v33 = vpop.xlane.xlu1 %283  ;;  %v416_v12 = vsel %vm384_vm10, 1.0, %v332_v46  ;;  %v496_v35 = vmul.f32 %v2389_v10, %v4525_v11  ;;  %v495_v6 = vmul.f32 %v2389_v10, %v2729_v27  ;;  %v2270_v20 = vpack.i.bf16 %v462_v56, %v494_v28  ;;  %v4528_v36 = vld [vmem:[#allocation18_spill] sm:$0xff] }
  0xce   :  { %v2391_v9 = vpop.eup %2390  ;;  %vm368_vm11 = vcmp.eq.f32.partialorder %v284_v33, 0.0  ;;  %2400 = vrcp.f32 %v416_v12  ;;  %v2158_v60 = vpack.i.bf16 %v461_v59, %v493_v54  ;;  %v4529_v59 = vld [vmem:[#allocation19_spill] sm:$0xff] }
  0xcf   :  { %v400_v30 = vsel %vm368_vm11, 1.0, %v284_v33  ;;  %v335_v29 = vpop.xlane.xlu0 %334  ;;  %v464_v62 = vmul.f32 %v2391_v9, %v2740_v32  ;;  %v463_v19 = vmul.f32 %v2391_v9, %v4526_v52 }
  0xd0   :  { %v2393_v2 = vpop.eup %2392  ;;  %2402 = vrcp.f32 %v400_v30  ;;  %vm385_vm12 = vcmp.eq.f32.partialorder %v335_v29, 0.0 }
  0xd1   :  { %2271 = vxpose.xlu1.b32.cont [2/16] %v2270_v20, 128  ;;  %2159 = vxpose.xlu0.b32.cont [2/16] %v2158_v60, 128  ;;  %v287_v5 = vpop.xlane.xlu1 %286  ;;  %v417_v27 = vsel %vm385_vm12, 1.0, %v335_v29  ;;  %v2272_v3 = vpack.i.bf16 %v464_v62, %v496_v35  ;;  %v2160_v61 = vpack.i.bf16 %v463_v19, %v495_v6  ;;  %v498_v8 = vmul.f32 %v2393_v2, %v4527_v22  ;;  %v4530_v35 = vld [vmem:[#allocation20_spill] sm:$0xff]  ;;  %v4531_v29 = vld [vmem:[#allocation21_spill] sm:$0xff] }
  0xd2   :  { %v2395_v17 = vpop.eup %2394  ;;  %vm369_vm13 = vcmp.eq.f32.partialorder %v287_v5, 0.0  ;;  %2404 = vrcp.f32 %v417_v27  ;;  %v497_v1 = vmul.f32 %v2393_v2, %v2753_v38 }
  0xd3   :  { %v401_v32 = vsel %vm369_vm13, 1.0, %v287_v5  ;;  %v338_v13 = vpop.xlane.xlu0 %337  ;;  %v466_v26 = vmul.f32 %v2395_v17, %v2764_v43  ;;  %v465_v46 = vmul.f32 %v2395_v17, %v4528_v36  ;;  %v4532_v5 = vld [vmem:[#allocation22_spill] sm:$0xff] }
  0xd4   :  { %v2397_v56 = vpop.eup %2396  ;;  %2406 = vrcp.f32 %v401_v32  ;;  %vm386_vm14 = vcmp.eq.f32.partialorder %v338_v13, 0.0 }
  0xd5   :  { %2273 = vxpose.xlu1.b32.cont [3/16] %v2272_v3, 128  ;;  %2161 = vxpose.xlu0.b32.cont [3/16] %v2160_v61, 128  ;;  %v290_v10 = vpop.xlane.xlu1 %289  ;;  %v418_v4 = vsel %vm386_vm14, 1.0, %v338_v13  ;;  %v2274_v28 = vpack.i.bf16 %v466_v26, %v498_v8  ;;  %v2162_v57 = vpack.i.bf16 %v465_v46, %v497_v1  ;;  %v500_v33 = vmul.f32 %v2397_v56, %v4529_v59  ;;  %v4533_v1 = vld [vmem:[#allocation23_spill] sm:$0xff]  ;;  %v4534_v46 = vld [vmem:[#allocation24_spill] sm:$0xff] }
  0xd6   :  { %v2399_v12 = vpop.eup %2398  ;;  %vm370_vm15 = vcmp.eq.f32.partialorder %v290_v10, 0.0  ;;  %2408 = vrcp.f32 %v418_v4  ;;  %v499_v38 = vmul.f32 %v2397_v56, %v2775_v48 }
  0xd7   :  { %v402_v54 = vsel %vm370_vm15, 1.0, %v290_v10  ;;  %v341_v43 = vpop.xlane.xlu0 %340  ;;  %v468_v11 = vmul.f32 %v2399_v12, %v2786_v53  ;;  %v467_v6 = vmul.f32 %v2399_v12, %v4530_v35 }
  0xd8   :  { %v2401_v9 = vpop.eup %2400  ;;  %2410 = vrcp.f32 %v402_v54  ;;  %vm387_vm0 = vcmp.eq.f32.partialorder %v341_v43, 0.0 }
  0xd9   :  { %2275 = vxpose.xlu1.b32.cont [4/16] %v2274_v28, 128  ;;  %2163 = vxpose.xlu0.b32.cont [4/16] %v2162_v57, 128  ;;  %v293_v20 = vpop.xlane.xlu1 %292  ;;  %v419_v21 = vsel %vm387_vm0, 1.0, %v341_v43  ;;  %v2276_v30 = vpack.i.bf16 %v468_v11, %v500_v33  ;;  %v2164_v60 = vpack.i.bf16 %v467_v6, %v499_v38  ;;  %v502_v62 = vmul.f32 %v2401_v9, %v4531_v29  ;;  %v4535_v33 = vld [vmem:[#allocation25_spill] sm:$0xff]  ;;  %v4536_v11 = vld [vmem:[#allocation26_spill] sm:$0xff] }
  0xda   :  { %v2403_v52 = vpop.eup %2402  ;;  %vm371_vm1 = vcmp.eq.f32.partialorder %v293_v20, 0.0  ;;  %2412 = vrcp.f32 %v419_v21  ;;  %v501_v48 = vmul.f32 %v2401_v9, %v2797_v58 }
  0xdb   :  { %v403_v19 = vsel %vm371_vm1, 1.0, %v293_v20  ;;  %v344_v53 = vpop.xlane.xlu0 %343  ;;  %v470_v2 = vmul.f32 %v2403_v52, %v2808_v63  ;;  %v469_v27 = vmul.f32 %v2403_v52, %v4532_v5 }
  0xdc   :  { %v2405_v3 = vpop.eup %2404  ;;  %2414 = vrcp.f32 %v403_v19  ;;  %vm388_vm2 = vcmp.eq.f32.partialorder %v344_v53, 0.0  ;;  %v4538_v19 = vld [vmem:[#allocation29_spill] sm:$0xff] }
  0xdd   :  { %2277 = vxpose.xlu1.b32.cont [5/16] %v2276_v30, 128  ;;  %2165 = vxpose.xlu0.b32.cont [5/16] %v2164_v60, 128  ;;  %v296_v61 = vpop.xlane.xlu1 %295  ;;  %v420_v22 = vsel %vm388_vm2, 1.0, %v344_v53  ;;  %v2278_v8 = vpack.i.bf16 %v470_v2, %v502_v62  ;;  %v2166_v17 = vpack.i.bf16 %v469_v27, %v501_v48  ;;  %v504_v32 = vmul.f32 %v2405_v3, %v4533_v1  ;;  %v4537_v60 = vld [vmem:[#allocation28_spill] sm:$0xff] }
  0xde   :  { %v2407_v13 = vpop.eup %2406  ;;  %vm372_vm3 = vcmp.eq.f32.partialorder %v296_v61, 0.0  ;;  %2416 = vrcp.f32 %v420_v22  ;;  %v503_v58 = vmul.f32 %v2405_v3, %v2819_v15  ;;  %v4539_v22 = vld [vmem:[#allocation31_spill] sm:$0xff] }
  0xdf   :  { %v404_v26 = vsel %vm372_vm3, 1.0, %v296_v61  ;;  %v347_v63 = vpop.xlane.xlu0 %346  ;;  %v472_v36 = vmul.f32 %v2407_v13, %v2830_v24  ;;  %v471_v56 = vmul.f32 %v2407_v13, %v4534_v46  ;;  %v4540_v13 = vld [vmem:[#allocation33_spill] sm:$0xff] }
  0xe0   :  { %v2409_v10 = vpop.eup %2408  ;;  %2418 = vrcp.f32 %v404_v26  ;;  %vm389_vm4 = vcmp.eq.f32.partialorder %v347_v63, 0.0 }
  0xe1   :  { %2279 = vxpose.xlu1.b32.cont [6/16] %v2278_v8, 128  ;;  %2167 = vxpose.xlu0.b32.cont [6/16] %v2166_v17, 128  ;;  %v299_v4 = vpop.xlane.xlu1 %298  ;;  %v421_v28 = vsel %vm389_vm4, 1.0, %v347_v63  ;;  %v2280_v57 = vpack.i.bf16 %v472_v36, %v504_v32  ;;  %v2168_v59 = vpack.i.bf16 %v471_v56, %v503_v58  ;;  %v506_v12 = vmul.f32 %v2409_v10, %v4535_v33  ;;  %v4542_v33 = vld [vmem:[#allocation37_spill] sm:$0xff] }
  0xe2   :  { %v2411_v38 = vpop.eup %2410  ;;  %vm373_vm5 = vcmp.eq.f32.partialorder %v299_v4, 0.0  ;;  %2420 = vrcp.f32 %v421_v28  ;;  %v505_v15 = vmul.f32 %v2409_v10, %v2841_v37  ;;  %v4541_v10 = vld [vmem:[#allocation35_spill] sm:$0xff] }
  0xe3   :  { %v405_v54 = vsel %vm373_vm5, 1.0, %v299_v4  ;;  %v350_v24 = vpop.xlane.xlu0 %349  ;;  %v474_v43 = vmul.f32 %v2411_v38, %v2852_v50  ;;  %v473_v35 = vmul.f32 %v2411_v38, %v4536_v11  ;;  %v4543_v11 = vld [vmem:[#allocation39_spill] sm:$0xff] }
  0xe4   :  { %v2413_v6 = vpop.eup %2412  ;;  %2422 = vrcp.f32 %v405_v54  ;;  %vm390_vm6 = vcmp.eq.f32.partialorder %v350_v24, 0.0 }
  0xe5   :  { %2281 = vxpose.xlu1.b32.cont [7/16] %v2280_v57, 128  ;;  %2169 = vxpose.xlu0.b32.cont [7/16] %v2168_v59, 128  ;;  %v302_v9 = vpop.xlane.xlu1 %301  ;;  %v422_v20 = vsel %vm390_vm6, 1.0, %v350_v24  ;;  %v2282_v21 = vpack.i.bf16 %v474_v43, %v506_v12  ;;  %v2170_v30 = vpack.i.bf16 %v473_v35, %v505_v15  ;;  %v508_v29 = vmul.f32 %v2413_v6, %v4537_v60 }
  0xe6   :  { %v2415_v62 = vpop.eup %2414  ;;  %vm374_vm7 = vcmp.eq.f32.partialorder %v302_v9, 0.0  ;;  %2424 = vrcp.f32 %v422_v20  ;;  %v507_v37 = vmul.f32 %v2413_v6, %v4511_v41 }
  0xe7   :  { %v406_v52 = vsel %vm374_vm7, 1.0, %v302_v9  ;;  %v353_v50 = vpop.xlane.xlu0 %352  ;;  %v476_v48 = vmul.f32 %v2415_v62, %v2874_v31  ;;  %v475_v53 = vmul.f32 %v2415_v62, %v4538_v19 }
  0xe8   :  { %v2417_v2 = vpop.eup %2416  ;;  %2426 = vrcp.f32 %v406_v52  ;;  %vm391_vm8 = vcmp.eq.f32.partialorder %v353_v50, 0.0 }
  0xe9   :  { %2283 = vxpose.xlu1.b32.cont [8/16] %v2282_v21, 128  ;;  %2171 = vxpose.xlu0.b32.cont [8/16] %v2170_v30, 128  ;;  %v305_v5 = vpop.xlane.xlu1 %304  ;;  %v423_v27 = vsel %vm391_vm8, 1.0, %v353_v50  ;;  %v2284_v3 = vpack.i.bf16 %v476_v48, %v508_v29  ;;  %v2172_v61 = vpack.i.bf16 %v475_v53, %v507_v37  ;;  %v510_v8 = vmul.f32 %v2417_v2, %v4539_v22  ;;  %v4544_v21 = vld [vmem:[#allocation41_spill] sm:$0xff]  ;;  %v4545_v50 = vld [vmem:[#allocation43_spill] sm:$0xff]  ;;  %v4547_v22 = vld [vmem:[#allocation46_spill] sm:$0xff] }
  0xea   :  { %v2419_v17 = vpop.eup %2418  ;;  %vm375_vm9 = vcmp.eq.f32.partialorder %v305_v5, 0.0  ;;  %2428 = vrcp.f32 %v423_v27  ;;  %v509_v41 = vmul.f32 %v2417_v2, %v4512_v51  ;;  %v4546_v2 = vld [vmem:[#allocation45_spill] sm:$0xff] }
  0xeb   :  { %v407_v1 = vsel %vm375_vm9, 1.0, %v305_v5  ;;  %v356_v31 = vpop.xlane.xlu0 %355  ;;  %v478_v32 = vmul.f32 %v2419_v17, %v2896_v7  ;;  %v477_v58 = vmul.f32 %v2419_v17, %v4540_v13 }
  0xec   :  { %v2421_v26 = vpop.eup %2420  ;;  %2430 = vrcp.f32 %v407_v1  ;;  %vm392_vm10 = vcmp.eq.f32.partialorder %v356_v31, 0.0 }
  0xed   :  { %2285 = vxpose.xlu1.b32.cont [9/16] %v2284_v3, 128  ;;  %2173 = vxpose.xlu0.b32.cont [9/16] %v2172_v61, 128  ;;  %v308_v63 = vpop.xlane.xlu1 %307  ;;  %v424_v36 = vsel %vm392_vm10, 1.0, %v356_v31  ;;  %v2286_v46 = vpack.i.bf16 %v478_v32, %v510_v8  ;;  %v2174_v56 = vpack.i.bf16 %v477_v58, %v509_v41  ;;  %v512_v4 = vmul.f32 %v2421_v26, %v4541_v10  ;;  %v4548_v31 = vld [vmem:[#allocation48_spill] sm:$0xff] }
  0xee   :  { %v2423_v28 = vpop.eup %2422  ;;  %vm376_vm11 = vcmp.eq.f32.partialorder %v308_v63, 0.0  ;;  %2432 = vrcp.f32 %v424_v36  ;;  %v511_v51 = vmul.f32 %v2421_v26, %v4515_v42 }
  0xef   :  { %v408_v57 = vsel %vm376_vm11, 1.0, %v308_v63  ;;  %v359_v7 = vpop.xlane.xlu0 %358  ;;  %v480_v59 = vmul.f32 %v2423_v28, %v2918_v47  ;;  %v479_v12 = vmul.f32 %v2423_v28, %v4542_v33 }
  0xf0   :  { %v2425_v38 = vpop.eup %2424  ;;  %2434 = vrcp.f32 %v408_v57  ;;  %vm393_vm12 = vcmp.eq.f32.partialorder %v359_v7, 0.0 }
  0xf1   :  { %2287 = vxpose.xlu1.b32.cont [10/16] %v2286_v46, 128  ;;  %2175 = vxpose.xlu0.b32.cont [10/16] %v2174_v56, 128  ;;  %v311_v15 = vpop.xlane.xlu1 %310  ;;  %v425_v54 = vsel %vm393_vm12, 1.0, %v359_v7  ;;  %v2288_v24 = vpack.i.bf16 %v480_v59, %v512_v4  ;;  %v2176_v43 = vpack.i.bf16 %v479_v12, %v511_v51  ;;  %v514_v35 = vmul.f32 %v2425_v38, %v4543_v11  ;;  %v4549_v46 = vld [vmem:[#allocation49_spill] sm:$0xff] }
  0xf2   :  { %v2427_v6 = vpop.eup %2426  ;;  %vm377_vm13 = vcmp.eq.f32.partialorder %v311_v15, 0.0  ;;  %2436 = vrcp.f32 %v425_v54  ;;  %v513_v42 = vmul.f32 %v2425_v38, %v4516_v45 }
  0xf3   :  { %v409_v9 = vsel %vm377_vm13, 1.0, %v311_v15  ;;  %v362_v47 = vpop.xlane.xlu0 %361  ;;  %v482_v20 = vmul.f32 %v2427_v6, %v2940_v23  ;;  %v481_v30 = vmul.f32 %v2427_v6, %v4544_v21 }
  0xf4   :  { %v2429_v60 = vpop.eup %2428  ;;  %2438 = vrcp.f32 %v409_v9  ;;  %vm394_vm14 = vcmp.eq.f32.partialorder %v362_v47, 0.0 }
  0xf5   :  { %2289 = vxpose.xlu1.b32.cont [11/16] %v2288_v24, 128  ;;  %2177 = vxpose.xlu0.b32.cont [11/16] %v2176_v43, 128  ;;  %v314_v29 = vpop.xlane.xlu1 %313  ;;  %v426_v62 = vsel %vm394_vm14, 1.0, %v362_v47  ;;  %v2290_v37 = vpack.i.bf16 %v482_v20, %v514_v35  ;;  %v2178_v52 = vpack.i.bf16 %v481_v30, %v513_v42  ;;  %v516_v48 = vmul.f32 %v2429_v60, %v4545_v50 }
  0xf6   :  { %v2431_v19 = vpop.eup %2430  ;;  %vm378_vm15 = vcmp.eq.f32.partialorder %v314_v29, 0.0  ;;  %2440 = vrcp.f32 %v426_v62  ;;  %v515_v45 = vmul.f32 %v2429_v60, %v4519_v34 }
  0xf7   :  { %v410_v53 = vsel %vm378_vm15, 1.0, %v314_v29  ;;  %v484_v23 = vmul.f32 %v2431_v19, %v2962_v55  ;;  %v483_v5 = vmul.f32 %v2431_v19, %v4546_v2 }
  0xf8   :  { %v2433_v27 = vpop.eup %2432  ;;  %2442 = vrcp.f32 %v410_v53 }
  0xf9   :  { %2291 = vxpose.xlu1.b32.cont [12/16] %v2290_v37, 128  ;;  %2179 = vxpose.xlu0.b32.cont [12/16] %v2178_v52, 128  ;;  %v2292_v3 = vpack.i.bf16 %v484_v23, %v516_v48  ;;  %v2180_v61 = vpack.i.bf16 %v483_v5, %v515_v45  ;;  %v518_v8 = vmul.f32 %v2433_v27, %v4547_v22 }
  0xfa   :  { %v2435_v17 = vpop.eup %2434  ;;  %v517_v41 = vmul.f32 %v2433_v27, %v2973_v14 }
  0xfb   :  { %v486_v1 = vmul.f32 %v2435_v17, %v2984_v40  ;;  %v485_v34 = vmul.f32 %v2435_v17, %v4548_v31 }
  0xfc   :  { %v2437_v32 = vpop.eup %2436 }
  0xfd   :  { %2293 = vxpose.xlu1.b32.cont [13/16] %v2292_v3, 128  ;;  %2181 = vxpose.xlu0.b32.cont [13/16] %v2180_v61, 128  ;;  %v2294_v55 = vpack.i.bf16 %v486_v1, %v518_v8  ;;  %v2182_v13 = vpack.i.bf16 %v485_v34, %v517_v41  ;;  %v520_v58 = vmul.f32 %v2437_v32, %v2996_v39 }
  0xfe   :  { %v2439_v26 = vpop.eup %2438  ;;  %v519_v63 = vmul.f32 %v2437_v32, %v2993_v16 }
  0xff   :  { %v488_v36 = vmul.f32 %v2439_v26, %v3003_v25  ;;  %v487_v56 = vmul.f32 %v2439_v26, %v4549_v46 }
 0x100   :  { %v2441_v10 = vpop.eup %2440 }
 0x101   :  { %2295 = vxpose.xlu1.b32.cont [14/16] %v2294_v55, 128  ;;  %2183 = vxpose.xlu0.b32.cont [14/16] %v2182_v13, 128  ;;  %v2296_v14 = vpack.i.bf16 %v488_v36, %v520_v58  ;;  %v2184_v40 = vpack.i.bf16 %v487_v56, %v519_v63  ;;  %v522_v4 = vmul.f32 %v2441_v10, %v3013_v44 }
 0x102   :  { %v2443_v28 = vpop.eup %2442  ;;  %v521_v51 = vmul.f32 %v2441_v10, %v3010_v0 }
 0x103   :  { %v490_v57 = vmul.f32 %v2443_v28, %v3017_v18  ;;  %v489_v39 = vmul.f32 %v2443_v28, %v3019_v49 }
 0x105   :  { %2297 = vxpose.xlu1.b32.cont [15/16] %v2296_v14, 128  ;;  %2185 = vxpose.xlu0.b32.cont [15/16] %v2184_v40, 128  ;;  %v2298_v16 = vpack.i.bf16 %v490_v57, %v522_v4  ;;  %v2186_v25 = vpack.i.bf16 %v489_v39, %v521_v51 }
 0x109   :  { %2299 = vxpose.xlu1.b32.end [16/16] %v2298_v16, 128  ;;  %2187 = vxpose.xlu0.b32.end [16/16] %v2186_v25, 128 }
 0x14d   :  { %v3151_v7 = vpop.trf.xlu0  ;;  %v3153_v59 = vpop.trf.xlu1 }
 0x14e   :  { %v2189_v33 = vunpack.i.l.bf16 %v3151_v7  ;;  %v4365_v44 = vunpack.i.h.bf16 %v3151_v7  ;;  %v4308_v39 = vunpack.i.l.bf16 %v3153_v59 }
 0x150   :  { %715 = vmatprep.mubr.f32.mxu0 %v2189_v33  ;;  %1164 = vmatprep.mubr.f32.mxu1 %v2189_v33 }
 0x151   :  { %v3157_v0 = vpop.trf.xlu0  ;;  %716 = vmatmul.mubr.f32.vlgmr.msra.gmra.mrb[0].mxu0 %v4365_v44  ;;  %v3161_v49 = vpop.trf.xlu1 }
 0x152   :  { %v4364_v18 = vunpack.i.l.bf16 %v3157_v0  ;;  %v4363_v12 = vunpack.i.h.bf16 %v3157_v0 }
 0x154   :  { %721 = vmatprep.mubr.f32.mxu0 %v4364_v18 }
 0x155   :  { %v3167_v38 = vpop.trf.xlu0  ;;  %722 = vmatmul.mubr.f32.gmra.mrb[2].mxu0 %v4363_v12  ;;  %v3171_v15 = vpop.trf.xlu1  ;;  %v2455_v12 = vld [vmem:[#allocation2 + $0x58] sm:$0xff] }
 0x156   :  { %v4362_v54 = vunpack.i.l.bf16 %v3167_v38  ;;  %v4361_v24 = vunpack.i.h.bf16 %v3167_v38  ;;  %v3459_v18 = vmul.f32 0.7, %v2455_v12 }
 0x158   :  { %727 = vmatprep.mubr.f32.mxu0 %v4362_v54  ;;  %4557 = vst [vmem:[#allocation44_spill] sm:$0xff] %v3459_v18 }
 0x159   :  { %v3177_v43 = vpop.trf.xlu0  ;;  %728 = vmatmul.mubr.f32.gmra.mrb[4].mxu0 %v4361_v24  ;;  %v3181_v11 = vpop.trf.xlu1 }
 0x15a   :  { %v4360_v35 = vunpack.i.l.bf16 %v3177_v43  ;;  %v4359_v6 = vunpack.i.h.bf16 %v3177_v43 }
 0x15c   :  { %733 = vmatprep.mubr.f32.mxu0 %v4360_v35 }
 0x15d   :  { %v3187_v42 = vpop.trf.xlu0  ;;  %734 = vmatmul.mubr.f32.gmra.mrb[6].mxu0 %v4359_v6  ;;  %v3191_v9 = vpop.trf.xlu1 }
 0x15e   :  { %v4358_v47 = vunpack.i.l.bf16 %v3187_v42  ;;  %v4357_v20 = vunpack.i.h.bf16 %v3187_v42 }
 0x160   :  { %739 = vmatprep.mubr.f32.mxu0 %v4358_v47 }
 0x161   :  { %v3197_v21 = vpop.trf.xlu0  ;;  %740 = vmatmul.mubr.f32.gmra.mrb[8].mxu0 %v4357_v20  ;;  %v3201_v30 = vpop.trf.xlu1 }
 0x162   :  { %v4356_v60 = vunpack.i.l.bf16 %v3197_v21  ;;  %v4355_v29 = vunpack.i.h.bf16 %v3197_v21 }
 0x164   :  { %745 = vmatprep.mubr.f32.mxu0 %v4356_v60 }
 0x165   :  { %v3207_v62 = vpop.trf.xlu0  ;;  %746 = vmatmul.mubr.f32.gmra.mrb[10].mxu0 %v4355_v29  ;;  %v3211_v37 = vpop.trf.xlu1  ;;  %v2451_v29 = vld [vmem:[#allocation2 + $0x38] sm:$0xff] }
 0x166   :  { %v4354_v52 = vunpack.i.l.bf16 %v3207_v62  ;;  %v4353_v50 = vunpack.i.h.bf16 %v3207_v62  ;;  %v3435_v60 = vmul.f32 0.7, %v2451_v29 }
 0x168   :  { %751 = vmatprep.mubr.f32.mxu0 %v4354_v52  ;;  %4551 = vst [vmem:[#allocation30_spill] sm:$0xff] %v3435_v60 }
 0x169   :  { %v3217_v48 = vpop.trf.xlu0  ;;  %752 = vmatmul.mubr.f32.gmra.mrb[12].mxu0 %v4353_v50  ;;  %v3221_v19 = vpop.trf.xlu1  ;;  %v2450_v50 = vld [vmem:[#allocation2 + $0x30] sm:$0xff] }
 0x16a   :  { %v4352_v45 = vunpack.i.l.bf16 %v3217_v48  ;;  %v4351_v53 = vunpack.i.h.bf16 %v3217_v48 }
 0x16c   :  { %757 = vmatprep.mubr.f32.mxu0 %v4352_v45 }
 0x16d   :  { %v3227_v23 = vpop.trf.xlu0  ;;  %758 = vmatmul.mubr.f32.gmra.mrb[14].mxu0 %v4351_v53  ;;  %v3231_v2 = vpop.trf.xlu1 }
 0x16e   :  { %v4350_v5 = vunpack.i.l.bf16 %v3227_v23  ;;  %v4348_v27 = vunpack.i.h.bf16 %v3227_v23 }
 0x170   :  { %763 = vmatprep.mubr.f32.mxu0 %v4350_v5 }
 0x171   :  { %v3237_v3 = vpop.trf.xlu0  ;;  %764 = vmatmul.mubr.f32.gmra.mrb[16].mxu0 %v4348_v27  ;;  %v3241_v61 = vpop.trf.xlu1 }
 0x172   :  { %v4346_v22 = vunpack.i.l.bf16 %v3237_v3  ;;  %v4345_v8 = vunpack.i.h.bf16 %v3237_v3 }
 0x174   :  { %769 = vmatprep.mubr.f32.mxu0 %v4346_v22 }
 0x175   :  { %v3247_v17 = vpop.trf.xlu0  ;;  %770 = vmatmul.mubr.f32.gmra.mrb[18].mxu0 %v4345_v8  ;;  %v3251_v41 = vpop.trf.xlu1  ;;  %v2447_v8 = vld [vmem:[#allocation2 + $0x18] sm:$0xff] }
 0x176   :  { %v4344_v1 = vunpack.i.l.bf16 %v3247_v17  ;;  %v4342_v31 = vunpack.i.h.bf16 %v3247_v17  ;;  %v3411_v22 = vmul.f32 0.7, %v2447_v8 }
 0x178   :  { %775 = vmatprep.mubr.f32.mxu0 %v4344_v1 }
 0x179   :  { %v3257_v34 = vpop.trf.xlu0  ;;  %776 = vmatmul.mubr.f32.gmra.mrb[20].mxu0 %v4342_v31  ;;  %v3261_v32 = vpop.trf.xlu1 }
 0x17a   :  { %v4341_v55 = vunpack.i.l.bf16 %v3257_v34  ;;  %v4340_v13 = vunpack.i.h.bf16 %v3257_v34 }
 0x17c   :  { %781 = vmatprep.mubr.f32.mxu0 %v4341_v55  ;;  %v2446_v55 = vld [vmem:[#allocation2 + $0x8] sm:$0xff] }
 0x17d   :  { %v3267_v58 = vpop.trf.xlu0  ;;  %782 = vmatmul.mubr.f32.gmra.mrb[22].mxu0 %v4340_v13  ;;  %v3271_v26 = vpop.trf.xlu1  ;;  %v3409_v31 = vmul.f32 0.7, %v2446_v55 }
 0x17e   :  { %v4338_v63 = vunpack.i.l.bf16 %v3267_v58  ;;  %v4337_v36 = vunpack.i.h.bf16 %v3267_v58 }
 0x180   :  { %787 = vmatprep.mubr.f32.mxu0 %v4338_v63 }
 0x181   :  { %v3277_v46 = vpop.trf.xlu0  ;;  %788 = vmatmul.mubr.f32.gmra.mrb[24].mxu0 %v4337_v36  ;;  %v3281_v56 = vpop.trf.xlu1 }
 0x182   :  { %v4336_v10 = vunpack.i.l.bf16 %v3277_v46  ;;  %v4305_v14 = vunpack.i.h.bf16 %v3277_v46 }
 0x184   :  { %793 = vmatprep.mubr.f32.mxu0 %v4336_v10  ;;  %v2444_v10 = vld [vmem:[#allocation2] sm:$0xff] }
 0x185   :  { %v3287_v40 = vpop.trf.xlu0  ;;  %794 = vmatmul.mubr.f32.gmra.mrb[26].mxu0 %v4305_v14  ;;  %v3291_v4 = vpop.trf.xlu1  ;;  %v4311_v14 = vunpack.i.h.bf16 %v3161_v49  ;;  %v3405_v36 = vmul.f32 0.7, %v2444_v10 }
 0x186   :  { %v4303_v28 = vunpack.i.l.bf16 %v3287_v40  ;;  %v4304_v51 = vunpack.i.h.bf16 %v3287_v40 }
 0x188   :  { %799 = vmatprep.mubr.f32.mxu0 %v4303_v28  ;;  %v4309_v28 = vunpack.i.h.bf16 %v3153_v59 }
 0x189   :  { %v3297_v57 = vpop.trf.xlu0  ;;  %800 = vmatmul.mubr.f32.gmra.mrb[28].mxu0 %v4304_v51  ;;  %v3302_v16 = vpop.trf.xlu1  ;;  %v4310_v51 = vunpack.i.l.bf16 %v3161_v49 }
 0x18a   :  { %v4306_v25 = vunpack.i.l.bf16 %v3297_v57  ;;  %v4307_v33 = vunpack.i.h.bf16 %v3297_v57 }
 0x18c   :  { %805 = vmatprep.mubr.f32.mxu0 %v4306_v25  ;;  %v4312_v25 = vunpack.i.l.bf16 %v3171_v15 }
 0x18d   :  { %806 = vmatmul.mubr.f32.gmra.mrb[30].mxu0 %v4307_v33  ;;  %v4313_v33 = vunpack.i.h.bf16 %v3171_v15 }
 0x18e   :  { %811 = vmatprep.mubr.f32.mxu0 %v4308_v39  ;;  %v4314_v39 = vunpack.i.l.bf16 %v3181_v11 }
 0x191   :  { %812 = vmatmul.mubr.f32.gmra.mrb[32].mxu0 %v4309_v28  ;;  %v4315_v28 = vunpack.i.h.bf16 %v3181_v11 }
 0x192   :  { %817 = vmatprep.mubr.f32.mxu0 %v4310_v51  ;;  %v4316_v51 = vunpack.i.l.bf16 %v3191_v9 }
 0x195   :  { %818 = vmatmul.mubr.f32.gmra.mrb[34].mxu0 %v4311_v14  ;;  %v4317_v14 = vunpack.i.h.bf16 %v3191_v9 }
 0x196   :  { %823 = vmatprep.mubr.f32.mxu0 %v4312_v25  ;;  %v4318_v25 = vunpack.i.l.bf16 %v3201_v30 }
 0x199   :  { %824 = vmatmul.mubr.f32.gmra.mrb[36].mxu0 %v4313_v33  ;;  %v4319_v33 = vunpack.i.h.bf16 %v3201_v30 }
 0x19a   :  { %829 = vmatprep.mubr.f32.mxu0 %v4314_v39  ;;  %v4320_v39 = vunpack.i.l.bf16 %v3211_v37 }
 0x19d   :  { %830 = vmatmul.mubr.f32.gmra.mrb[38].mxu0 %v4315_v28  ;;  %v4321_v28 = vunpack.i.h.bf16 %v3211_v37 }
 0x19e   :  { %835 = vmatprep.mubr.f32.mxu0 %v4316_v51  ;;  %v4322_v51 = vunpack.i.l.bf16 %v3221_v19 }
 0x1a1   :  { %836 = vmatmul.mubr.f32.gmra.mrb[40].mxu0 %v4317_v14  ;;  %v4323_v14 = vunpack.i.h.bf16 %v3221_v19 }
 0x1a2   :  { %841 = vmatprep.mubr.f32.mxu0 %v4318_v25  ;;  %v4324_v25 = vunpack.i.l.bf16 %v3231_v2 }
 0x1a5   :  { %842 = vmatmul.mubr.f32.gmra.mrb[42].mxu0 %v4319_v33  ;;  %v4325_v33 = vunpack.i.h.bf16 %v3231_v2 }
 0x1a6   :  { %847 = vmatprep.mubr.f32.mxu0 %v4320_v39  ;;  %v4326_v39 = vunpack.i.l.bf16 %v3241_v61 }
 0x1a9   :  { %848 = vmatmul.mubr.f32.gmra.mrb[44].mxu0 %v4321_v28  ;;  %v4327_v28 = vunpack.i.h.bf16 %v3241_v61 }
 0x1aa   :  { %853 = vmatprep.mubr.f32.mxu0 %v4322_v51  ;;  %v4328_v51 = vunpack.i.l.bf16 %v3251_v41 }
 0x1ad   :  { %854 = vmatmul.mubr.f32.gmra.mrb[46].mxu0 %v4323_v14  ;;  %v4329_v14 = vunpack.i.h.bf16 %v3251_v41 }
 0x1ae   :  { %859 = vmatprep.mubr.f32.mxu0 %v4324_v25  ;;  %v4330_v25 = vunpack.i.l.bf16 %v3261_v32 }
 0x1b1   :  { %860 = vmatmul.mubr.f32.gmra.mrb[48].mxu0 %v4325_v33  ;;  %v4331_v33 = vunpack.i.h.bf16 %v3261_v32 }
 0x1b2   :  { %865 = vmatprep.mubr.f32.mxu0 %v4326_v39  ;;  %v4332_v39 = vunpack.i.l.bf16 %v3271_v26 }
 0x1b5   :  { %866 = vmatmul.mubr.f32.gmra.mrb[50].mxu0 %v4327_v28  ;;  %v4333_v28 = vunpack.i.h.bf16 %v3271_v26 }
 0x1b6   :  { %871 = vmatprep.mubr.f32.mxu0 %v4328_v51  ;;  %v4334_v51 = vunpack.i.l.bf16 %v3281_v56 }
 0x1b9   :  { %872 = vmatmul.mubr.f32.gmra.mrb[52].mxu0 %v4329_v14  ;;  %v4335_v14 = vunpack.i.h.bf16 %v3281_v56 }
 0x1ba   :  { %877 = vmatprep.mubr.f32.mxu0 %v4330_v25  ;;  %v4339_v25 = vunpack.i.l.bf16 %v3291_v4 }
 0x1bd   :  { %878 = vmatmul.mubr.f32.gmra.mrb[54].mxu0 %v4331_v33  ;;  %v4343_v33 = vunpack.i.h.bf16 %v3291_v4 }
 0x1be   :  { %883 = vmatprep.mubr.f32.mxu0 %v4332_v39  ;;  %v4347_v39 = vunpack.i.l.bf16 %v3302_v16 }
 0x1c1   :  { %884 = vmatmul.mubr.f32.gmra.mrb[56].mxu0 %v4333_v28  ;;  %v4349_v28 = vunpack.i.h.bf16 %v3302_v16 }
 0x1c2   :  { %889 = vmatprep.mubr.f32.mxu0 %v4334_v51 }
 0x1c5   :  { %890 = vmatmul.mubr.f32.gmra.mrb[58].mxu0 %v4335_v14 }
 0x1c6   :  { %895 = vmatprep.mubr.f32.mxu0 %v4339_v25  ;;  %v2445_v25 = vld [vmem:[#allocation2 + $0x10] sm:$0xff] }
 0x1c7   :  { %v3407_v13 = vmul.f32 0.7, %v2445_v25 }
 0x1c9   :  { %896 = vmatmul.mubr.f32.gmra.mrb[60].mxu0 %v4343_v33 }
 0x1ca   :  { %901 = vmatprep.mubr.f32.mxu0 %v4347_v39 }
 0x1cd   :  { %902 = vmatmul.mubr.f32.gmra.mrb[62].mxu0 %v4349_v28 }
 0x224   :  { %v717_v51 = vpop.f32.mrb[0].mxu0 }
 0x225   :  { %v719_v14 = vpop.f32.mrb[1].mxu0  ;;  %v908_v63 = vmul.f32 0.3, %v717_v51 }
 0x226   :  { %v909_v33 = vmul.f32 0.3, %v719_v14 }
 0x227   :  { %v3414_v5 = vadd.f32 %v3405_v36, %v908_v63 }
 0x228   :  { %v723_v1 = vpop.f32.mrb[2].mxu0  ;;  %v3420_v25 = vadd.f32 %v3409_v31, %v909_v33  ;;  %v3433_v33 = vmul.f32 0.7, %v2450_v50 }
 0x229   :  { %v910_v39 = vmul.f32 0.3, %v723_v1  ;;  %v725_v27 = vpop.f32.mrb[3].mxu0  ;;  %v2448_v1 = vld [vmem:[#allocation2 + $0x20] sm:$0xff] }
 0x22a   :  { %v911_v28 = vmul.f32 0.3, %v725_v27  ;;  %v3427_v53 = vmul.f32 0.7, %v2448_v1  ;;  %4550 = vst [vmem:[#allocation27_spill] sm:$0xff] %v3433_v33 }
 0x22b   :  { %v3417_v10 = vadd.f32 %v3407_v13, %v910_v39  ;;  %v2449_v39 = vld [vmem:[#allocation2 + $0x28] sm:$0xff] }
 0x22c   :  { %v729_v51 = vpop.f32.mrb[4].mxu0  ;;  %v3423_v55 = vadd.f32 %v3411_v22, %v911_v28  ;;  %v3431_v45 = vmul.f32 0.7, %v2449_v39 }
 0x22d   :  { %v731_v14 = vpop.f32.mrb[5].mxu0  ;;  %v2089_v8 = vpack.c.bf16 %v3417_v10, %v3414_v5  ;;  %v912_v63 = vmul.f32 0.3, %v729_v51 }
 0x22e   :  { %v2087_v27 = vpack.c.bf16 %v3423_v55, %v3420_v25  ;;  %v913_v52 = vmul.f32 0.3, %v731_v14 }
 0x22f   :  { %v3438_v6 = vadd.f32 %v3427_v53, %v912_v63 }
 0x230   :  { %v735_v28 = vpop.f32.mrb[6].mxu0  ;;  %2088 = vmatprep.subr.bf16.mxu1 %v2087_v27  ;;  %v3444_v39 = vadd.f32 %v3431_v45, %v913_v52  ;;  %v2454_v52 = vld [vmem:[#allocation2 + $0x50] sm:$0xff] }
 0x231   :  { %v914_v20 = vmul.f32 0.3, %v735_v28  ;;  %v737_v47 = vpop.f32.mrb[7].mxu0  ;;  %2090 = vmatpush1.bf16.msra.mxu1 %v2089_v8  ;;  %v2452_v28 = vld [vmem:[#allocation2 + $0x40] sm:$0xff]  ;;  %v3457_v24 = vmul.f32 0.7, %v2454_v52 }
 0x232   :  { %v915_v1 = vmul.f32 0.3, %v737_v47  ;;  %v3451_v8 = vmul.f32 0.7, %v2452_v28 }
 0x233   :  { %v3441_v51 = vadd.f32 %v3433_v33, %v914_v20  ;;  %v2453_v20 = vld [vmem:[#allocation2 + $0x48] sm:$0xff]  ;;  %4556 = vst [vmem:[#allocation40_spill] sm:$0xff] %v3457_v24 }
 0x234   :  { %v3447_v50 = vadd.f32 %v3435_v60, %v915_v1  ;;  %v741_v14 = vpop.f32.mrb[8].mxu0  ;;  %4554 = vst [vmem:[#allocation34_spill] sm:$0xff] %v3451_v8  ;;  %v3455_v35 = vmul.f32 0.7, %v2453_v20 }
 0x235   :  { %4552 = vst [vmem:[#allocation32_spill] sm:$0xff] %v3441_v51  ;;  %v743_v27 = vpop.f32.mrb[9].mxu0  ;;  %v2093_v29 = vpack.c.bf16 %v3441_v51, %v3438_v6  ;;  %v916_v63 = vmul.f32 0.3, %v741_v14 }
 0x236   :  { %4553 = vst [vmem:[#allocation36_spill] sm:$0xff] %v3447_v50  ;;  %v2091_v47 = vpack.c.bf16 %v3447_v50, %v3444_v39  ;;  %4555 = vst [vmem:[#allocation38_spill] sm:$0xff] %v3455_v35  ;;  %v917_v1 = vmul.f32 0.3, %v743_v27 }
 0x237   :  { %v3462_v60 = vadd.f32 %v3451_v8, %v916_v63  ;;  %v2459_v8 = vld [vmem:[#allocation2 + $0x78] sm:$0xff] }
 0x238   :  { %v747_v54 = vpop.f32.mrb[10].mxu0  ;;  %2092 = vmatprep.subr.bf16.mxu1 %v2091_v47  ;;  %v3468_v20 = vadd.f32 %v3455_v35, %v917_v1  ;;  %v2458_v1 = vld [vmem:[#allocation2 + $0x70] sm:$0xff]  ;;  %v3483_v50 = vmul.f32 0.7, %v2459_v8  ;;  %v2460_v8 = vld [vmem:[#allocation2 + $0x80] sm:$0xff] }
 0x239   :  { %v918_v44 = vmul.f32 0.3, %v747_v54  ;;  %v749_v51 = vpop.f32.mrb[11].mxu0  ;;  %2094 = vmatpush1.bf16.msra.mxu1 %v2093_v29  ;;  %4558 = vst [vmem:[#allocation42_spill] sm:$0xff] %v3462_v60  ;;  %v2456_v54 = vld [vmem:[#allocation2 + $0x60] sm:$0xff] }
 0x23a   :  { %v919_v28 = vmul.f32 0.3, %v749_v51  ;;  %4560 = vst [vmem:[#allocation13_spill] sm:$0xff] %v3468_v20  ;;  %v3475_v29 = vmul.f32 0.7, %v2456_v54  ;;  %4565 = vst [vmem:[#allocation16_spill] sm:$0xff] %v3483_v50 }
 0x23b   :  { %v3465_v14 = vadd.f32 %v3457_v24, %v918_v44  ;;  %v2457_v44 = vld [vmem:[#allocation2 + $0x68] sm:$0xff]  ;;  %v3481_v35 = vmul.f32 0.7, %v2458_v1 }
 0x23c   :  { %v3471_v27 = vadd.f32 %v3459_v18, %v919_v28  ;;  %v753_v47 = vpop.f32.mrb[12].mxu0  ;;  %4562 = vst [vmem:[#allocation12_spill] sm:$0xff] %v3475_v29  ;;  %v3479_v24 = vmul.f32 0.7, %v2457_v44 }
 0x23d   :  { %4559 = vst [vmem:[#allocation47_spill] sm:$0xff] %v3465_v14  ;;  %v755_v52 = vpop.f32.mrb[13].mxu0  ;;  %v2097_v12 = vpack.c.bf16 %v3465_v14, %v3462_v60  ;;  %v920_v63 = vmul.f32 0.3, %v753_v47  ;;  %4564 = vst [vmem:[#allocation15_spill] sm:$0xff] %v3481_v35 }
 0x23e   :  { %4561 = vst [vmem:[#allocation11_spill] sm:$0xff] %v3471_v27  ;;  %v2095_v51 = vpack.c.bf16 %v3471_v27, %v3468_v20  ;;  %4563 = vst [vmem:[#allocation14_spill] sm:$0xff] %v3479_v24  ;;  %v921_v28 = vmul.f32 0.3, %v755_v52 }
 0x23f   :  { %v3486_v33 = vadd.f32 %v3475_v29, %v920_v63  ;;  %v2463_v29 = vld [vmem:[#allocation2 + $0x98] sm:$0xff] }
 0x240   :  { %v759_v18 = vpop.f32.mrb[14].mxu0  ;;  %2096 = vmatprep.subr.bf16.mxu1 %v2095_v51  ;;  %v3492_v44 = vadd.f32 %v3479_v24, %v921_v28  ;;  %v2462_v28 = vld [vmem:[#allocation2 + $0x90] sm:$0xff]  ;;  %v3507_v27 = vmul.f32 0.7, %v2463_v29  ;;  %v2464_v29 = vld [vmem:[#allocation2 + $0xa0] sm:$0xff] }
 0x241   :  { %v922_v14 = vmul.f32 0.3, %v759_v18  ;;  %v761_v60 = vpop.f32.mrb[15].mxu0  ;;  %2098 = vmatpush1.bf16.msra.mxu1 %v2097_v12  ;;  %4566 = vst [vmem:[#allocation17_spill] sm:$0xff] %v3486_v33  ;;  %v3499_v12 = vmul.f32 0.7, %v2460_v8 }
 0x242   :  { %v923_v54 = vmul.f32 0.3, %v761_v60  ;;  %4568 = vst [vmem:[#allocation19_spill] sm:$0xff] %v3492_v44  ;;  %v3505_v24 = vmul.f32 0.7, %v2462_v28  ;;  %4573 = vst [vmem:[#allocation24_spill] sm:$0xff] %v3507_v27 }
 0x243   :  { %v3489_v47 = vadd.f32 %v3481_v35, %v922_v14  ;;  %4570 = vst [vmem:[#allocation21_spill] sm:$0xff] %v3499_v12  ;;  %v2461_v14 = vld [vmem:[#allocation2 + $0x88] sm:$0xff] }
 0x244   :  { %v3495_v52 = vadd.f32 %v3483_v50, %v923_v54  ;;  %v765_v51 = vpop.f32.mrb[16].mxu0  ;;  %v3503_v35 = vmul.f32 0.7, %v2461_v14  ;;  %4572 = vst [vmem:[#allocation23_spill] sm:$0xff] %v3505_v24 }
 0x245   :  { %4567 = vst [vmem:[#allocation18_spill] sm:$0xff] %v3489_v47  ;;  %v767_v1 = vpop.f32.mrb[17].mxu0  ;;  %v2101_v18 = vpack.c.bf16 %v3489_v47, %v3486_v33  ;;  %v924_v63 = vmul.f32 0.3, %v765_v51 }
 0x246   :  { %4569 = vst [vmem:[#allocation20_spill] sm:$0xff] %v3495_v52  ;;  %v2099_v60 = vpack.c.bf16 %v3495_v52, %v3492_v44  ;;  %4571 = vst [vmem:[#allocation22_spill] sm:$0xff] %v3503_v35  ;;  %v925_v54 = vmul.f32 0.3, %v767_v1 }
 0x247   :  { %v3510_v20 = vadd.f32 %v3499_v12, %v924_v63  ;;  %v2467_v12 = vld [vmem:[#allocation2 + $0xb8] sm:$0xff] }
 0x248   :  { %v771_v50 = vpop.f32.mrb[18].mxu0  ;;  %2100 = vmatprep.subr.bf16.mxu1 %v2099_v60  ;;  %v3516_v14 = vadd.f32 %v3503_v35, %v925_v54  ;;  %v2466_v54 = vld [vmem:[#allocation2 + $0xb0] sm:$0xff]  ;;  %v3531_v52 = vmul.f32 0.7, %v2467_v12  ;;  %v2468_v12 = vld [vmem:[#allocation2 + $0xc0] sm:$0xff] }
 0x249   :  { %v926_v47 = vmul.f32 0.3, %v771_v50  ;;  %v773_v33 = vpop.f32.mrb[19].mxu0  ;;  %2102 = vmatpush1.bf16.msra.mxu1 %v2101_v18  ;;  %4574 = vst [vmem:[#allocation25_spill] sm:$0xff] %v3510_v20  ;;  %v3523_v18 = vmul.f32 0.7, %v2464_v29 }
 0x24a   :  { %v927_v8 = vmul.f32 0.3, %v773_v33  ;;  %4576 = vst [vmem:[#allocation28_spill] sm:$0xff] %v3516_v14  ;;  %v3529_v35 = vmul.f32 0.7, %v2466_v54  ;;  %4581 = vst [vmem:[#allocation37_spill] sm:$0xff] %v3531_v52 }
 0x24b   :  { %v3513_v51 = vadd.f32 %v3505_v24, %v926_v47  ;;  %4578 = vst [vmem:[#allocation31_spill] sm:$0xff] %v3523_v18  ;;  %v2465_v47 = vld [vmem:[#allocation2 + $0xa8] sm:$0xff] }
 0x24c   :  { %v3519_v1 = vadd.f32 %v3507_v27, %v927_v8  ;;  %v777_v60 = vpop.f32.mrb[20].mxu0  ;;  %v3527_v24 = vmul.f32 0.7, %v2465_v47  ;;  %4580 = vst [vmem:[#allocation35_spill] sm:$0xff] %v3529_v35 }
 0x24d   :  { %4575 = vst [vmem:[#allocation26_spill] sm:$0xff] %v3513_v51  ;;  %v779_v28 = vpop.f32.mrb[21].mxu0  ;;  %v2105_v50 = vpack.c.bf16 %v3513_v51, %v3510_v20  ;;  %v928_v63 = vmul.f32 0.3, %v777_v60 }
 0x24e   :  { %4577 = vst [vmem:[#allocation29_spill] sm:$0xff] %v3519_v1  ;;  %v2103_v33 = vpack.c.bf16 %v3519_v1, %v3516_v14  ;;  %4579 = vst [vmem:[#allocation33_spill] sm:$0xff] %v3527_v24  ;;  %v929_v8 = vmul.f32 0.3, %v779_v28 }
 0x24f   :  { %v3534_v44 = vadd.f32 %v3523_v18, %v928_v63  ;;  %v2471_v18 = vld [vmem:[#allocation2 + $0xd8] sm:$0xff] }
 0x250   :  { %v783_v27 = vpop.f32.mrb[22].mxu0  ;;  %2104 = vmatprep.subr.bf16.mxu1 %v2103_v33  ;;  %v3540_v47 = vadd.f32 %v3527_v24, %v929_v8  ;;  %v2470_v8 = vld [vmem:[#allocation2 + $0xd0] sm:$0xff]  ;;  %v3555_v1 = vmul.f32 0.7, %v2471_v18  ;;  %v2472_v18 = vld [vmem:[#allocation2 + $0xe0] sm:$0xff] }
 0x251   :  { %v930_v51 = vmul.f32 0.3, %v783_v27  ;;  %v785_v20 = vpop.f32.mrb[23].mxu0  ;;  %2106 = vmatpush1.bf16.msra.mxu1 %v2105_v50  ;;  %4582 = vst [vmem:[#allocation39_spill] sm:$0xff] %v3534_v44  ;;  %v3547_v50 = vmul.f32 0.7, %v2468_v12 }
 0x252   :  { %v931_v29 = vmul.f32 0.3, %v785_v20  ;;  %4584 = vst [vmem:[#allocation43_spill] sm:$0xff] %v3540_v47  ;;  %v3553_v24 = vmul.f32 0.7, %v2470_v8  ;;  %4589 = vst [vmem:[#allocation50_spill] sm:$0xff] %v3555_v1 }
 0x253   :  { %v3537_v60 = vadd.f32 %v3529_v35, %v930_v51  ;;  %4586 = vst [vmem:[#allocation46_spill] sm:$0xff] %v3547_v50  ;;  %v2469_v51 = vld [vmem:[#allocation2 + $0xc8] sm:$0xff] }
 0x254   :  { %v3543_v28 = vadd.f32 %v3531_v52, %v931_v29  ;;  %v789_v33 = vpop.f32.mrb[24].mxu0  ;;  %v3551_v35 = vmul.f32 0.7, %v2469_v51  ;;  %4588 = vst [vmem:[#allocation49_spill] sm:$0xff] %v3553_v24 }
 0x255   :  { %4583 = vst [vmem:[#allocation41_spill] sm:$0xff] %v3537_v60  ;;  %v791_v54 = vpop.f32.mrb[25].mxu0  ;;  %v2109_v27 = vpack.c.bf16 %v3537_v60, %v3534_v44  ;;  %v932_v63 = vmul.f32 0.3, %v789_v33 }
 0x256   :  { %4585 = vst [vmem:[#allocation45_spill] sm:$0xff] %v3543_v28  ;;  %v2107_v20 = vpack.c.bf16 %v3543_v28, %v3540_v47  ;;  %4587 = vst [vmem:[#allocation48_spill] sm:$0xff] %v3551_v35  ;;  %v933_v29 = vmul.f32 0.3, %v791_v54 }
 0x257   :  { %v3558_v14 = vadd.f32 %v3547_v50, %v932_v63  ;;  %v2475_v50 = vld [vmem:[#allocation2 + $0xf8] sm:$0xff] }
 0x258   :  { %v795_v52 = vpop.f32.mrb[26].mxu0  ;;  %2108 = vmatprep.subr.bf16.mxu1 %v2107_v20  ;;  %v3564_v51 = vadd.f32 %v3551_v35, %v933_v29  ;;  %v2474_v29 = vld [vmem:[#allocation2 + $0xf0] sm:$0xff]  ;;  %v3579_v28 = vmul.f32 0.7, %v2475_v50  ;;  %v2476_v50 = vld [vmem:[#allocation2 + $0x100] sm:$0xff] }
 0x259   :  { %v934_v60 = vmul.f32 0.3, %v795_v52  ;;  %v797_v44 = vpop.f32.mrb[27].mxu0  ;;  %2110 = vmatpush1.bf16.msra.mxu1 %v2109_v27  ;;  %4590 = vst [vmem:[#allocation51_spill] sm:$0xff] %v3558_v14  ;;  %v3571_v27 = vmul.f32 0.7, %v2472_v18 }
 0x25a   :  { %v935_v12 = vmul.f32 0.3, %v797_v44  ;;  %4592 = vst [vmem:[#allocation53_spill] sm:$0xff] %v3564_v51  ;;  %v3577_v35 = vmul.f32 0.7, %v2474_v29  ;;  %4597 = vst [vmem:[#allocation58_spill] sm:$0xff] %v3579_v28 }
 0x25b   :  { %v3561_v33 = vadd.f32 %v3553_v24, %v934_v60  ;;  %4594 = vst [vmem:[#allocation55_spill] sm:$0xff] %v3571_v27  ;;  %v2473_v60 = vld [vmem:[#allocation2 + $0xe8] sm:$0xff] }
 0x25c   :  { %v3567_v54 = vadd.f32 %v3555_v1, %v935_v12  ;;  %v801_v20 = vpop.f32.mrb[28].mxu0  ;;  %v3575_v24 = vmul.f32 0.7, %v2473_v60  ;;  %4596 = vst [vmem:[#allocation57_spill] sm:$0xff] %v3577_v35 }
 0x25d   :  { %4591 = vst [vmem:[#allocation52_spill] sm:$0xff] %v3561_v33  ;;  %v803_v8 = vpop.f32.mrb[29].mxu0  ;;  %v2113_v52 = vpack.c.bf16 %v3561_v33, %v3558_v14  ;;  %v936_v63 = vmul.f32 0.3, %v801_v20 }
 0x25e   :  { %4593 = vst [vmem:[#allocation54_spill] sm:$0xff] %v3567_v54  ;;  %v2111_v44 = vpack.c.bf16 %v3567_v54, %v3564_v51  ;;  %4595 = vst [vmem:[#allocation56_spill] sm:$0xff] %v3575_v24  ;;  %v937_v12 = vmul.f32 0.3, %v803_v8 }
 0x25f   :  { %v3582_v47 = vadd.f32 %v3571_v27, %v936_v63  ;;  %v2479_v27 = vld [vmem:[#allocation2 + $0x118] sm:$0xff] }
 0x260   :  { %v807_v1 = vpop.f32.mrb[30].mxu0  ;;  %2112 = vmatprep.subr.bf16.mxu1 %v2111_v44  ;;  %v3588_v60 = vadd.f32 %v3575_v24, %v937_v12  ;;  %v2478_v12 = vld [vmem:[#allocation2 + $0x110] sm:$0xff]  ;;  %v3603_v54 = vmul.f32 0.7, %v2479_v27  ;;  %v2480_v27 = vld [vmem:[#allocation2 + $0x120] sm:$0xff] }
 0x261   :  { %v938_v33 = vmul.f32 0.3, %v807_v1  ;;  %v809_v14 = vpop.f32.mrb[31].mxu0  ;;  %2114 = vmatpush1.bf16.msra.mxu1 %v2113_v52  ;;  %4598 = vst [vmem:[#allocation59_spill] sm:$0xff] %v3582_v47  ;;  %v3595_v52 = vmul.f32 0.7, %v2476_v50 }
 0x262   :  { %v939_v18 = vmul.f32 0.3, %v809_v14  ;;  %4600 = vst [vmem:[#allocation61_spill] sm:$0xff] %v3588_v60  ;;  %v3601_v24 = vmul.f32 0.7, %v2478_v12  ;;  %4605 = vst [vmem:[#allocation66_spill] sm:$0xff] %v3603_v54 }
 0x263   :  { %v3585_v20 = vadd.f32 %v3577_v35, %v938_v33  ;;  %4602 = vst [vmem:[#allocation63_spill] sm:$0xff] %v3595_v52  ;;  %v2477_v33 = vld [vmem:[#allocation2 + $0x108] sm:$0xff] }
 0x264   :  { %v3591_v8 = vadd.f32 %v3579_v28, %v939_v18  ;;  %v813_v44 = vpop.f32.mrb[32].mxu0  ;;  %v3599_v35 = vmul.f32 0.7, %v2477_v33  ;;  %4604 = vst [vmem:[#allocation65_spill] sm:$0xff] %v3601_v24 }
 0x265   :  { %4599 = vst [vmem:[#allocation60_spill] sm:$0xff] %v3585_v20  ;;  %v815_v29 = vpop.f32.mrb[33].mxu0  ;;  %v2117_v1 = vpack.c.bf16 %v3585_v20, %v3582_v47  ;;  %v940_v63 = vmul.f32 0.3, %v813_v44 }
 0x266   :  { %4601 = vst [vmem:[#allocation62_spill] sm:$0xff] %v3591_v8  ;;  %v2115_v14 = vpack.c.bf16 %v3591_v8, %v3588_v60  ;;  %4603 = vst [vmem:[#allocation64_spill] sm:$0xff] %v3599_v35  ;;  %v941_v18 = vmul.f32 0.3, %v815_v29 }
 0x267   :  { %v3606_v51 = vadd.f32 %v3595_v52, %v940_v63  ;;  %v2483_v52 = vld [vmem:[#allocation2 + $0x138] sm:$0xff] }
 0x268   :  { %v819_v28 = vpop.f32.mrb[34].mxu0  ;;  %2116 = vmatprep.subr.bf16.mxu1 %v2115_v14  ;;  %v3612_v33 = vadd.f32 %v3599_v35, %v941_v18  ;;  %v2482_v18 = vld [vmem:[#allocation2 + $0x130] sm:$0xff]  ;;  %v3627_v8 = vmul.f32 0.7, %v2483_v52  ;;  %v2484_v52 = vld [vmem:[#allocation2 + $0x140] sm:$0xff] }
 0x269   :  { %v942_v20 = vmul.f32 0.3, %v819_v28  ;;  %v821_v47 = vpop.f32.mrb[35].mxu0  ;;  %2118 = vmatpush1.bf16.msra.mxu1 %v2117_v1  ;;  %4606 = vst [vmem:[#allocation67_spill] sm:$0xff] %v3606_v51  ;;  %v3619_v1 = vmul.f32 0.7, %v2480_v27 }
 0x26a   :  { %v943_v50 = vmul.f32 0.3, %v821_v47  ;;  %4608 = vst [vmem:[#allocation69_spill] sm:$0xff] %v3612_v33  ;;  %v3625_v35 = vmul.f32 0.7, %v2482_v18  ;;  %4613 = vst [vmem:[#allocation74_spill] sm:$0xff] %v3627_v8 }
 0x26b   :  { %v3609_v44 = vadd.f32 %v3601_v24, %v942_v20  ;;  %4610 = vst [vmem:[#allocation71_spill] sm:$0xff] %v3619_v1  ;;  %v2481_v20 = vld [vmem:[#allocation2 + $0x128] sm:$0xff] }
 0x26c   :  { %v3615_v29 = vadd.f32 %v3603_v54, %v943_v50  ;;  %v825_v14 = vpop.f32.mrb[36].mxu0  ;;  %v3623_v24 = vmul.f32 0.7, %v2481_v20  ;;  %4612 = vst [vmem:[#allocation73_spill] sm:$0xff] %v3625_v35 }
 0x26d   :  { %4607 = vst [vmem:[#allocation68_spill] sm:$0xff] %v3609_v44  ;;  %v827_v12 = vpop.f32.mrb[37].mxu0  ;;  %v2121_v28 = vpack.c.bf16 %v3609_v44, %v3606_v51  ;;  %v944_v63 = vmul.f32 0.3, %v825_v14 }
 0x26e   :  { %4609 = vst [vmem:[#allocation70_spill] sm:$0xff] %v3615_v29  ;;  %v2119_v47 = vpack.c.bf16 %v3615_v29, %v3612_v33  ;;  %4611 = vst [vmem:[#allocation72_spill] sm:$0xff] %v3623_v24  ;;  %v945_v50 = vmul.f32 0.3, %v827_v12 }
 0x26f   :  { %v3630_v60 = vadd.f32 %v3619_v1, %v944_v63  ;;  %v2487_v1 = vld [vmem:[#allocation2 + $0x158] sm:$0xff] }
 0x270   :  { %v831_v54 = vpop.f32.mrb[38].mxu0  ;;  %2120 = vmatprep.subr.bf16.mxu1 %v2119_v47  ;;  %v3636_v20 = vadd.f32 %v3623_v24, %v945_v50  ;;  %v2486_v50 = vld [vmem:[#allocation2 + $0x150] sm:$0xff]  ;;  %v3651_v29 = vmul.f32 0.7, %v2487_v1  ;;  %v2488_v1 = vld [vmem:[#allocation2 + $0x160] sm:$0xff] }
 0x271   :  { %v946_v44 = vmul.f32 0.3, %v831_v54  ;;  %v833_v51 = vpop.f32.mrb[39].mxu0  ;;  %2122 = vmatpush1.bf16.msra.mxu1 %v2121_v28  ;;  %4614 = vst [vmem:[#allocation75_spill] sm:$0xff] %v3630_v60  ;;  %v3643_v28 = vmul.f32 0.7, %v2484_v52 }
 0x272   :  { %v947_v27 = vmul.f32 0.3, %v833_v51  ;;  %4616 = vst [vmem:[#allocation77_spill] sm:$0xff] %v3636_v20  ;;  %v3649_v24 = vmul.f32 0.7, %v2486_v50  ;;  %4621 = vst [vmem:[#allocation82_spill] sm:$0xff] %v3651_v29 }
 0x273   :  { %v3633_v14 = vadd.f32 %v3625_v35, %v946_v44  ;;  %4618 = vst [vmem:[#allocation79_spill] sm:$0xff] %v3643_v28  ;;  %v2485_v44 = vld [vmem:[#allocation2 + $0x148] sm:$0xff] }
 0x274   :  { %v3639_v12 = vadd.f32 %v3627_v8, %v947_v27  ;;  %v837_v47 = vpop.f32.mrb[40].mxu0  ;;  %v3647_v35 = vmul.f32 0.7, %v2485_v44  ;;  %4620 = vst [vmem:[#allocation81_spill] sm:$0xff] %v3649_v24 }
 0x275   :  { %4615 = vst [vmem:[#allocation76_spill] sm:$0xff] %v3633_v14  ;;  %v839_v18 = vpop.f32.mrb[41].mxu0  ;;  %v2125_v54 = vpack.c.bf16 %v3633_v14, %v3630_v60  ;;  %v948_v63 = vmul.f32 0.3, %v837_v47 }
 0x276   :  { %4617 = vst [vmem:[#allocation78_spill] sm:$0xff] %v3639_v12  ;;  %v2123_v51 = vpack.c.bf16 %v3639_v12, %v3636_v20  ;;  %4619 = vst [vmem:[#allocation80_spill] sm:$0xff] %v3647_v35  ;;  %v949_v27 = vmul.f32 0.3, %v839_v18 }
 0x277   :  { %v3654_v33 = vadd.f32 %v3643_v28, %v948_v63  ;;  %v2491_v28 = vld [vmem:[#allocation2 + $0x178] sm:$0xff] }
 0x278   :  { %v843_v8 = vpop.f32.mrb[42].mxu0  ;;  %2124 = vmatprep.subr.bf16.mxu1 %v2123_v51  ;;  %v3660_v44 = vadd.f32 %v3647_v35, %v949_v27  ;;  %v2490_v27 = vld [vmem:[#allocation2 + $0x170] sm:$0xff]  ;;  %v3675_v12 = vmul.f32 0.7, %v2491_v28  ;;  %v2492_v28 = vld [vmem:[#allocation2 + $0x180] sm:$0xff] }
 0x279   :  { %v950_v14 = vmul.f32 0.3, %v843_v8  ;;  %v845_v60 = vpop.f32.mrb[43].mxu0  ;;  %2126 = vmatpush1.bf16.msra.mxu1 %v2125_v54  ;;  %4622 = vst [vmem:[#allocation83_spill] sm:$0xff] %v3654_v33  ;;  %v3667_v54 = vmul.f32 0.7, %v2488_v1 }
 0x27a   :  { %v951_v52 = vmul.f32 0.3, %v845_v60  ;;  %4624 = vst [vmem:[#allocation85_spill] sm:$0xff] %v3660_v44  ;;  %v3673_v35 = vmul.f32 0.7, %v2490_v27  ;;  %4629 = vst [vmem:[#allocation90_spill] sm:$0xff] %v3675_v12 }
 0x27b   :  { %v3657_v47 = vadd.f32 %v3649_v24, %v950_v14  ;;  %4626 = vst [vmem:[#allocation87_spill] sm:$0xff] %v3667_v54  ;;  %v2489_v14 = vld [vmem:[#allocation2 + $0x168] sm:$0xff] }
 0x27c   :  { %v3663_v18 = vadd.f32 %v3651_v29, %v951_v52  ;;  %v849_v51 = vpop.f32.mrb[44].mxu0  ;;  %v3671_v24 = vmul.f32 0.7, %v2489_v14  ;;  %4628 = vst [vmem:[#allocation89_spill] sm:$0xff] %v3673_v35 }
 0x27d   :  { %4623 = vst [vmem:[#allocation84_spill] sm:$0xff] %v3657_v47  ;;  %v851_v50 = vpop.f32.mrb[45].mxu0  ;;  %v2129_v8 = vpack.c.bf16 %v3657_v47, %v3654_v33  ;;  %v952_v63 = vmul.f32 0.3, %v849_v51 }
 0x27e   :  { %4625 = vst [vmem:[#allocation86_spill] sm:$0xff] %v3663_v18  ;;  %v2127_v60 = vpack.c.bf16 %v3663_v18, %v3660_v44  ;;  %4627 = vst [vmem:[#allocation88_spill] sm:$0xff] %v3671_v24  ;;  %v953_v52 = vmul.f32 0.3, %v851_v50 }
 0x27f   :  { %v3678_v20 = vadd.f32 %v3667_v54, %v952_v63  ;;  %v2495_v54 = vld [vmem:[#allocation2 + $0x198] sm:$0xff] }
 0x280   :  { %v855_v29 = vpop.f32.mrb[46].mxu0  ;;  %2128 = vmatprep.subr.bf16.mxu1 %v2127_v60  ;;  %v3684_v14 = vadd.f32 %v3671_v24, %v953_v52  ;;  %v2494_v52 = vld [vmem:[#allocation2 + $0x190] sm:$0xff]  ;;  %v3699_v18 = vmul.f32 0.7, %v2495_v54  ;;  %v2496_v54 = vld [vmem:[#allocation2 + $0x1a0] sm:$0xff] }
 0x281   :  { %v954_v47 = vmul.f32 0.3, %v855_v29  ;;  %v857_v33 = vpop.f32.mrb[47].mxu0  ;;  %2130 = vmatpush1.bf16.msra.mxu1 %v2129_v8  ;;  %4630 = vst [vmem:[#allocation91_spill] sm:$0xff] %v3678_v20  ;;  %v3691_v8 = vmul.f32 0.7, %v2492_v28 }
 0x282   :  { %v955_v1 = vmul.f32 0.3, %v857_v33  ;;  %4632 = vst [vmem:[#allocation93_spill] sm:$0xff] %v3684_v14  ;;  %v3697_v24 = vmul.f32 0.7, %v2494_v52  ;;  %4637 = vst [vmem:[#allocation98_spill] sm:$0xff] %v3699_v18 }
 0x283   :  { %v3681_v51 = vadd.f32 %v3673_v35, %v954_v47  ;;  %4634 = vst [vmem:[#allocation95_spill] sm:$0xff] %v3691_v8  ;;  %v2493_v47 = vld [vmem:[#allocation2 + $0x188] sm:$0xff] }
 0x284   :  { %v3687_v50 = vadd.f32 %v3675_v12, %v955_v1  ;;  %v861_v60 = vpop.f32.mrb[48].mxu0  ;;  %v3695_v35 = vmul.f32 0.7, %v2493_v47  ;;  %4636 = vst [vmem:[#allocation97_spill] sm:$0xff] %v3697_v24 }
 0x285   :  { %4631 = vst [vmem:[#allocation92_spill] sm:$0xff] %v3681_v51  ;;  %v863_v27 = vpop.f32.mrb[49].mxu0  ;;  %v2133_v29 = vpack.c.bf16 %v3681_v51, %v3678_v20  ;;  %v956_v63 = vmul.f32 0.3, %v861_v60 }
 0x286   :  { %4633 = vst [vmem:[#allocation94_spill] sm:$0xff] %v3687_v50  ;;  %v2131_v33 = vpack.c.bf16 %v3687_v50, %v3684_v14  ;;  %4635 = vst [vmem:[#allocation96_spill] sm:$0xff] %v3695_v35  ;;  %v957_v1 = vmul.f32 0.3, %v863_v27 }
 0x287   :  { %v3702_v44 = vadd.f32 %v3691_v8, %v956_v63  ;;  %v2499_v8 = vld [vmem:[#allocation2 + $0x1b8] sm:$0xff] }
 0x288   :  { %v867_v12 = vpop.f32.mrb[50].mxu0  ;;  %2132 = vmatprep.subr.bf16.mxu1 %v2131_v33  ;;  %v3708_v47 = vadd.f32 %v3695_v35, %v957_v1  ;;  %v2498_v1 = vld [vmem:[#allocation2 + $0x1b0] sm:$0xff]  ;;  %v3723_v50 = vmul.f32 0.7, %v2499_v8  ;;  %v2500_v8 = vld [vmem:[#allocation2 + $0x1c0] sm:$0xff] }
 0x289   :  { %v958_v51 = vmul.f32 0.3, %v867_v12  ;;  %v869_v20 = vpop.f32.mrb[51].mxu0  ;;  %2134 = vmatpush1.bf16.msra.mxu1 %v2133_v29  ;;  %4638 = vst [vmem:[#allocation99_spill] sm:$0xff] %v3702_v44  ;;  %v3715_v29 = vmul.f32 0.7, %v2496_v54 }
 0x28a   :  { %v959_v28 = vmul.f32 0.3, %v869_v20  ;;  %4640 = vst [vmem:[#allocation101_spill] sm:$0xff] %v3708_v47  ;;  %v3721_v35 = vmul.f32 0.7, %v2498_v1  ;;  %4645 = vst [vmem:[#allocation106_spill] sm:$0xff] %v3723_v50 }
 0x28b   :  { %v3705_v60 = vadd.f32 %v3697_v24, %v958_v51  ;;  %4642 = vst [vmem:[#allocation103_spill] sm:$0xff] %v3715_v29  ;;  %v2497_v51 = vld [vmem:[#allocation2 + $0x1a8] sm:$0xff] }
 0x28c   :  { %v3711_v27 = vadd.f32 %v3699_v18, %v959_v28  ;;  %v873_v33 = vpop.f32.mrb[52].mxu0  ;;  %v3719_v24 = vmul.f32 0.7, %v2497_v51  ;;  %4644 = vst [vmem:[#allocation105_spill] sm:$0xff] %v3721_v35 }
 0x28d   :  { %4639 = vst [vmem:[#allocation100_spill] sm:$0xff] %v3705_v60  ;;  %v875_v52 = vpop.f32.mrb[53].mxu0  ;;  %v2137_v12 = vpack.c.bf16 %v3705_v60, %v3702_v44  ;;  %v960_v63 = vmul.f32 0.3, %v873_v33 }
 0x28e   :  { %4641 = vst [vmem:[#allocation102_spill] sm:$0xff] %v3711_v27  ;;  %v2135_v20 = vpack.c.bf16 %v3711_v27, %v3708_v47  ;;  %4643 = vst [vmem:[#allocation104_spill] sm:$0xff] %v3719_v24  ;;  %v961_v28 = vmul.f32 0.3, %v875_v52 }
 0x28f   :  { %v3726_v14 = vadd.f32 %v3715_v29, %v960_v63  ;;  %v2503_v29 = vld [vmem:[#allocation2 + $0x1d8] sm:$0xff] }
 0x290   :  { %v879_v18 = vpop.f32.mrb[54].mxu0  ;;  %2136 = vmatprep.subr.bf16.mxu1 %v2135_v20  ;;  %v3732_v51 = vadd.f32 %v3719_v24, %v961_v28  ;;  %v2502_v28 = vld [vmem:[#allocation2 + $0x1d0] sm:$0xff]  ;;  %v3747_v27 = vmul.f32 0.7, %v2503_v29  ;;  %v2504_v29 = vld [vmem:[#allocation2 + $0x1e0] sm:$0xff] }
 0x291   :  { %v962_v60 = vmul.f32 0.3, %v879_v18  ;;  %v881_v44 = vpop.f32.mrb[55].mxu0  ;;  %2138 = vmatpush1.bf16.msra.mxu1 %v2137_v12  ;;  %4646 = vst [vmem:[#allocation107_spill] sm:$0xff] %v3726_v14  ;;  %v3739_v12 = vmul.f32 0.7, %v2500_v8 }
 0x292   :  { %v963_v54 = vmul.f32 0.3, %v881_v44  ;;  %4648 = vst [vmem:[#allocation109_spill] sm:$0xff] %v3732_v51  ;;  %v3745_v24 = vmul.f32 0.7, %v2502_v28  ;;  %4653 = vst [vmem:[#allocation114_spill] sm:$0xff] %v3747_v27 }
 0x293   :  { %v3729_v33 = vadd.f32 %v3721_v35, %v962_v60  ;;  %4650 = vst [vmem:[#allocation111_spill] sm:$0xff] %v3739_v12  ;;  %v2501_v60 = vld [vmem:[#allocation2 + $0x1c8] sm:$0xff] }
 0x294   :  { %v3735_v52 = vadd.f32 %v3723_v50, %v963_v54  ;;  %v885_v20 = vpop.f32.mrb[56].mxu0  ;;  %v3743_v35 = vmul.f32 0.7, %v2501_v60  ;;  %4652 = vst [vmem:[#allocation113_spill] sm:$0xff] %v3745_v24 }
 0x295   :  { %4647 = vst [vmem:[#allocation108_spill] sm:$0xff] %v3729_v33  ;;  %v887_v1 = vpop.f32.mrb[57].mxu0  ;;  %v2141_v18 = vpack.c.bf16 %v3729_v33, %v3726_v14  ;;  %v964_v63 = vmul.f32 0.3, %v885_v20 }
 0x296   :  { %4649 = vst [vmem:[#allocation110_spill] sm:$0xff] %v3735_v52  ;;  %v2139_v44 = vpack.c.bf16 %v3735_v52, %v3732_v51  ;;  %4651 = vst [vmem:[#allocation112_spill] sm:$0xff] %v3743_v35  ;;  %v965_v54 = vmul.f32 0.3, %v887_v1 }
 0x297   :  { %v3750_v47 = vadd.f32 %v3739_v12, %v964_v63  ;;  %v2507_v12 = vld [vmem:[#allocation2 + $0x1f8] sm:$0xff] }
 0x298   :  { %v891_v50 = vpop.f32.mrb[58].mxu0  ;;  %2140 = vmatprep.subr.bf16.mxu1 %v2139_v44  ;;  %v3756_v60 = vadd.f32 %v3743_v35, %v965_v54  ;;  %v2506_v54 = vld [vmem:[#allocation2 + $0x1f0] sm:$0xff]  ;;  %v3771_v52 = vmul.f32 0.7, %v2507_v12 }
 0x299   :  { %v966_v33 = vmul.f32 0.3, %v891_v50  ;;  %v893_v14 = vpop.f32.mrb[59].mxu0  ;;  %2142 = vmatpush1.bf16.msra.mxu1 %v2141_v18  ;;  %4654 = vst [vmem:[#allocation115_spill] sm:$0xff] %v3750_v47  ;;  %v3763_v18 = vmul.f32 0.7, %v2504_v29 }
 0x29a   :  { %v967_v8 = vmul.f32 0.3, %v893_v14  ;;  %v3769_v35 = vmul.f32 0.7, %v2506_v54  ;;  %v4661_v54 = vunpack.i.l.bf16 %v3177_v43 }
 0x29b   :  { %v3753_v20 = vadd.f32 %v3745_v24, %v966_v33  ;;  %v2505_v33 = vld [vmem:[#allocation2 + $0x1e8] sm:$0xff] }
 0x29c   :  { %v3759_v1 = vadd.f32 %v3747_v27, %v967_v8  ;;  %v897_v44 = vpop.f32.mrb[60].mxu0  ;;  %v3767_v24 = vmul.f32 0.7, %v2505_v33 }
 0x29d   :  { %4655 = vst [vmem:[#allocation116_spill] sm:$0xff] %v3753_v20  ;;  %v899_v28 = vpop.f32.mrb[61].mxu0  ;;  %v2145_v50 = vpack.c.bf16 %v3753_v20, %v3750_v47  ;;  %v968_v63 = vmul.f32 0.3, %v897_v44 }
 0x29e   :  { %v2143_v14 = vpack.c.bf16 %v3759_v1, %v3756_v60  ;;  %v969_v8 = vmul.f32 0.3, %v899_v28 }
 0x29f   :  { %v3774_v51 = vadd.f32 %v3763_v18, %v968_v63  ;;  %v4660_v63 = vunpack.i.h.bf16 %v3167_v38 }
 0x2a0   :  { %v903_v27 = vpop.f32.mrb[62].mxu0  ;;  %2144 = vmatprep.subr.bf16.mxu1 %v2143_v14  ;;  %v3780_v33 = vadd.f32 %v3767_v24, %v969_v8  ;;  %v4659_v14 = vunpack.i.l.bf16 %v3167_v38  ;;  %v4662_v8 = vunpack.i.h.bf16 %v3177_v43  ;;  %v4667_v38 = vunpack.i.l.bf16 %v3207_v62 }
 0x2a1   :  { %v970_v20 = vmul.f32 0.3, %v903_v27  ;;  %v905_v47 = vpop.f32.mrb[63].mxu0  ;;  %2146 = vmatpush1.bf16.msra.mxu1 %v2145_v50  ;;  %v4658_v50 = vunpack.i.h.bf16 %v3157_v0  ;;  %v4669_v43 = vunpack.i.l.bf16 %v3217_v48 }
 0x2a2   :  { %v971_v29 = vmul.f32 0.3, %v905_v47  ;;  %v4656_v47 = vunpack.i.h.bf16 %v3151_v7  ;;  %v4663_v7 = vunpack.i.l.bf16 %v3187_v42 }
 0x2a3   :  { %v3777_v44 = vadd.f32 %v3769_v35, %v970_v20  ;;  %v4657_v20 = vunpack.i.l.bf16 %v3157_v0  ;;  %v4665_v0 = vunpack.i.l.bf16 %v3197_v21 }
 0x2a4   :  { %v3783_v28 = vadd.f32 %v3771_v52, %v971_v29  ;;  %v4664_v29 = vunpack.i.h.bf16 %v3187_v42  ;;  %v4671_v42 = vunpack.i.l.bf16 %v3227_v23 }
 0x2a5   :  { %v2149_v12 = vpack.c.bf16 %v3777_v44, %v3774_v51 }
 0x2a6   :  { %v2147_v27 = vpack.c.bf16 %v3783_v28, %v3780_v33 }
 0x2a8   :  { %2148 = vmatprep.subr.bf16.mxu1 %v2147_v27  ;;  %v4668_v27 = vunpack.i.h.bf16 %v3207_v62  ;;  %v4675_v62 = vunpack.i.l.bf16 %v3247_v17 }
 0x2a9   :  { %2150 = vmatpush1.bf16.msra.mxu1 %v2149_v12  ;;  %v4666_v12 = vunpack.i.h.bf16 %v3197_v21  ;;  %v4673_v21 = vunpack.i.l.bf16 %v3237_v3 }
 0x2ac   :  { %1165 = vmatmul.mubr.f32.vlgmr.msra.gmra.mrb[0].mxu1 %v4656_v47  ;;  %v4670_v47 = vunpack.i.h.bf16 %v3217_v48  ;;  %v4677_v48 = vunpack.i.l.bf16 %v3257_v34 }
 0x2ad   :  { %1170 = vmatprep.mubr.f32.mxu1 %v4657_v20  ;;  %v4672_v20 = vunpack.i.h.bf16 %v3227_v23  ;;  %v4679_v23 = vunpack.i.l.bf16 %v3267_v58 }
 0x2b0   :  { %1171 = vmatmul.mubr.f32.gmra.mrb[2].mxu1 %v4658_v50  ;;  %v4674_v50 = vunpack.i.h.bf16 %v3237_v3  ;;  %v4681_v3 = vunpack.i.l.bf16 %v3277_v46 }
 0x2b1   :  { %1176 = vmatprep.mubr.f32.mxu1 %v4659_v14  ;;  %v4676_v14 = vunpack.i.h.bf16 %v3247_v17  ;;  %v4683_v17 = vunpack.i.l.bf16 %v3287_v40 }
 0x2b4   :  { %1177 = vmatmul.mubr.f32.gmra.mrb[4].mxu1 %v4660_v63  ;;  %v4678_v63 = vunpack.i.h.bf16 %v3257_v34  ;;  %v4685_v34 = vunpack.i.l.bf16 %v3297_v57 }
 0x2b5   :  { %1182 = vmatprep.mubr.f32.mxu1 %v4661_v54  ;;  %v4680_v54 = vunpack.i.h.bf16 %v3267_v58  ;;  %v4687_v58 = vunpack.i.l.bf16 %v3153_v59 }
 0x2b8   :  { %1183 = vmatmul.mubr.f32.gmra.mrb[6].mxu1 %v4662_v8  ;;  %v4682_v8 = vunpack.i.h.bf16 %v3277_v46  ;;  %v4689_v46 = vunpack.i.l.bf16 %v3161_v49 }
 0x2b9   :  { %1188 = vmatprep.mubr.f32.mxu1 %v4663_v7  ;;  %v4684_v7 = vunpack.i.h.bf16 %v3287_v40  ;;  %v4691_v40 = vunpack.i.l.bf16 %v3171_v15 }
 0x2bc   :  { %1189 = vmatmul.mubr.f32.gmra.mrb[8].mxu1 %v4664_v29  ;;  %v4686_v29 = vunpack.i.h.bf16 %v3297_v57  ;;  %v4693_v57 = vunpack.i.l.bf16 %v3181_v11 }
 0x2bd   :  { %1194 = vmatprep.mubr.f32.mxu1 %v4665_v0  ;;  %v4688_v0 = vunpack.i.h.bf16 %v3153_v59  ;;  %v4695_v59 = vunpack.i.l.bf16 %v3191_v9 }
 0x2c0   :  { %1195 = vmatmul.mubr.f32.gmra.mrb[10].mxu1 %v4666_v12  ;;  %v4690_v12 = vunpack.i.h.bf16 %v3161_v49  ;;  %v4697_v49 = vunpack.i.l.bf16 %v3201_v30 }
 0x2c1   :  { %1200 = vmatprep.mubr.f32.mxu1 %v4667_v38  ;;  %v4692_v38 = vunpack.i.h.bf16 %v3171_v15  ;;  %v4699_v15 = vunpack.i.l.bf16 %v3211_v37 }
 0x2c4   :  { %1201 = vmatmul.mubr.f32.gmra.mrb[12].mxu1 %v4668_v27  ;;  %v4694_v27 = vunpack.i.h.bf16 %v3181_v11  ;;  %v4701_v11 = vunpack.i.l.bf16 %v3221_v19 }
 0x2c5   :  { %1206 = vmatprep.mubr.f32.mxu1 %v4669_v43  ;;  %v4696_v43 = vunpack.i.h.bf16 %v3191_v9  ;;  %v4703_v9 = vunpack.i.l.bf16 %v3231_v2 }
 0x2c8   :  { %1207 = vmatmul.mubr.f32.gmra.mrb[14].mxu1 %v4670_v47  ;;  %v4698_v47 = vunpack.i.h.bf16 %v3201_v30  ;;  %v4705_v30 = vunpack.i.l.bf16 %v3241_v61 }
 0x2c9   :  { %1212 = vmatprep.mubr.f32.mxu1 %v4671_v42  ;;  %v4700_v42 = vunpack.i.h.bf16 %v3211_v37  ;;  %v4707_v37 = vunpack.i.l.bf16 %v3251_v41 }
 0x2cc   :  { %1213 = vmatmul.mubr.f32.gmra.mrb[16].mxu1 %v4672_v20  ;;  %v4702_v20 = vunpack.i.h.bf16 %v3221_v19  ;;  %v4709_v19 = vunpack.i.l.bf16 %v3261_v32 }
 0x2cd   :  { %1218 = vmatprep.mubr.f32.mxu1 %v4673_v21  ;;  %v4704_v21 = vunpack.i.h.bf16 %v3231_v2  ;;  %v4711_v2 = vunpack.i.l.bf16 %v3271_v26 }
 0x2d0   :  { %1219 = vmatmul.mubr.f32.gmra.mrb[18].mxu1 %v4674_v50  ;;  %v4706_v50 = vunpack.i.h.bf16 %v3241_v61  ;;  %v4713_v61 = vunpack.i.l.bf16 %v3281_v56 }
 0x2d1   :  { %1224 = vmatprep.mubr.f32.mxu1 %v4675_v62  ;;  %v4708_v62 = vunpack.i.h.bf16 %v3251_v41  ;;  %v4715_v41 = vunpack.i.l.bf16 %v3291_v4 }
 0x2d4   :  { %1225 = vmatmul.mubr.f32.gmra.mrb[20].mxu1 %v4676_v14  ;;  %v4710_v14 = vunpack.i.h.bf16 %v3261_v32  ;;  %v4717_v32 = vunpack.i.l.bf16 %v3302_v16 }
 0x2d5   :  { %1230 = vmatprep.mubr.f32.mxu1 %v4677_v48  ;;  %v4712_v48 = vunpack.i.h.bf16 %v3271_v26 }
 0x2d8   :  { %1231 = vmatmul.mubr.f32.gmra.mrb[22].mxu1 %v4678_v63  ;;  %v4714_v63 = vunpack.i.h.bf16 %v3281_v56 }
 0x2d9   :  { %1236 = vmatprep.mubr.f32.mxu1 %v4679_v23  ;;  %v4716_v23 = vunpack.i.h.bf16 %v3291_v4 }
 0x2dc   :  { %1237 = vmatmul.mubr.f32.gmra.mrb[24].mxu1 %v4680_v54  ;;  %v4718_v54 = vunpack.i.h.bf16 %v3302_v16 }
 0x2dd   :  { %1242 = vmatprep.mubr.f32.mxu1 %v4681_v3 }
 0x2e0   :  { %1243 = vmatmul.mubr.f32.gmra.mrb[26].mxu1 %v4682_v8 }
 0x2e1   :  { %1248 = vmatprep.mubr.f32.mxu1 %v4683_v17  ;;  %v3915_v17 = vstv %s2021_s0 }
 0x2e2   :  { %v1553_v16 = vmul.f32 %v3915_v17, %v3414_v5 }
 0x2e4   :  { %1249 = vmatmul.mubr.f32.gmra.mrb[28].mxu1 %v4684_v7  ;;  %v3917_v7 = vstv %s2022_s27 }
 0x2e5   :  { %1254 = vmatprep.mubr.f32.mxu1 %v4685_v34 }
 0x2e8   :  { %1255 = vmatmul.mubr.f32.gmra.mrb[30].mxu1 %v4686_v29 }
 0x2e9   :  { %1260 = vmatprep.mubr.f32.mxu1 %v4687_v58 }
 0x2ec   :  { %1261 = vmatmul.mubr.f32.gmra.mrb[32].mxu1 %v4688_v0 }
 0x2ed   :  { %1266 = vmatprep.mubr.f32.mxu1 %v4689_v46 }
 0x2f0   :  { %1267 = vmatmul.mubr.f32.gmra.mrb[34].mxu1 %v4690_v12 }
 0x2f1   :  { %1272 = vmatprep.mubr.f32.mxu1 %v4691_v40  ;;  %v1554_v40 = vmul.f32 %v3915_v17, %v3420_v25  ;;  %v1556_v25 = vmul.f32 %v3915_v17, %v3423_v55  ;;  %v1558_v55 = vmul.f32 %v3915_v17, %v3444_v39  ;;  %v4722_v39 = vld [vmem:[#allocation36_spill] sm:$0xff] }
 0x2f4   :  { %1273 = vmatmul.mubr.f32.gmra.mrb[36].mxu1 %v4692_v38 }
 0x2f5   :  { %1278 = vmatprep.mubr.f32.mxu1 %v4693_v57 }
 0x2f8   :  { %1279 = vmatmul.mubr.f32.gmra.mrb[38].mxu1 %v4694_v27 }
 0x2f9   :  { %1284 = vmatprep.mubr.f32.mxu1 %v4695_v59 }
 0x2fc   :  { %1285 = vmatmul.mubr.f32.gmra.mrb[40].mxu1 %v4696_v43  ;;  %v1555_v43 = vmul.f32 %v3915_v17, %v3417_v10  ;;  %v1557_v10 = vmul.f32 %v3915_v17, %v3438_v6  ;;  %v4721_v6 = vld [vmem:[#allocation32_spill] sm:$0xff] }
 0x2fd   :  { %1290 = vmatprep.mubr.f32.mxu1 %v4697_v49 }
 0x300   :  { %1291 = vmatmul.mubr.f32.gmra.mrb[42].mxu1 %v4698_v47 }
 0x301   :  { %1296 = vmatprep.mubr.f32.mxu1 %v4699_v15 }
 0x304   :  { %1297 = vmatmul.mubr.f32.gmra.mrb[44].mxu1 %v4700_v42 }
 0x305   :  { %1302 = vmatprep.mubr.f32.mxu1 %v4701_v11 }
 0x308   :  { %1303 = vmatmul.mubr.f32.gmra.mrb[46].mxu1 %v4702_v20 }
 0x309   :  { %1308 = vmatprep.mubr.f32.mxu1 %v4703_v9 }
 0x30c   :  { %1309 = vmatmul.mubr.f32.gmra.mrb[48].mxu1 %v4704_v21 }
 0x30d   :  { %1314 = vmatprep.mubr.f32.mxu1 %v4705_v30 }
 0x310   :  { %1315 = vmatmul.mubr.f32.gmra.mrb[50].mxu1 %v4706_v50 }
 0x311   :  { %1320 = vmatprep.mubr.f32.mxu1 %v4707_v37 }
 0x314   :  { %1321 = vmatmul.mubr.f32.gmra.mrb[52].mxu1 %v4708_v62 }
 0x315   :  { %1326 = vmatprep.mubr.f32.mxu1 %v4709_v19 }
 0x318   :  { %1327 = vmatmul.mubr.f32.gmra.mrb[54].mxu1 %v4710_v14  ;;  %v4720_v14 = vld [vmem:[#allocation30_spill] sm:$0xff] }
 0x319   :  { %1332 = vmatprep.mubr.f32.mxu1 %v4711_v2 }
 0x31c   :  { %1333 = vmatmul.mubr.f32.gmra.mrb[56].mxu1 %v4712_v48 }
 0x31d   :  { %1338 = vmatprep.mubr.f32.mxu1 %v4713_v61 }
 0x320   :  { %1339 = vmatmul.mubr.f32.gmra.mrb[58].mxu1 %v4714_v63  ;;  %v1559_v63 = vmul.f32 %v3915_v17, %v4721_v6 }
 0x321   :  { %1344 = vmatprep.mubr.f32.mxu1 %v4715_v41 }
 0x324   :  { %1345 = vmatmul.mubr.f32.gmra.mrb[60].mxu1 %v4716_v23 }
 0x325   :  { %1350 = vmatprep.mubr.f32.mxu1 %v4717_v32 }
 0x328   :  { %1351 = vmatmul.mubr.f32.gmra.mrb[62].mxu1 %v4718_v54  ;;  %v1560_v54 = vmul.f32 %v3915_v17, %v4722_v39  ;;  %v4735_v39 = vld [vmem:[#allocation15_spill] sm:$0xff] }
 0x37f   :  { %v1166_v26 = vpop.f32.mrb[0].mxu1 }
 0x380   :  { %v1357_v3 = vmul.f32 0.3, %v1166_v26  ;;  %v1168_v8 = vpop.f32.mrb[1].mxu1 }
 0x381   :  { %v1358_v56 = vmul.f32 0.3, %v1168_v8  ;;  %v4723_v8 = vld [vmem:[#allocation34_spill] sm:$0xff] }
 0x382   :  { %v1421_v34 = vadd.f32 %v1357_v3, %v3405_v36 }
 0x383   :  { %v1422_v4 = vadd.f32 %v1358_v56, %v3409_v31  ;;  %v1172_v29 = vpop.f32.mrb[2].mxu1 }
 0x384   :  { %v1359_v58 = vmul.f32 0.3, %v1172_v29  ;;  %v1174_v0 = vpop.f32.mrb[3].mxu1  ;;  %v1619_v46 = vmul.f32 %v3917_v7, %v1421_v34 }
 0x385   :  { %v1360_v12 = vmul.f32 0.3, %v1174_v0  ;;  %v1620_v38 = vmul.f32 %v3917_v7, %v1422_v4  ;;  %v4724_v4 = vld [vmem:[#allocation38_spill] sm:$0xff] }
 0x386   :  { %v1423_v57 = vadd.f32 %v1359_v58, %v3407_v13  ;;  %v1683_v27 = vadd.f32 %v1619_v46, %v1553_v16  ;;  %v4725_v16 = vld [vmem:[#allocation42_spill] sm:$0xff] }
 0x387   :  { %v1424_v36 = vadd.f32 %v1360_v12, %v3411_v22  ;;  %v1178_v31 = vpop.f32.mrb[4].mxu1  ;;  %v1684_v59 = vadd.f32 %v1620_v38, %v1554_v40  ;;  %v1561_v46 = vmul.f32 %v3915_v17, %v4725_v16 }
 0x388   :  { %v1621_v5 = vmul.f32 %v3917_v7, %v1423_v57  ;;  %v1361_v49 = vmul.f32 0.3, %v1178_v31  ;;  %1747 = vxpose.xlu0.b32.start [1/16] %v1683_v27, 128  ;;  %v1180_v47 = vpop.f32.mrb[5].mxu1  ;;  %v4726_v57 = vld [vmem:[#allocation13_spill] sm:$0xff] }
 0x389   :  { %v1622_v15 = vmul.f32 %v3917_v7, %v1424_v36  ;;  %v1362_v42 = vmul.f32 0.3, %v1180_v47  ;;  %1779 = vxpose.xlu1.b32.start [1/16] %v1684_v59, 128  ;;  %v1562_v27 = vmul.f32 %v3915_v17, %v4726_v57  ;;  %v4727_v59 = vld [vmem:[#allocation40_spill] sm:$0xff]  ;;  %v4739_v57 = vld [vmem:[#allocation21_spill] sm:$0xff] }
 0x38a   :  { %v1425_v13 = vadd.f32 %v1361_v49, %v3427_v53  ;;  %v1685_v22 = vadd.f32 %v1621_v5, %v1555_v43  ;;  %v4719_v53 = vld [vmem:[#allocation27_spill] sm:$0xff]  ;;  %v4728_v49 = vld [vmem:[#allocation44_spill] sm:$0xff] }
 0x38b   :  { %v1426_v11 = vadd.f32 %v1362_v42, %v3431_v45  ;;  %v1184_v20 = vpop.f32.mrb[6].mxu1  ;;  %v1686_v9 = vadd.f32 %v1622_v15, %v1556_v25  ;;  %v4729_v42 = vld [vmem:[#allocation47_spill] sm:$0xff] }
 0x38c   :  { %v1623_v21 = vmul.f32 %v3917_v7, %v1425_v13  ;;  %v1363_v30 = vmul.f32 0.3, %v1184_v20  ;;  %1748 = vxpose.xlu0.b32.cont [2/16] %v1685_v22, 128  ;;  %v1186_v50 = vpop.f32.mrb[7].mxu1  ;;  %v1563_v13 = vmul.f32 %v3915_v17, %v4729_v42 }
 0x38d   :  { %v1624_v37 = vmul.f32 %v3917_v7, %v1426_v11  ;;  %v1364_v62 = vmul.f32 0.3, %v1186_v50  ;;  %1780 = vxpose.xlu1.b32.cont [2/16] %v1686_v9, 128  ;;  %v4730_v9 = vld [vmem:[#allocation11_spill] sm:$0xff]  ;;  %v4731_v50 = vld [vmem:[#allocation12_spill] sm:$0xff] }
 0x38e   :  { %v1427_v19 = vadd.f32 %v1363_v30, %v4719_v53  ;;  %v1687_v45 = vadd.f32 %v1623_v21, %v1557_v10  ;;  %v1564_v10 = vmul.f32 %v3915_v17, %v4730_v9  ;;  %v4743_v9 = vld [vmem:[#allocation23_spill] sm:$0xff] }
 0x38f   :  { %v1428_v2 = vadd.f32 %v1364_v62, %v4720_v14  ;;  %v1190_v48 = vpop.f32.mrb[8].mxu1  ;;  %v1688_v61 = vadd.f32 %v1624_v37, %v1558_v55  ;;  %v4732_v62 = vld [vmem:[#allocation14_spill] sm:$0xff]  ;;  %v4733_v14 = vld [vmem:[#allocation17_spill] sm:$0xff] }
 0x390   :  { %v1625_v41 = vmul.f32 %v3917_v7, %v1427_v19  ;;  %v1365_v23 = vmul.f32 0.3, %v1190_v48  ;;  %1749 = vxpose.xlu0.b32.cont [3/16] %v1687_v45, 128  ;;  %v1192_v32 = vpop.f32.mrb[9].mxu1 }
 0x391   :  { %v1626_v26 = vmul.f32 %v3917_v7, %v1428_v2  ;;  %v1366_v3 = vmul.f32 0.3, %v1192_v32  ;;  %1781 = vxpose.xlu1.b32.cont [3/16] %v1688_v61, 128  ;;  %v1565_v2 = vmul.f32 %v3915_v17, %v4733_v14 }
 0x392   :  { %v1429_v56 = vadd.f32 %v1365_v23, %v4723_v8  ;;  %v1689_v34 = vadd.f32 %v1625_v41, %v1559_v63  ;;  %v4734_v63 = vld [vmem:[#allocation19_spill] sm:$0xff] }
 0x393   :  { %v1430_v29 = vadd.f32 %v1366_v3, %v4724_v4  ;;  %v1196_v58 = vpop.f32.mrb[10].mxu1  ;;  %v1690_v0 = vadd.f32 %v1626_v26, %v1560_v54  ;;  %v1566_v41 = vmul.f32 %v3915_v17, %v4734_v63  ;;  %v4736_v3 = vld [vmem:[#allocation16_spill] sm:$0xff]  ;;  %v4737_v4 = vld [vmem:[#allocation18_spill] sm:$0xff]  ;;  %v4747_v63 = vld [vmem:[#allocation31_spill] sm:$0xff] }
 0x394   :  { %v1627_v12 = vmul.f32 %v3917_v7, %v1429_v56  ;;  %v1367_v40 = vmul.f32 0.3, %v1196_v58  ;;  %1750 = vxpose.xlu0.b32.cont [4/16] %v1689_v34, 128  ;;  %v1198_v38 = vpop.f32.mrb[11].mxu1 }
 0x395   :  { %v1628_v36 = vmul.f32 %v3917_v7, %v1430_v29  ;;  %v1368_v31 = vmul.f32 0.3, %v1198_v38  ;;  %1782 = vxpose.xlu1.b32.cont [4/16] %v1690_v0, 128  ;;  %v1567_v29 = vmul.f32 %v3915_v17, %v4737_v4 }
 0x396   :  { %v1431_v43 = vadd.f32 %v1367_v40, %v4727_v59  ;;  %v1691_v5 = vadd.f32 %v1627_v12, %v1561_v46  ;;  %v4738_v46 = vld [vmem:[#allocation20_spill] sm:$0xff] }
 0x397   :  { %v1432_v47 = vadd.f32 %v1368_v31, %v4728_v49  ;;  %v1202_v25 = vpop.f32.mrb[12].mxu1  ;;  %v1692_v15 = vadd.f32 %v1628_v36, %v1562_v27  ;;  %v1568_v12 = vmul.f32 %v3915_v17, %v4738_v46  ;;  %v4740_v31 = vld [vmem:[#allocation22_spill] sm:$0xff]  ;;  %v4741_v49 = vld [vmem:[#allocation25_spill] sm:$0xff]  ;;  %v4751_v46 = vld [vmem:[#allocation35_spill] sm:$0xff] }
 0x398   :  { %v1629_v22 = vmul.f32 %v3917_v7, %v1431_v43  ;;  %v1369_v11 = vmul.f32 0.3, %v1202_v25  ;;  %1751 = vxpose.xlu0.b32.cont [5/16] %v1691_v5, 128  ;;  %v1204_v20 = vpop.f32.mrb[13].mxu1 }
 0x399   :  { %v1630_v21 = vmul.f32 %v3917_v7, %v1432_v47  ;;  %v1370_v30 = vmul.f32 0.3, %v1204_v20  ;;  %1783 = vxpose.xlu1.b32.cont [5/16] %v1692_v15, 128  ;;  %v1569_v47 = vmul.f32 %v3915_v17, %v4741_v49 }
 0x39a   :  { %v1433_v55 = vadd.f32 %v1369_v11, %v4731_v50  ;;  %v1693_v37 = vadd.f32 %v1629_v22, %v1563_v13  ;;  %v4742_v13 = vld [vmem:[#allocation28_spill] sm:$0xff] }
 0x39b   :  { %v1434_v53 = vadd.f32 %v1370_v30, %v4732_v62  ;;  %v1208_v19 = vpop.f32.mrb[14].mxu1  ;;  %v1694_v45 = vadd.f32 %v1630_v21, %v1564_v10  ;;  %v1570_v22 = vmul.f32 %v3915_v17, %v4742_v13  ;;  %v4744_v30 = vld [vmem:[#allocation24_spill] sm:$0xff]  ;;  %v4745_v62 = vld [vmem:[#allocation26_spill] sm:$0xff] }
 0x39c   :  { %v1631_v48 = vmul.f32 %v3917_v7, %v1433_v55  ;;  %v1371_v61 = vmul.f32 0.3, %v1208_v19  ;;  %1752 = vxpose.xlu0.b32.cont [6/16] %v1693_v37, 128  ;;  %v1210_v6 = vpop.f32.mrb[15].mxu1  ;;  %v4755_v13 = vld [vmem:[#allocation46_spill] sm:$0xff] }
 0x39d   :  { %v1632_v23 = vmul.f32 %v3917_v7, %v1434_v53  ;;  %v1372_v32 = vmul.f32 0.3, %v1210_v6  ;;  %1784 = vxpose.xlu1.b32.cont [6/16] %v1694_v45, 128  ;;  %v1571_v53 = vmul.f32 %v3915_v17, %v4745_v62 }
 0x39e   :  { %v1435_v54 = vadd.f32 %v1371_v61, %v4735_v39  ;;  %v1695_v26 = vadd.f32 %v1631_v48, %v1565_v2  ;;  %v4746_v2 = vld [vmem:[#allocation29_spill] sm:$0xff] }
 0x39f   :  { %v1436_v8 = vadd.f32 %v1372_v32, %v4736_v3  ;;  %v1214_v56 = vpop.f32.mrb[16].mxu1  ;;  %v1696_v34 = vadd.f32 %v1632_v23, %v1566_v41  ;;  %v1572_v48 = vmul.f32 %v3915_v17, %v4746_v2  ;;  %v4748_v32 = vld [vmem:[#allocation33_spill] sm:$0xff]  ;;  %v4749_v3 = vld [vmem:[#allocation39_spill] sm:$0xff] }
 0x3a0   :  { %v1633_v58 = vmul.f32 %v3917_v7, %v1435_v54  ;;  %v1373_v0 = vmul.f32 0.3, %v1214_v56  ;;  %1753 = vxpose.xlu0.b32.cont [7/16] %v1695_v26, 128  ;;  %v1216_v16 = vpop.f32.mrb[17].mxu1  ;;  %v4759_v2 = vld [vmem:[#allocation49_spill] sm:$0xff] }
 0x3a1   :  { %v1634_v40 = vmul.f32 %v3917_v7, %v1436_v8  ;;  %v1374_v38 = vmul.f32 0.3, %v1216_v16  ;;  %1785 = vxpose.xlu1.b32.cont [7/16] %v1696_v34, 128  ;;  %v1573_v8 = vmul.f32 %v3915_v17, %v4749_v3 }
 0x3a2   :  { %v1437_v27 = vadd.f32 %v1373_v0, %v4739_v57  ;;  %v1697_v36 = vadd.f32 %v1633_v58, %v1567_v29  ;;  %v4750_v29 = vld [vmem:[#allocation43_spill] sm:$0xff] }
 0x3a3   :  { %v1438_v59 = vadd.f32 %v1374_v38, %v4740_v31  ;;  %v1220_v43 = vpop.f32.mrb[18].mxu1  ;;  %v1698_v5 = vadd.f32 %v1634_v40, %v1568_v12  ;;  %v1574_v58 = vmul.f32 %v3915_v17, %v4750_v29  ;;  %v4752_v38 = vld [vmem:[#allocation37_spill] sm:$0xff]  ;;  %v4763_v29 = vld [vmem:[#allocation55_spill] sm:$0xff] }
 0x3a4   :  { %v1635_v25 = vmul.f32 %v3917_v7, %v1437_v27  ;;  %v1375_v15 = vmul.f32 0.3, %v1220_v43  ;;  %1754 = vxpose.xlu0.b32.cont [8/16] %v1697_v36, 128  ;;  %v1222_v42 = vpop.f32.mrb[19].mxu1  ;;  %v4753_v31 = vld [vmem:[#allocation41_spill] sm:$0xff] }
 0x3a5   :  { %v1636_v11 = vmul.f32 %v3917_v7, %v1438_v59  ;;  %v1376_v20 = vmul.f32 0.3, %v1222_v42  ;;  %1786 = vxpose.xlu1.b32.cont [8/16] %v1698_v5, 128  ;;  %v1575_v59 = vmul.f32 %v3915_v17, %v4753_v31 }
 0x3a6   :  { %v1439_v10 = vadd.f32 %v1375_v15, %v4743_v9  ;;  %v1699_v21 = vadd.f32 %v1635_v25, %v1569_v47  ;;  %v4754_v47 = vld [vmem:[#allocation45_spill] sm:$0xff] }
 0x3a7   :  { %v1440_v50 = vadd.f32 %v1376_v20, %v4744_v30  ;;  %v1226_v55 = vpop.f32.mrb[20].mxu1  ;;  %v1700_v37 = vadd.f32 %v1636_v11, %v1570_v22  ;;  %v1576_v25 = vmul.f32 %v3915_v17, %v4754_v47  ;;  %v4756_v20 = vld [vmem:[#allocation48_spill] sm:$0xff]  ;;  %v4757_v30 = vld [vmem:[#allocation51_spill] sm:$0xff]  ;;  %v4767_v47 = vld [vmem:[#allocation57_spill] sm:$0xff] }
 0x3a8   :  { %v1637_v19 = vmul.f32 %v3917_v7, %v1439_v10  ;;  %v1377_v45 = vmul.f32 0.3, %v1226_v55  ;;  %1755 = vxpose.xlu0.b32.cont [9/16] %v1699_v21, 128  ;;  %v1228_v14 = vpop.f32.mrb[21].mxu1 }
 0x3a9   :  { %v1638_v61 = vmul.f32 %v3917_v7, %v1440_v50  ;;  %v1378_v6 = vmul.f32 0.3, %v1228_v14  ;;  %1787 = vxpose.xlu1.b32.cont [9/16] %v1700_v37, 128  ;;  %v1577_v50 = vmul.f32 %v3915_v17, %v4757_v30 }
 0x3aa   :  { %v1441_v41 = vadd.f32 %v1377_v45, %v4747_v63  ;;  %v1701_v23 = vadd.f32 %v1637_v19, %v1571_v53  ;;  %v4758_v53 = vld [vmem:[#allocation53_spill] sm:$0xff] }
 0x3ab   :  { %v1442_v39 = vadd.f32 %v1378_v6, %v4748_v32  ;;  %v1232_v54 = vpop.f32.mrb[22].mxu1  ;;  %v1702_v26 = vadd.f32 %v1638_v61, %v1572_v48  ;;  %v1578_v19 = vmul.f32 %v3915_v17, %v4758_v53  ;;  %v4760_v6 = vld [vmem:[#allocation50_spill] sm:$0xff]  ;;  %v4761_v32 = vld [vmem:[#allocation52_spill] sm:$0xff]  ;;  %v4771_v53 = vld [vmem:[#allocation63_spill] sm:$0xff] }
 0x3ac   :  { %v1639_v56 = vmul.f32 %v3917_v7, %v1441_v41  ;;  %v1379_v34 = vmul.f32 0.3, %v1232_v54  ;;  %1756 = vxpose.xlu0.b32.cont [10/16] %v1701_v23, 128  ;;  %v1234_v4 = vpop.f32.mrb[23].mxu1 }
 0x3ad   :  { %v1640_v0 = vmul.f32 %v3917_v7, %v1442_v39  ;;  %v1380_v16 = vmul.f32 0.3, %v1234_v4  ;;  %1788 = vxpose.xlu1.b32.cont [10/16] %v1702_v26, 128  ;;  %v1579_v39 = vmul.f32 %v3915_v17, %v4761_v32 }
 0x3ae   :  { %v1443_v12 = vadd.f32 %v1379_v34, %v4751_v46  ;;  %v1703_v40 = vadd.f32 %v1639_v56, %v1573_v8  ;;  %v4762_v8 = vld [vmem:[#allocation54_spill] sm:$0xff] }
 0x3af   :  { %v1444_v57 = vadd.f32 %v1380_v16, %v4752_v38  ;;  %v1238_v27 = vpop.f32.mrb[24].mxu1  ;;  %v1704_v36 = vadd.f32 %v1640_v0, %v1574_v58  ;;  %v1580_v56 = vmul.f32 %v3915_v17, %v4762_v8  ;;  %v4764_v16 = vld [vmem:[#allocation56_spill] sm:$0xff]  ;;  %v4765_v38 = vld [vmem:[#allocation59_spill] sm:$0xff]  ;;  %v4775_v8 = vld [vmem:[#allocation65_spill] sm:$0xff] }
 0x3b0   :  { %v1641_v43 = vmul.f32 %v3917_v7, %v1443_v12  ;;  %v1381_v5 = vmul.f32 0.3, %v1238_v27  ;;  %1757 = vxpose.xlu0.b32.cont [11/16] %v1703_v40, 128  ;;  %v1240_v49 = vpop.f32.mrb[25].mxu1 }
 0x3b1   :  { %v1642_v15 = vmul.f32 %v3917_v7, %v1444_v57  ;;  %v1382_v42 = vmul.f32 0.3, %v1240_v49  ;;  %1789 = vxpose.xlu1.b32.cont [11/16] %v1704_v36, 128  ;;  %v1581_v57 = vmul.f32 %v3915_v17, %v4765_v38 }
 0x3b2   :  { %v1445_v22 = vadd.f32 %v1381_v5, %v4755_v13  ;;  %v1705_v11 = vadd.f32 %v1641_v43, %v1575_v59  ;;  %v4766_v59 = vld [vmem:[#allocation61_spill] sm:$0xff] }
 0x3b3   :  { %v1446_v9 = vadd.f32 %v1382_v42, %v4756_v20  ;;  %v1244_v10 = vpop.f32.mrb[26].mxu1  ;;  %v1706_v21 = vadd.f32 %v1642_v15, %v1576_v25  ;;  %v1582_v43 = vmul.f32 %v3915_v17, %v4766_v59  ;;  %v4768_v42 = vld [vmem:[#allocation58_spill] sm:$0xff]  ;;  %v4769_v20 = vld [vmem:[#allocation60_spill] sm:$0xff]  ;;  %v4779_v59 = vld [vmem:[#allocation71_spill] sm:$0xff] }
 0x3b4   :  { %v1643_v55 = vmul.f32 %v3917_v7, %v1445_v22  ;;  %v1383_v37 = vmul.f32 0.3, %v1244_v10  ;;  %1758 = vxpose.xlu0.b32.cont [12/16] %v1705_v11, 128  ;;  %v1246_v62 = vpop.f32.mrb[27].mxu1 }
 0x3b5   :  { %v1644_v45 = vmul.f32 %v3917_v7, %v1446_v9  ;;  %v1384_v14 = vmul.f32 0.3, %v1246_v62  ;;  %1790 = vxpose.xlu1.b32.cont [12/16] %v1706_v21, 128  ;;  %v1583_v9 = vmul.f32 %v3915_v17, %v4769_v20 }
 0x3b6   :  { %v1447_v48 = vadd.f32 %v1383_v37, %v4759_v2  ;;  %v1707_v61 = vadd.f32 %v1643_v55, %v1577_v50  ;;  %v4770_v50 = vld [vmem:[#allocation62_spill] sm:$0xff] }
 0x3b7   :  { %v1448_v63 = vadd.f32 %v1384_v14, %v4760_v6  ;;  %v1250_v41 = vpop.f32.mrb[28].mxu1  ;;  %v1708_v23 = vadd.f32 %v1644_v45, %v1578_v19  ;;  %v1584_v55 = vmul.f32 %v3915_v17, %v4770_v50  ;;  %v4772_v14 = vld [vmem:[#allocation64_spill] sm:$0xff]  ;;  %v4773_v6 = vld [vmem:[#allocation67_spill] sm:$0xff]  ;;  %v4783_v50 = vld [vmem:[#allocation73_spill] sm:$0xff] }
 0x3b8   :  { %v1645_v54 = vmul.f32 %v3917_v7, %v1447_v48  ;;  %v1385_v26 = vmul.f32 0.3, %v1250_v41  ;;  %1759 = vxpose.xlu0.b32.cont [13/16] %v1707_v61, 128  ;;  %v1252_v3 = vpop.f32.mrb[29].mxu1 }
 0x3b9   :  { %v1646_v34 = vmul.f32 %v3917_v7, %v1448_v63  ;;  %v1386_v4 = vmul.f32 0.3, %v1252_v3  ;;  %1791 = vxpose.xlu1.b32.cont [13/16] %v1708_v23, 128  ;;  %v1585_v63 = vmul.f32 %v3915_v17, %v4773_v6 }
 0x3ba   :  { %v1449_v58 = vadd.f32 %v1385_v26, %v4763_v29  ;;  %v1709_v0 = vadd.f32 %v1645_v54, %v1579_v39  ;;  %v4774_v39 = vld [vmem:[#allocation69_spill] sm:$0xff] }
 0x3bb   :  { %v1450_v46 = vadd.f32 %v1386_v4, %v4764_v16  ;;  %v1256_v12 = vpop.f32.mrb[30].mxu1  ;;  %v1710_v40 = vadd.f32 %v1646_v34, %v1580_v56  ;;  %v1586_v54 = vmul.f32 %v3915_v17, %v4774_v39  ;;  %v4776_v4 = vld [vmem:[#allocation66_spill] sm:$0xff]  ;;  %v4777_v16 = vld [vmem:[#allocation68_spill] sm:$0xff]  ;;  %v4787_v39 = vld [vmem:[#allocation79_spill] sm:$0xff] }
 0x3bc   :  { %v1647_v27 = vmul.f32 %v3917_v7, %v1449_v58  ;;  %v1387_v36 = vmul.f32 0.3, %v1256_v12  ;;  %1760 = vxpose.xlu0.b32.cont [14/16] %v1709_v0, 128  ;;  %v1258_v31 = vpop.f32.mrb[31].mxu1 }
 0x3bd   :  { %v1648_v5 = vmul.f32 %v3917_v7, %v1450_v46  ;;  %v1388_v49 = vmul.f32 0.3, %v1258_v31  ;;  %1792 = vxpose.xlu1.b32.cont [14/16] %v1710_v40, 128  ;;  %v1587_v46 = vmul.f32 %v3915_v17, %v4777_v16 }
 0x3be   :  { %v1451_v25 = vadd.f32 %v1387_v36, %v4767_v47  ;;  %v1711_v15 = vadd.f32 %v1647_v27, %v1581_v57  ;;  %v4778_v57 = vld [vmem:[#allocation70_spill] sm:$0xff] }
 0x3bf   :  { %v1452_v13 = vadd.f32 %v1388_v49, %v4768_v42  ;;  %v1262_v22 = vpop.f32.mrb[32].mxu1  ;;  %v1712_v11 = vadd.f32 %v1648_v5, %v1582_v43  ;;  %v1588_v27 = vmul.f32 %v3915_v17, %v4778_v57  ;;  %v4780_v49 = vld [vmem:[#allocation72_spill] sm:$0xff]  ;;  %v4781_v42 = vld [vmem:[#allocation75_spill] sm:$0xff]  ;;  %v4791_v57 = vld [vmem:[#allocation81_spill] sm:$0xff] }
 0x3c0   :  { %v1649_v10 = vmul.f32 %v3917_v7, %v1451_v25  ;;  %v1389_v21 = vmul.f32 0.3, %v1262_v22  ;;  %1761 = vxpose.xlu0.b32.cont [15/16] %v1711_v15, 128  ;;  %v1264_v30 = vpop.f32.mrb[33].mxu1 }
 0x3c1   :  { %v1650_v37 = vmul.f32 %v3917_v7, %v1452_v13  ;;  %v1390_v62 = vmul.f32 0.3, %v1264_v30  ;;  %1793 = vxpose.xlu1.b32.cont [15/16] %v1712_v11, 128  ;;  %v1589_v13 = vmul.f32 %v3915_v17, %v4781_v42 }
 0x3c2   :  { %v1453_v19 = vadd.f32 %v1389_v21, %v4771_v53  ;;  %v1713_v45 = vadd.f32 %v1649_v10, %v1583_v9  ;;  %v4782_v9 = vld [vmem:[#allocation77_spill] sm:$0xff] }
 0x3c3   :  { %v1454_v2 = vadd.f32 %v1390_v62, %v4772_v14  ;;  %v1268_v48 = vpop.f32.mrb[34].mxu1  ;;  %v1714_v61 = vadd.f32 %v1650_v37, %v1584_v55  ;;  %v1590_v10 = vmul.f32 %v3915_v17, %v4782_v9  ;;  %v4784_v62 = vld [vmem:[#allocation74_spill] sm:$0xff]  ;;  %v4785_v14 = vld [vmem:[#allocation76_spill] sm:$0xff]  ;;  %v4795_v9 = vld [vmem:[#allocation87_spill] sm:$0xff] }
 0x3c4   :  { %v1651_v41 = vmul.f32 %v3917_v7, %v1453_v19  ;;  %v1391_v23 = vmul.f32 0.3, %v1268_v48  ;;  %1762 = vxpose.xlu0.b32.end [16/16] %v1713_v45, 128  ;;  %v1270_v32 = vpop.f32.mrb[35].mxu1 }
 0x3c5   :  { %v1652_v26 = vmul.f32 %v3917_v7, %v1454_v2  ;;  %v1392_v3 = vmul.f32 0.3, %v1270_v32  ;;  %1794 = vxpose.xlu1.b32.end [16/16] %v1714_v61, 128  ;;  %v1591_v2 = vmul.f32 %v3915_v17, %v4785_v14 }
 0x3c6   :  { %v1455_v56 = vadd.f32 %v1391_v23, %v4775_v8  ;;  %v1715_v34 = vadd.f32 %v1651_v41, %v1585_v63  ;;  %v4786_v63 = vld [vmem:[#allocation78_spill] sm:$0xff] }
 0x3c7   :  { %v1456_v29 = vadd.f32 %v1392_v3, %v4776_v4  ;;  %v1274_v58 = vpop.f32.mrb[36].mxu1  ;;  %v1716_v0 = vadd.f32 %v1652_v26, %v1586_v54  ;;  %v1592_v41 = vmul.f32 %v3915_v17, %v4786_v63  ;;  %v4788_v3 = vld [vmem:[#allocation80_spill] sm:$0xff]  ;;  %v4789_v4 = vld [vmem:[#allocation83_spill] sm:$0xff]  ;;  %v4799_v63 = vld [vmem:[#allocation89_spill] sm:$0xff] }
 0x3c8   :  { %v1653_v12 = vmul.f32 %v3917_v7, %v1455_v56  ;;  %v1393_v40 = vmul.f32 0.3, %v1274_v58  ;;  %1811 = vxpose.xlu0.b32.start [1/16] %v1715_v34, 128  ;;  %v1276_v38 = vpop.f32.mrb[37].mxu1 }
 0x3c9   :  { %v1654_v36 = vmul.f32 %v3917_v7, %v1456_v29  ;;  %v1394_v31 = vmul.f32 0.3, %v1276_v38  ;;  %1843 = vxpose.xlu1.b32.start [1/16] %v1716_v0, 128  ;;  %v1593_v29 = vmul.f32 %v3915_v17, %v4789_v4 }
 0x3ca   :  { %v1457_v43 = vadd.f32 %v1393_v40, %v4779_v59  ;;  %v1717_v5 = vadd.f32 %v1653_v12, %v1587_v46  ;;  %v4790_v46 = vld [vmem:[#allocation85_spill] sm:$0xff] }
 0x3cb   :  { %v1458_v47 = vadd.f32 %v1394_v31, %v4780_v49  ;;  %v1280_v25 = vpop.f32.mrb[38].mxu1  ;;  %v1718_v15 = vadd.f32 %v1654_v36, %v1588_v27  ;;  %v1594_v12 = vmul.f32 %v3915_v17, %v4790_v46  ;;  %v4792_v31 = vld [vmem:[#allocation82_spill] sm:$0xff]  ;;  %v4793_v49 = vld [vmem:[#allocation84_spill] sm:$0xff]  ;;  %v4803_v46 = vld [vmem:[#allocation95_spill] sm:$0xff] }
 0x3cc   :  { %v1655_v22 = vmul.f32 %v3917_v7, %v1457_v43  ;;  %v1395_v11 = vmul.f32 0.3, %v1280_v25  ;;  %1812 = vxpose.xlu0.b32.cont [2/16] %v1717_v5, 128  ;;  %v1282_v20 = vpop.f32.mrb[39].mxu1 }
 0x3cd   :  { %v1656_v21 = vmul.f32 %v3917_v7, %v1458_v47  ;;  %v1396_v30 = vmul.f32 0.3, %v1282_v20  ;;  %1844 = vxpose.xlu1.b32.cont [2/16] %v1718_v15, 128  ;;  %v1595_v47 = vmul.f32 %v3915_v17, %v4793_v49 }
 0x3ce   :  { %v1459_v55 = vadd.f32 %v1395_v11, %v4783_v50  ;;  %v1719_v37 = vadd.f32 %v1655_v22, %v1589_v13  ;;  %v4794_v13 = vld [vmem:[#allocation86_spill] sm:$0xff] }
 0x3cf   :  { %v1460_v53 = vadd.f32 %v1396_v30, %v4784_v62  ;;  %v1286_v19 = vpop.f32.mrb[40].mxu1  ;;  %v1720_v45 = vadd.f32 %v1656_v21, %v1590_v10  ;;  %v1596_v22 = vmul.f32 %v3915_v17, %v4794_v13  ;;  %v4796_v30 = vld [vmem:[#allocation88_spill] sm:$0xff]  ;;  %v4797_v62 = vld [vmem:[#allocation91_spill] sm:$0xff]  ;;  %v4807_v13 = vld [vmem:[#allocation97_spill] sm:$0xff] }
 0x3d0   :  { %v1657_v48 = vmul.f32 %v3917_v7, %v1459_v55  ;;  %v1397_v61 = vmul.f32 0.3, %v1286_v19  ;;  %1813 = vxpose.xlu0.b32.cont [3/16] %v1719_v37, 128  ;;  %v1288_v6 = vpop.f32.mrb[41].mxu1 }
 0x3d1   :  { %v1658_v23 = vmul.f32 %v3917_v7, %v1460_v53  ;;  %v1398_v32 = vmul.f32 0.3, %v1288_v6  ;;  %1845 = vxpose.xlu1.b32.cont [3/16] %v1720_v45, 128  ;;  %v1597_v53 = vmul.f32 %v3915_v17, %v4797_v62 }
 0x3d2   :  { %v1461_v54 = vadd.f32 %v1397_v61, %v4787_v39  ;;  %v1721_v26 = vadd.f32 %v1657_v48, %v1591_v2  ;;  %v4798_v2 = vld [vmem:[#allocation93_spill] sm:$0xff] }
 0x3d3   :  { %v1462_v8 = vadd.f32 %v1398_v32, %v4788_v3  ;;  %v1292_v56 = vpop.f32.mrb[42].mxu1  ;;  %v1722_v34 = vadd.f32 %v1658_v23, %v1592_v41  ;;  %v1598_v48 = vmul.f32 %v3915_v17, %v4798_v2  ;;  %v4800_v32 = vld [vmem:[#allocation90_spill] sm:$0xff]  ;;  %v4801_v3 = vld [vmem:[#allocation92_spill] sm:$0xff]  ;;  %v4811_v2 = vld [vmem:[#allocation103_spill] sm:$0xff] }
 0x3d4   :  { %v1659_v58 = vmul.f32 %v3917_v7, %v1461_v54  ;;  %v1399_v0 = vmul.f32 0.3, %v1292_v56  ;;  %1814 = vxpose.xlu0.b32.cont [4/16] %v1721_v26, 128  ;;  %v1294_v16 = vpop.f32.mrb[43].mxu1 }
 0x3d5   :  { %v1660_v40 = vmul.f32 %v3917_v7, %v1462_v8  ;;  %v1400_v38 = vmul.f32 0.3, %v1294_v16  ;;  %1846 = vxpose.xlu1.b32.cont [4/16] %v1722_v34, 128  ;;  %v1599_v8 = vmul.f32 %v3915_v17, %v4801_v3 }
 0x3d6   :  { %v1463_v27 = vadd.f32 %v1399_v0, %v4791_v57  ;;  %v1723_v36 = vadd.f32 %v1659_v58, %v1593_v29  ;;  %v4802_v29 = vld [vmem:[#allocation94_spill] sm:$0xff] }
 0x3d7   :  { %v1464_v59 = vadd.f32 %v1400_v38, %v4792_v31  ;;  %v1298_v43 = vpop.f32.mrb[44].mxu1  ;;  %v1724_v5 = vadd.f32 %v1660_v40, %v1594_v12  ;;  %v1600_v58 = vmul.f32 %v3915_v17, %v4802_v29  ;;  %v4804_v38 = vld [vmem:[#allocation96_spill] sm:$0xff]  ;;  %v4805_v31 = vld [vmem:[#allocation99_spill] sm:$0xff]  ;;  %v4815_v29 = vld [vmem:[#allocation105_spill] sm:$0xff] }
 0x3d8   :  { %v1661_v25 = vmul.f32 %v3917_v7, %v1463_v27  ;;  %v1401_v15 = vmul.f32 0.3, %v1298_v43  ;;  %1815 = vxpose.xlu0.b32.cont [5/16] %v1723_v36, 128  ;;  %v1300_v42 = vpop.f32.mrb[45].mxu1 }
 0x3d9   :  { %v1662_v11 = vmul.f32 %v3917_v7, %v1464_v59  ;;  %v1402_v20 = vmul.f32 0.3, %v1300_v42  ;;  %1847 = vxpose.xlu1.b32.cont [5/16] %v1724_v5, 128  ;;  %v1601_v59 = vmul.f32 %v3915_v17, %v4805_v31 }
 0x3da   :  { %v1465_v10 = vadd.f32 %v1401_v15, %v4795_v9  ;;  %v1725_v21 = vadd.f32 %v1661_v25, %v1595_v47  ;;  %v4806_v47 = vld [vmem:[#allocation101_spill] sm:$0xff] }
 0x3db   :  { %v1466_v50 = vadd.f32 %v1402_v20, %v4796_v30  ;;  %v1304_v55 = vpop.f32.mrb[46].mxu1  ;;  %v1726_v37 = vadd.f32 %v1662_v11, %v1596_v22  ;;  %v1602_v25 = vmul.f32 %v3915_v17, %v4806_v47  ;;  %v4808_v20 = vld [vmem:[#allocation98_spill] sm:$0xff]  ;;  %v4809_v30 = vld [vmem:[#allocation100_spill] sm:$0xff]  ;;  %v4819_v47 = vld [vmem:[#allocation111_spill] sm:$0xff] }
 0x3dc   :  { %v1663_v19 = vmul.f32 %v3917_v7, %v1465_v10  ;;  %v1403_v45 = vmul.f32 0.3, %v1304_v55  ;;  %1816 = vxpose.xlu0.b32.cont [6/16] %v1725_v21, 128  ;;  %v1306_v14 = vpop.f32.mrb[47].mxu1 }
 0x3dd   :  { %v1664_v61 = vmul.f32 %v3917_v7, %v1466_v50  ;;  %v1404_v6 = vmul.f32 0.3, %v1306_v14  ;;  %1848 = vxpose.xlu1.b32.cont [6/16] %v1726_v37, 128  ;;  %v1603_v50 = vmul.f32 %v3915_v17, %v4809_v30 }
 0x3de   :  { %v1467_v41 = vadd.f32 %v1403_v45, %v4799_v63  ;;  %v1727_v23 = vadd.f32 %v1663_v19, %v1597_v53  ;;  %v4810_v53 = vld [vmem:[#allocation102_spill] sm:$0xff] }
 0x3df   :  { %v1468_v39 = vadd.f32 %v1404_v6, %v4800_v32  ;;  %v1310_v54 = vpop.f32.mrb[48].mxu1  ;;  %v1728_v26 = vadd.f32 %v1664_v61, %v1598_v48  ;;  %v1604_v19 = vmul.f32 %v3915_v17, %v4810_v53  ;;  %v4812_v6 = vld [vmem:[#allocation104_spill] sm:$0xff]  ;;  %v4813_v32 = vld [vmem:[#allocation107_spill] sm:$0xff] }
 0x3e0   :  { %v1665_v56 = vmul.f32 %v3917_v7, %v1467_v41  ;;  %v1405_v34 = vmul.f32 0.3, %v1310_v54  ;;  %1817 = vxpose.xlu0.b32.cont [7/16] %v1727_v23, 128  ;;  %v1312_v4 = vpop.f32.mrb[49].mxu1 }
 0x3e1   :  { %v1666_v0 = vmul.f32 %v3917_v7, %v1468_v39  ;;  %v1406_v16 = vmul.f32 0.3, %v1312_v4  ;;  %1849 = vxpose.xlu1.b32.cont [7/16] %v1728_v26, 128  ;;  %v1605_v39 = vmul.f32 %v3915_v17, %v4813_v32 }
 0x3e2   :  { %v1469_v12 = vadd.f32 %v1405_v34, %v4803_v46  ;;  %v1729_v40 = vadd.f32 %v1665_v56, %v1599_v8  ;;  %v4814_v8 = vld [vmem:[#allocation109_spill] sm:$0xff] }
 0x3e3   :  { %v1470_v57 = vadd.f32 %v1406_v16, %v4804_v38  ;;  %v1316_v27 = vpop.f32.mrb[50].mxu1  ;;  %v1730_v36 = vadd.f32 %v1666_v0, %v1600_v58  ;;  %v1606_v56 = vmul.f32 %v3915_v17, %v4814_v8  ;;  %v4816_v16 = vld [vmem:[#allocation106_spill] sm:$0xff]  ;;  %v4817_v38 = vld [vmem:[#allocation108_spill] sm:$0xff] }
 0x3e4   :  { %v1667_v43 = vmul.f32 %v3917_v7, %v1469_v12  ;;  %v1407_v5 = vmul.f32 0.3, %v1316_v27  ;;  %1818 = vxpose.xlu0.b32.cont [8/16] %v1729_v40, 128  ;;  %v1318_v49 = vpop.f32.mrb[51].mxu1 }
 0x3e5   :  { %v1668_v15 = vmul.f32 %v3917_v7, %v1470_v57  ;;  %v1408_v42 = vmul.f32 0.3, %v1318_v49  ;;  %1850 = vxpose.xlu1.b32.cont [8/16] %v1730_v36, 128  ;;  %v1607_v57 = vmul.f32 %v3915_v17, %v4817_v38  ;;  %v1616_v38 = vmul.f32 %v3915_v17, %v3783_v28 }
 0x3e6   :  { %v1471_v22 = vadd.f32 %v1407_v5, %v4807_v13  ;;  %v1731_v11 = vadd.f32 %v1667_v43, %v1601_v59  ;;  %v4818_v59 = vld [vmem:[#allocation110_spill] sm:$0xff] }
 0x3e7   :  { %v1472_v9 = vadd.f32 %v1408_v42, %v4808_v20  ;;  %v1322_v10 = vpop.f32.mrb[52].mxu1  ;;  %v1732_v21 = vadd.f32 %v1668_v15, %v1602_v25  ;;  %v1608_v43 = vmul.f32 %v3915_v17, %v4818_v59  ;;  %v4820_v42 = vld [vmem:[#allocation112_spill] sm:$0xff]  ;;  %v4821_v20 = vld [vmem:[#allocation115_spill] sm:$0xff] }
 0x3e8   :  { %v1669_v55 = vmul.f32 %v3917_v7, %v1471_v22  ;;  %v1409_v37 = vmul.f32 0.3, %v1322_v10  ;;  %1819 = vxpose.xlu0.b32.cont [9/16] %v1731_v11, 128  ;;  %v1324_v62 = vpop.f32.mrb[53].mxu1 }
 0x3e9   :  { %v1670_v45 = vmul.f32 %v3917_v7, %v1472_v9  ;;  %v1410_v14 = vmul.f32 0.3, %v1324_v62  ;;  %1851 = vxpose.xlu1.b32.cont [9/16] %v1732_v21, 128  ;;  %v1609_v9 = vmul.f32 %v3915_v17, %v4821_v20  ;;  %v4822_v62 = vld [vmem:[#allocation113_spill] sm:$0xff]  ;;  %v2513_v20 = vld [vmem:[#allocation2 + $0x120] sm:$0xff] }
 0x3ea   :  { %v1473_v48 = vadd.f32 %v1409_v37, %v4811_v2  ;;  %v1733_v61 = vadd.f32 %v1669_v55, %v1603_v50  ;;  %v1610_v50 = vmul.f32 %v3915_v17, %v3756_v60  ;;  %v1612_v60 = vmul.f32 %v3915_v17, %v3759_v1 }
 0x3eb   :  { %v1474_v63 = vadd.f32 %v1410_v14, %v4812_v6  ;;  %v1328_v41 = vpop.f32.mrb[54].mxu1  ;;  %v1734_v23 = vadd.f32 %v1670_v45, %v1604_v19  ;;  %v4823_v45 = vld [vmem:[#allocation114_spill] sm:$0xff] }
 0x3ec   :  { %v1671_v54 = vmul.f32 %v3917_v7, %v1473_v48  ;;  %v1411_v26 = vmul.f32 0.3, %v1328_v41  ;;  %1820 = vxpose.xlu0.b32.cont [10/16] %v1733_v61, 128  ;;  %v1330_v3 = vpop.f32.mrb[55].mxu1  ;;  %v4824_v61 = vld [vmem:[#allocation116_spill] sm:$0xff] }
 0x3ed   :  { %v1672_v34 = vmul.f32 %v3917_v7, %v1474_v63  ;;  %v1412_v4 = vmul.f32 0.3, %v1330_v3  ;;  %1852 = vxpose.xlu1.b32.cont [10/16] %v1734_v23, 128  ;;  %v1611_v6 = vmul.f32 %v3915_v17, %v4824_v61 }
 0x3ee   :  { %v1475_v58 = vadd.f32 %v1411_v26, %v4815_v29  ;;  %v1735_v0 = vadd.f32 %v1671_v54, %v1605_v39 }
 0x3ef   :  { %v1476_v46 = vadd.f32 %v1412_v4, %v4816_v16  ;;  %v1334_v12 = vpop.f32.mrb[56].mxu1  ;;  %v1736_v40 = vadd.f32 %v1672_v34, %v1606_v56  ;;  %v1613_v34 = vmul.f32 %v3915_v17, %v3774_v51  ;;  %v1615_v51 = vmul.f32 %v3915_v17, %v3777_v44 }
 0x3f0   :  { %v1673_v27 = vmul.f32 %v3917_v7, %v1475_v58  ;;  %v1413_v36 = vmul.f32 0.3, %v1334_v12  ;;  %1821 = vxpose.xlu0.b32.cont [11/16] %v1735_v0, 128  ;;  %v1336_v31 = vpop.f32.mrb[57].mxu1  ;;  %v1614_v58 = vmul.f32 %v3915_v17, %v3780_v33 }
 0x3f1   :  { %v1674_v5 = vmul.f32 %v3917_v7, %v1476_v46  ;;  %v1414_v49 = vmul.f32 0.3, %v1336_v31  ;;  %1853 = vxpose.xlu1.b32.cont [11/16] %v1736_v40, 128  ;;  %v2509_v31 = vld [vmem:[#allocation2 + $0x100] sm:$0xff] }
 0x3f2   :  { %v1477_v25 = vadd.f32 %v1413_v36, %v4819_v47  ;;  %v1737_v15 = vadd.f32 %v1673_v27, %v1607_v57  ;;  %v4175_v27 = vstv %s1485_s28 }
 0x3f3   :  { %v1478_v13 = vadd.f32 %v1414_v49, %v4820_v42  ;;  %v1340_v22 = vpop.f32.mrb[58].mxu1  ;;  %v1738_v11 = vadd.f32 %v1674_v5, %v1608_v43  ;;  %v1519_v44 = vmul.f32 %v2509_v31, %v4175_v27  ;;  %v2510_v49 = vld [vmem:[#allocation2 + $0x10] sm:$0xff] }
 0x3f4   :  { %v1675_v10 = vmul.f32 %v3917_v7, %v1477_v25  ;;  %v1415_v21 = vmul.f32 0.3, %v1340_v22  ;;  %1822 = vxpose.xlu0.b32.cont [12/16] %v1737_v15, 128  ;;  %v1342_v30 = vpop.f32.mrb[59].mxu1  ;;  %v1489_v28 = vmul.f32 %v2510_v49, %v4175_v27 }
 0x3f5   :  { %v1676_v55 = vmul.f32 %v3917_v7, %v1478_v13  ;;  %v1416_v37 = vmul.f32 0.3, %v1342_v30  ;;  %1854 = vxpose.xlu1.b32.cont [12/16] %v1738_v11, 128  ;;  %v2512_v13 = vld [vmem:[#allocation2 + $0x20] sm:$0xff] }
 0x3f6   :  { %v1479_v53 = vadd.f32 %v1415_v21, %v4822_v62  ;;  %v1739_v19 = vadd.f32 %v1675_v10, %v1609_v9  ;;  %v1491_v22 = vmul.f32 %v2512_v13, %v4175_v27  ;;  %v1523_v9 = vmul.f32 %v2513_v20, %v4175_v27  ;;  %v2515_v62 = vld [vmem:[#allocation2 + $0x130] sm:$0xff] }
 0x3f7   :  { %v1480_v14 = vadd.f32 %v1416_v37, %v4823_v45  ;;  %v1346_v2 = vpop.f32.mrb[60].mxu1  ;;  %v1740_v48 = vadd.f32 %v1676_v55, %v1610_v50  ;;  %v2514_v50 = vld [vmem:[#allocation2 + $0x30] sm:$0xff] }
 0x3f8   :  { %v1677_v63 = vmul.f32 %v3917_v7, %v1479_v53  ;;  %v1417_v41 = vmul.f32 0.3, %v1346_v2  ;;  %1823 = vxpose.xlu0.b32.cont [13/16] %v1739_v19, 128  ;;  %v1348_v23 = vpop.f32.mrb[61].mxu1  ;;  %v1493_v55 = vmul.f32 %v2514_v50, %v4175_v27  ;;  %v1525_v53 = vmul.f32 %v2515_v62, %v4175_v27  ;;  %v2516_v2 = vld [vmem:[#allocation2 + $0x40] sm:$0xff] }
 0x3f9   :  { %v1678_v32 = vmul.f32 %v3917_v7, %v1480_v14  ;;  %v1418_v39 = vmul.f32 0.3, %v1348_v23  ;;  %1855 = vxpose.xlu1.b32.cont [13/16] %v1740_v48, 128  ;;  %v1495_v48 = vmul.f32 %v2516_v2, %v4175_v27 }
 0x3fa   :  { %v1481_v54 = vadd.f32 %v1417_v41, %v3763_v18  ;;  %v1741_v26 = vadd.f32 %v1677_v63, %v1611_v6  ;;  %v2517_v6 = vld [vmem:[#allocation2 + $0x140] sm:$0xff] }
 0x3fb   :  { %v1482_v3 = vadd.f32 %v1418_v39, %v3767_v24  ;;  %v1352_v8 = vpop.f32.mrb[62].mxu1  ;;  %v1742_v56 = vadd.f32 %v1678_v32, %v1612_v60  ;;  %v1527_v63 = vmul.f32 %v2517_v6, %v4175_v27  ;;  %v2518_v32 = vld [vmem:[#allocation2 + $0x50] sm:$0xff] }
 0x3fc   :  { %v1679_v4 = vmul.f32 %v3917_v7, %v1481_v54  ;;  %v1419_v29 = vmul.f32 0.3, %v1352_v8  ;;  %1824 = vxpose.xlu0.b32.cont [14/16] %v1741_v26, 128  ;;  %v1354_v1 = vpop.f32.mrb[63].mxu1  ;;  %v1497_v39 = vmul.f32 %v2518_v32, %v4175_v27  ;;  %v2519_v26 = vld [vmem:[#allocation2 + $0x150] sm:$0xff] }
 0x3fd   :  { %v1680_v0 = vmul.f32 %v3917_v7, %v1482_v3  ;;  %v1420_v18 = vmul.f32 0.3, %v1354_v1  ;;  %1856 = vxpose.xlu1.b32.cont [14/16] %v1742_v56, 128  ;;  %v1529_v3 = vmul.f32 %v2519_v26, %v4175_v27 }
 0x3fe   :  { %v1483_v16 = vadd.f32 %v1419_v29, %v3769_v35  ;;  %v1743_v24 = vadd.f32 %v1679_v4, %v1613_v34  ;;  %v2520_v4 = vld [vmem:[#allocation2 + $0x60] sm:$0xff] }
 0x3ff   :  { %v1484_v46 = vadd.f32 %v1420_v18, %v3771_v52  ;;  %v1744_v12 = vadd.f32 %v1680_v0, %v1614_v58  ;;  %v2508_v52 = vld [vmem:[#allocation2] sm:$0xff]  ;;  %v1499_v29 = vmul.f32 %v2520_v4, %v4175_v27 }
 0x400   :  { %v1681_v40 = vmul.f32 %v3917_v7, %v1483_v16  ;;  %1825 = vxpose.xlu0.b32.cont [15/16] %v1743_v24, 128  ;;  %v1487_v36 = vmul.f32 %v2508_v52, %v4175_v27  ;;  %v2521_v58 = vld [vmem:[#allocation2 + $0x160] sm:$0xff] }
 0x401   :  { %v1682_v33 = vmul.f32 %v3917_v7, %v1484_v46  ;;  %1857 = vxpose.xlu1.b32.cont [15/16] %v1744_v12, 128  ;;  %v2511_v7 = vld [vmem:[#allocation2 + $0x110] sm:$0xff]  ;;  %v1531_v0 = vmul.f32 %v2521_v58, %v4175_v27  ;;  %v2524_v52 = vld [vmem:[#allocation2 + $0x80] sm:$0xff] }
 0x402   :  { %v1745_v57 = vadd.f32 %v1681_v40, %v1615_v51  ;;  %v1521_v47 = vmul.f32 %v2511_v7, %v4175_v27  ;;  %v2522_v46 = vld [vmem:[#allocation2 + $0x70] sm:$0xff] }
 0x403   :  { %v1746_v35 = vadd.f32 %v1682_v33, %v1616_v38  ;;  %v1501_v12 = vmul.f32 %v2522_v46, %v4175_v27  ;;  %v2523_v40 = vld [vmem:[#allocation2 + $0x170] sm:$0xff] }
 0x404   :  { %1826 = vxpose.xlu0.b32.end [16/16] %v1745_v57, 128  ;;  %v1533_v38 = vmul.f32 %v2523_v40, %v4175_v27 }
 0x405   :  { %1858 = vxpose.xlu1.b32.end [16/16] %v1746_v35, 128 }
 0x408   :  { %v1763_v59 = vpop.trf.xlu0 }
 0x409   :  { %v1875_v43 = vadd.f32 %v1763_v59, %v1487_v36  ;;  %v1795_v5 = vpop.trf.xlu1  ;;  %v1503_v36 = vmul.f32 %v2524_v52, %v4175_v27 }
 0x40a   :  { %v1907_v17 = vadd.f32 %v1795_v5, %v1519_v44  ;;  %v2525_v44 = vld [vmem:[#allocation2 + $0x180] sm:$0xff] }
 0x40b   :  { %1939 = vst [vmem:[#allocation7] sm:$0xff] %v1875_v43  ;;  %v1535_v59 = vmul.f32 %v2525_v44, %v4175_v27 }
 0x40c   :  { %1971 = vst [vmem:[#allocation7 + $0x100] sm:$0xff] %v1907_v17  ;;  %v1764_v25 = vpop.trf.xlu0 }
 0x40d   :  { %v1877_v15 = vadd.f32 %v1764_v25, %v1489_v28  ;;  %v1796_v42 = vpop.trf.xlu1  ;;  %v2526_v28 = vld [vmem:[#allocation2 + $0x90] sm:$0xff] }
 0x40e   :  { %v1909_v11 = vadd.f32 %v1796_v42, %v1521_v47  ;;  %v1505_v17 = vmul.f32 %v2526_v28, %v4175_v27  ;;  %v2527_v47 = vld [vmem:[#allocation2 + $0x190] sm:$0xff] }
 0x40f   :  { %1941 = vst [vmem:[#allocation7 + $0x10] sm:$0xff] %v1877_v15  ;;  %v1537_v25 = vmul.f32 %v2527_v47, %v4175_v27 }
 0x410   :  { %1973 = vst [vmem:[#allocation7 + $0x110] sm:$0xff] %v1909_v11  ;;  %v1765_v10 = vpop.trf.xlu0 }
 0x411   :  { %v1879_v21 = vadd.f32 %v1765_v10, %v1491_v22  ;;  %v1797_v30 = vpop.trf.xlu1  ;;  %v2528_v22 = vld [vmem:[#allocation2 + $0xa0] sm:$0xff] }
 0x412   :  { %v1911_v37 = vadd.f32 %v1797_v30, %v1523_v9  ;;  %v1507_v11 = vmul.f32 %v2528_v22, %v4175_v27  ;;  %v2529_v9 = vld [vmem:[#allocation2 + $0x1a0] sm:$0xff] }
 0x413   :  { %1943 = vst [vmem:[#allocation7 + $0x20] sm:$0xff] %v1879_v21  ;;  %v1539_v10 = vmul.f32 %v2529_v9, %v4175_v27 }
 0x414   :  { %1975 = vst [vmem:[#allocation7 + $0x120] sm:$0xff] %v1911_v37  ;;  %v1766_v19 = vpop.trf.xlu0 }
 0x415   :  { %v1881_v45 = vadd.f32 %v1766_v19, %v1493_v55  ;;  %v1798_v14 = vpop.trf.xlu1  ;;  %v2530_v55 = vld [vmem:[#allocation2 + $0xb0] sm:$0xff] }
 0x416   :  { %v1913_v61 = vadd.f32 %v1798_v14, %v1525_v53  ;;  %v1509_v37 = vmul.f32 %v2530_v55, %v4175_v27  ;;  %v2531_v53 = vld [vmem:[#allocation2 + $0x1b0] sm:$0xff] }
 0x417   :  { %1945 = vst [vmem:[#allocation7 + $0x30] sm:$0xff] %v1881_v45  ;;  %v1541_v19 = vmul.f32 %v2531_v53, %v4175_v27 }
 0x418   :  { %1977 = vst [vmem:[#allocation7 + $0x130] sm:$0xff] %v1913_v61  ;;  %v1767_v41 = vpop.trf.xlu0 }
 0x419   :  { %v1883_v23 = vadd.f32 %v1767_v41, %v1495_v48  ;;  %v1799_v60 = vpop.trf.xlu1  ;;  %v2532_v48 = vld [vmem:[#allocation2 + $0xc0] sm:$0xff] }
 0x41a   :  { %v1915_v54 = vadd.f32 %v1799_v60, %v1527_v63  ;;  %v1511_v61 = vmul.f32 %v2532_v48, %v4175_v27  ;;  %v2533_v63 = vld [vmem:[#allocation2 + $0x1c0] sm:$0xff] }
 0x41b   :  { %1947 = vst [vmem:[#allocation7 + $0x40] sm:$0xff] %v1883_v23  ;;  %v1543_v41 = vmul.f32 %v2533_v63, %v4175_v27 }
 0x41c   :  { %1979 = vst [vmem:[#allocation7 + $0x140] sm:$0xff] %v1915_v54  ;;  %v1768_v8 = vpop.trf.xlu0 }
 0x41d   :  { %v1885_v56 = vadd.f32 %v1768_v8, %v1497_v39  ;;  %v1800_v34 = vpop.trf.xlu1  ;;  %v2534_v39 = vld [vmem:[#allocation2 + $0xd0] sm:$0xff] }
 0x41e   :  { %v1917_v1 = vadd.f32 %v1800_v34, %v1529_v3  ;;  %v1513_v54 = vmul.f32 %v2534_v39, %v4175_v27  ;;  %v2535_v3 = vld [vmem:[#allocation2 + $0x1d0] sm:$0xff] }
 0x41f   :  { %1949 = vst [vmem:[#allocation7 + $0x50] sm:$0xff] %v1885_v56  ;;  %v1545_v8 = vmul.f32 %v2535_v3, %v4175_v27 }
 0x420   :  { %1981 = vst [vmem:[#allocation7 + $0x150] sm:$0xff] %v1917_v1  ;;  %v1769_v18 = vpop.trf.xlu0 }
 0x421   :  { %v1887_v16 = vadd.f32 %v1769_v18, %v1499_v29  ;;  %v1801_v24 = vpop.trf.xlu1  ;;  %v2536_v29 = vld [vmem:[#allocation2 + $0xe0] sm:$0xff] }
 0x422   :  { %v1919_v51 = vadd.f32 %v1801_v24, %v1531_v0  ;;  %v1515_v1 = vmul.f32 %v2536_v29, %v4175_v27  ;;  %v2537_v0 = vld [vmem:[#allocation2 + $0x1e0] sm:$0xff] }
 0x423   :  { %1951 = vst [vmem:[#allocation7 + $0x60] sm:$0xff] %v1887_v16  ;;  %v1547_v18 = vmul.f32 %v2537_v0, %v4175_v27 }
 0x424   :  { %1983 = vst [vmem:[#allocation7 + $0x160] sm:$0xff] %v1919_v51  ;;  %v1770_v33 = vpop.trf.xlu0 }
 0x425   :  { %v1889_v57 = vadd.f32 %v1770_v33, %v1501_v12  ;;  %v1802_v35 = vpop.trf.xlu1  ;;  %v2538_v12 = vld [vmem:[#allocation2 + $0xf0] sm:$0xff] }
 0x426   :  { %v1921_v31 = vadd.f32 %v1802_v35, %v1533_v38  ;;  %v1517_v51 = vmul.f32 %v2538_v12, %v4175_v27  ;;  %v2539_v38 = vld [vmem:[#allocation2 + $0x1f0] sm:$0xff] }
 0x427   :  { %1953 = vst [vmem:[#allocation7 + $0x70] sm:$0xff] %v1889_v57  ;;  %v1549_v33 = vmul.f32 %v2539_v38, %v4175_v27 }
 0x428   :  { %1985 = vst [vmem:[#allocation7 + $0x170] sm:$0xff] %v1921_v31  ;;  %v1771_v43 = vpop.trf.xlu0 }
 0x429   :  { %v1891_v5 = vadd.f32 %v1771_v43, %v1503_v36  ;;  %v1803_v49 = vpop.trf.xlu1  ;;  %v2540_v36 = vld [vmem:[#allocation2 + $0x8] sm:$0xff] }
 0x42a   :  { %v1923_v7 = vadd.f32 %v1803_v49, %v1535_v59  ;;  %v1488_v31 = vmul.f32 %v2540_v36, %v4175_v27  ;;  %v2541_v59 = vld [vmem:[#allocation2 + $0x108] sm:$0xff] }
 0x42b   :  { %1955 = vst [vmem:[#allocation7 + $0x80] sm:$0xff] %v1891_v5  ;;  %v1520_v43 = vmul.f32 %v2541_v59, %v4175_v27 }
 0x42c   :  { %1987 = vst [vmem:[#allocation7 + $0x180] sm:$0xff] %v1923_v7  ;;  %v1772_v15 = vpop.trf.xlu0 }
 0x42d   :  { %v1893_v42 = vadd.f32 %v1772_v15, %v1505_v17  ;;  %v1804_v13 = vpop.trf.xlu1  ;;  %v2542_v17 = vld [vmem:[#allocation2 + $0x18] sm:$0xff] }
 0x42e   :  { %v1925_v20 = vadd.f32 %v1804_v13, %v1537_v25  ;;  %v1490_v7 = vmul.f32 %v2542_v17, %v4175_v27  ;;  %v2543_v25 = vld [vmem:[#allocation2 + $0x118] sm:$0xff] }
 0x42f   :  { %1957 = vst [vmem:[#allocation7 + $0x90] sm:$0xff] %v1893_v42  ;;  %v1522_v15 = vmul.f32 %v2543_v25, %v4175_v27 }
 0x430   :  { %1989 = vst [vmem:[#allocation7 + $0x190] sm:$0xff] %v1925_v20  ;;  %v1773_v21 = vpop.trf.xlu0 }
 0x431   :  { %v1895_v30 = vadd.f32 %v1773_v21, %v1507_v11  ;;  %v1805_v50 = vpop.trf.xlu1  ;;  %v2544_v11 = vld [vmem:[#allocation2 + $0x28] sm:$0xff] }
 0x432   :  { %v1927_v62 = vadd.f32 %v1805_v50, %v1539_v10  ;;  %v1492_v20 = vmul.f32 %v2544_v11, %v4175_v27  ;;  %v2545_v10 = vld [vmem:[#allocation2 + $0x128] sm:$0xff] }
 0x433   :  { %1959 = vst [vmem:[#allocation7 + $0xa0] sm:$0xff] %v1895_v30  ;;  %v1524_v21 = vmul.f32 %v2545_v10, %v4175_v27 }
 0x434   :  { %1991 = vst [vmem:[#allocation7 + $0x1a0] sm:$0xff] %v1927_v62  ;;  %v1774_v45 = vpop.trf.xlu0 }
 0x435   :  { %v1897_v14 = vadd.f32 %v1774_v45, %v1509_v37  ;;  %v1806_v2 = vpop.trf.xlu1  ;;  %v2546_v37 = vld [vmem:[#allocation2 + $0x38] sm:$0xff] }
 0x436   :  { %v1929_v6 = vadd.f32 %v1806_v2, %v1541_v19  ;;  %v1494_v62 = vmul.f32 %v2546_v37, %v4175_v27  ;;  %v2547_v19 = vld [vmem:[#allocation2 + $0x138] sm:$0xff] }
 0x437   :  { %1961 = vst [vmem:[#allocation7 + $0xb0] sm:$0xff] %v1897_v14  ;;  %v1526_v45 = vmul.f32 %v2547_v19, %v4175_v27 }
 0x438   :  { %1993 = vst [vmem:[#allocation7 + $0x1b0] sm:$0xff] %v1929_v6  ;;  %v1775_v23 = vpop.trf.xlu0 }
 0x439   :  { %v1899_v60 = vadd.f32 %v1775_v23, %v1511_v61  ;;  %v1807_v32 = vpop.trf.xlu1  ;;  %v2548_v61 = vld [vmem:[#allocation2 + $0x48] sm:$0xff] }
 0x43a   :  { %v1931_v26 = vadd.f32 %v1807_v32, %v1543_v41  ;;  %v1496_v6 = vmul.f32 %v2548_v61, %v4175_v27  ;;  %v2549_v41 = vld [vmem:[#allocation2 + $0x148] sm:$0xff] }
 0x43b   :  { %1963 = vst [vmem:[#allocation7 + $0xc0] sm:$0xff] %v1899_v60  ;;  %v1528_v23 = vmul.f32 %v2549_v41, %v4175_v27 }
 0x43c   :  { %1995 = vst [vmem:[#allocation7 + $0x1c0] sm:$0xff] %v1931_v26  ;;  %v1776_v56 = vpop.trf.xlu0 }
 0x43d   :  { %v1901_v34 = vadd.f32 %v1776_v56, %v1513_v54  ;;  %v1808_v4 = vpop.trf.xlu1  ;;  %v2550_v54 = vld [vmem:[#allocation2 + $0x58] sm:$0xff] }
 0x43e   :  { %v1933_v58 = vadd.f32 %v1808_v4, %v1545_v8  ;;  %v1498_v26 = vmul.f32 %v2550_v54, %v4175_v27  ;;  %v2551_v8 = vld [vmem:[#allocation2 + $0x158] sm:$0xff] }
 0x43f   :  { %1965 = vst [vmem:[#allocation7 + $0xd0] sm:$0xff] %v1901_v34  ;;  %v1530_v56 = vmul.f32 %v2551_v8, %v4175_v27 }
 0x440   :  { %1997 = vst [vmem:[#allocation7 + $0x1d0] sm:$0xff] %v1933_v58  ;;  %v1777_v16 = vpop.trf.xlu0 }
 0x441   :  { %v1903_v24 = vadd.f32 %v1777_v16, %v1515_v1  ;;  %v1809_v46 = vpop.trf.xlu1  ;;  %v2552_v1 = vld [vmem:[#allocation2 + $0x68] sm:$0xff] }
 0x442   :  { %v1935_v40 = vadd.f32 %v1809_v46, %v1547_v18  ;;  %v1500_v58 = vmul.f32 %v2552_v1, %v4175_v27  ;;  %v2553_v18 = vld [vmem:[#allocation2 + $0x168] sm:$0xff] }
 0x443   :  { %1967 = vst [vmem:[#allocation7 + $0xe0] sm:$0xff] %v1903_v24  ;;  %v1532_v16 = vmul.f32 %v2553_v18, %v4175_v27 }
 0x444   :  { %1999 = vst [vmem:[#allocation7 + $0x1e0] sm:$0xff] %v1935_v40  ;;  %v1778_v57 = vpop.trf.xlu0 }
 0x445   :  { %v1905_v35 = vadd.f32 %v1778_v57, %v1517_v51  ;;  %v1810_v52 = vpop.trf.xlu1  ;;  %v2554_v51 = vld [vmem:[#allocation2 + $0x78] sm:$0xff] }
 0x446   :  { %v1937_v44 = vadd.f32 %v1810_v52, %v1549_v33  ;;  %v1502_v40 = vmul.f32 %v2554_v51, %v4175_v27  ;;  %v2555_v33 = vld [vmem:[#allocation2 + $0x178] sm:$0xff] }
 0x447   :  { %1969 = vst [vmem:[#allocation7 + $0xf0] sm:$0xff] %v1905_v35  ;;  %v1534_v57 = vmul.f32 %v2555_v33, %v4175_v27 }
 0x448   :  { %2001 = vst [vmem:[#allocation7 + $0x1f0] sm:$0xff] %v1937_v44  ;;  %v1827_v5 = vpop.trf.xlu0 }
 0x449   :  { %v1876_v49 = vadd.f32 %v1827_v5, %v1488_v31  ;;  %v1859_v28 = vpop.trf.xlu1  ;;  %v2556_v31 = vld [vmem:[#allocation2 + $0x88] sm:$0xff] }
 0x44a   :  { %v1908_v47 = vadd.f32 %v1859_v28, %v1520_v43  ;;  %v1504_v44 = vmul.f32 %v2556_v31, %v4175_v27  ;;  %v2557_v43 = vld [vmem:[#allocation2 + $0x188] sm:$0xff] }
 0x44b   :  { %1940 = vst [vmem:[#allocation7 + $0x8] sm:$0xff] %v1876_v49  ;;  %v1536_v5 = vmul.f32 %v2557_v43, %v4175_v27 }
 0x44c   :  { %1972 = vst [vmem:[#allocation7 + $0x108] sm:$0xff] %v1908_v47  ;;  %v1828_v42 = vpop.trf.xlu0 }
 0x44d   :  { %v1878_v13 = vadd.f32 %v1828_v42, %v1490_v7  ;;  %v1860_v22 = vpop.trf.xlu1  ;;  %v2558_v7 = vld [vmem:[#allocation2 + $0x98] sm:$0xff] }
 0x44e   :  { %v1910_v9 = vadd.f32 %v1860_v22, %v1522_v15  ;;  %v1506_v47 = vmul.f32 %v2558_v7, %v4175_v27  ;;  %v2559_v15 = vld [vmem:[#allocation2 + $0x198] sm:$0xff] }
 0x44f   :  { %1942 = vst [vmem:[#allocation7 + $0x18] sm:$0xff] %v1878_v13  ;;  %v1538_v42 = vmul.f32 %v2559_v15, %v4175_v27 }
 0x450   :  { %1974 = vst [vmem:[#allocation7 + $0x118] sm:$0xff] %v1910_v9  ;;  %v1829_v30 = vpop.trf.xlu0 }
 0x451   :  { %v1880_v50 = vadd.f32 %v1829_v30, %v1492_v20  ;;  %v1861_v55 = vpop.trf.xlu1  ;;  %v2560_v20 = vld [vmem:[#allocation2 + $0xa8] sm:$0xff] }
 0x452   :  { %v1912_v53 = vadd.f32 %v1861_v55, %v1524_v21  ;;  %v1508_v9 = vmul.f32 %v2560_v20, %v4175_v27  ;;  %v2561_v21 = vld [vmem:[#allocation2 + $0x1a8] sm:$0xff] }
 0x453   :  { %1944 = vst [vmem:[#allocation7 + $0x28] sm:$0xff] %v1880_v50  ;;  %v1540_v30 = vmul.f32 %v2561_v21, %v4175_v27 }
 0x454   :  { %1976 = vst [vmem:[#allocation7 + $0x128] sm:$0xff] %v1912_v53  ;;  %v1830_v14 = vpop.trf.xlu0 }
 0x455   :  { %v1882_v2 = vadd.f32 %v1830_v14, %v1494_v62  ;;  %v1862_v48 = vpop.trf.xlu1  ;;  %v2562_v62 = vld [vmem:[#allocation2 + $0xb8] sm:$0xff] }
 0x456   :  { %v1914_v63 = vadd.f32 %v1862_v48, %v1526_v45  ;;  %v1510_v53 = vmul.f32 %v2562_v62, %v4175_v27  ;;  %v2563_v45 = vld [vmem:[#allocation2 + $0x1b8] sm:$0xff] }
 0x457   :  { %1946 = vst [vmem:[#allocation7 + $0x38] sm:$0xff] %v1882_v2  ;;  %v1542_v14 = vmul.f32 %v2563_v45, %v4175_v27 }
 0x458   :  { %1978 = vst [vmem:[#allocation7 + $0x138] sm:$0xff] %v1914_v63  ;;  %v1831_v60 = vpop.trf.xlu0 }
 0x459   :  { %v1884_v32 = vadd.f32 %v1831_v60, %v1496_v6  ;;  %v1863_v39 = vpop.trf.xlu1  ;;  %v2564_v6 = vld [vmem:[#allocation2 + $0xc8] sm:$0xff] }
 0x45a   :  { %v1916_v3 = vadd.f32 %v1863_v39, %v1528_v23  ;;  %v1512_v63 = vmul.f32 %v2564_v6, %v4175_v27  ;;  %v2565_v23 = vld [vmem:[#allocation2 + $0x1c8] sm:$0xff] }
 0x45b   :  { %1948 = vst [vmem:[#allocation7 + $0x48] sm:$0xff] %v1884_v32  ;;  %v1544_v60 = vmul.f32 %v2565_v23, %v4175_v27 }
 0x45c   :  { %1980 = vst [vmem:[#allocation7 + $0x148] sm:$0xff] %v1916_v3  ;;  %v1832_v34 = vpop.trf.xlu0 }
 0x45d   :  { %v1886_v4 = vadd.f32 %v1832_v34, %v1498_v26  ;;  %v1864_v29 = vpop.trf.xlu1  ;;  %v2566_v26 = vld [vmem:[#allocation2 + $0xd8] sm:$0xff] }
 0x45e   :  { %v1918_v0 = vadd.f32 %v1864_v29, %v1530_v56  ;;  %v1514_v3 = vmul.f32 %v2566_v26, %v4175_v27  ;;  %v2567_v56 = vld [vmem:[#allocation2 + $0x1d8] sm:$0xff] }
 0x45f   :  { %1950 = vst [vmem:[#allocation7 + $0x58] sm:$0xff] %v1886_v4  ;;  %v1546_v34 = vmul.f32 %v2567_v56, %v4175_v27 }
 0x460   :  { %1982 = vst [vmem:[#allocation7 + $0x158] sm:$0xff] %v1918_v0  ;;  %v1833_v24 = vpop.trf.xlu0 }
 0x461   :  { %v1888_v46 = vadd.f32 %v1833_v24, %v1500_v58  ;;  %v1865_v12 = vpop.trf.xlu1  ;;  %v2568_v58 = vld [vmem:[#allocation2 + $0xe8] sm:$0xff] }
 0x462   :  { %v1920_v38 = vadd.f32 %v1865_v12, %v1532_v16  ;;  %v1516_v0 = vmul.f32 %v2568_v58, %v4175_v27  ;;  %v2569_v16 = vld [vmem:[#allocation2 + $0x1e8] sm:$0xff] }
 0x463   :  { %1952 = vst [vmem:[#allocation7 + $0x68] sm:$0xff] %v1888_v46  ;;  %v1548_v24 = vmul.f32 %v2569_v16, %v4175_v27 }
 0x464   :  { %1984 = vst [vmem:[#allocation7 + $0x168] sm:$0xff] %v1920_v38  ;;  %v1834_v35 = vpop.trf.xlu0 }
 0x465   :  { %v1890_v52 = vadd.f32 %v1834_v35, %v1502_v40  ;;  %v1866_v36 = vpop.trf.xlu1  ;;  %v2570_v40 = vld [vmem:[#allocation2 + $0xf8] sm:$0xff] }
 0x466   :  { %v1922_v59 = vadd.f32 %v1866_v36, %v1534_v57  ;;  %v1518_v38 = vmul.f32 %v2570_v40, %v4175_v27  ;;  %v2571_v57 = vld [vmem:[#allocation2 + $0x1f8] sm:$0xff] }
 0x467   :  { %1954 = vst [vmem:[#allocation7 + $0x78] sm:$0xff] %v1890_v52  ;;  %v1550_v35 = vmul.f32 %v2571_v57, %v4175_v27 }
 0x468   :  { %1986 = vst [vmem:[#allocation7 + $0x178] sm:$0xff] %v1922_v59  ;;  %v1835_v49 = vpop.trf.xlu0 }
 0x469   :  { %v1892_v28 = vadd.f32 %v1835_v49, %v1504_v44  ;;  %v1867_v17 = vpop.trf.xlu1 }
 0x46a   :  { %v1924_v25 = vadd.f32 %v1867_v17, %v1536_v5 }
 0x46b   :  { %1956 = vst [vmem:[#allocation7 + $0x88] sm:$0xff] %v1892_v28 }
 0x46c   :  { %1988 = vst [vmem:[#allocation7 + $0x188] sm:$0xff] %v1924_v25  ;;  %v1836_v13 = vpop.trf.xlu0 }
 0x46d   :  { %v1894_v22 = vadd.f32 %v1836_v13, %v1506_v47  ;;  %v1868_v11 = vpop.trf.xlu1 }
 0x46e   :  { %v1926_v10 = vadd.f32 %v1868_v11, %v1538_v42 }
 0x46f   :  { %1958 = vst [vmem:[#allocation7 + $0x98] sm:$0xff] %v1894_v22 }
 0x470   :  { %1990 = vst [vmem:[#allocation7 + $0x198] sm:$0xff] %v1926_v10  ;;  %v1837_v50 = vpop.trf.xlu0 }
 0x471   :  { %v1896_v55 = vadd.f32 %v1837_v50, %v1508_v9  ;;  %v1869_v37 = vpop.trf.xlu1 }
 0x472   :  { %v1928_v19 = vadd.f32 %v1869_v37, %v1540_v30 }
 0x473   :  { %1960 = vst [vmem:[#allocation7 + $0xa8] sm:$0xff] %v1896_v55 }
 0x474   :  { %1992 = vst [vmem:[#allocation7 + $0x1a8] sm:$0xff] %v1928_v19  ;;  %v1838_v2 = vpop.trf.xlu0 }
 0x475   :  { %v1898_v48 = vadd.f32 %v1838_v2, %v1510_v53  ;;  %v1870_v61 = vpop.trf.xlu1 }
 0x476   :  { %v1930_v41 = vadd.f32 %v1870_v61, %v1542_v14 }
 0x477   :  { %1962 = vst [vmem:[#allocation7 + $0xb8] sm:$0xff] %v1898_v48 }
 0x478   :  { %1994 = vst [vmem:[#allocation7 + $0x1b8] sm:$0xff] %v1930_v41  ;;  %v1839_v32 = vpop.trf.xlu0 }
 0x479   :  { %v1900_v39 = vadd.f32 %v1839_v32, %v1512_v63  ;;  %v1871_v54 = vpop.trf.xlu1 }
 0x47a   :  { %v1932_v8 = vadd.f32 %v1871_v54, %v1544_v60 }
 0x47b   :  { %1964 = vst [vmem:[#allocation7 + $0xc8] sm:$0xff] %v1900_v39 }
 0x47c   :  { %1996 = vst [vmem:[#allocation7 + $0x1c8] sm:$0xff] %v1932_v8  ;;  %v1840_v4 = vpop.trf.xlu0 }
 0x47d   :  { %v1902_v29 = vadd.f32 %v1840_v4, %v1514_v3  ;;  %v1872_v1 = vpop.trf.xlu1 }
 0x47e   :  { %v1934_v18 = vadd.f32 %v1872_v1, %v1546_v34 }
 0x47f   :  { %1966 = vst [vmem:[#allocation7 + $0xd8] sm:$0xff] %v1902_v29 }
 0x480   :  { %1998 = vst [vmem:[#allocation7 + $0x1d8] sm:$0xff] %v1934_v18  ;;  %v1841_v46 = vpop.trf.xlu0 }
 0x481   :  { %v1904_v12 = vadd.f32 %v1841_v46, %v1516_v0  ;;  %v1873_v51 = vpop.trf.xlu1 }
 0x482   :  { %v1936_v33 = vadd.f32 %v1873_v51, %v1548_v24 }
 0x483   :  { %1968 = vst [vmem:[#allocation7 + $0xe8] sm:$0xff] %v1904_v12 }
 0x484   :  { %2000 = vst [vmem:[#allocation7 + $0x1e8] sm:$0xff] %v1936_v33  ;;  %v1842_v52 = vpop.trf.xlu0 }
 0x485   :  { %v1906_v36 = vadd.f32 %v1842_v52, %v1518_v38  ;;  %v1874_v31 = vpop.trf.xlu1 }
 0x486   :  { %v1938_v44 = vadd.f32 %v1874_v31, %v1550_v35 }
 0x487   :  { %1970 = vst [vmem:[#allocation7 + $0xf8] sm:$0xff] %v1906_v36 }
 0x488   :  { %2002 = vst [vmem:[#allocation7 + $0x1f8] sm:$0xff] %v1938_v44 }
 0x489   :  { %2617 = shalt.err (!%p2614_p3)
}
 0x48a   :  { %s2618_s6 = scalar_lea.hbm %s4258_s2, 8192 }
 0x48b   :  { %p2619_p4 = scmp.ne.s32.totalorder %s4258_s2, %s2618_s6  ;;  %p2622_p5 = scmp.lt.u32.totalorder %s2618_s6, %s4258_s2 }
 0x48d   :  { %p2624_p6 = pnand %p2622_p5, %p2619_p4 }
 0x48f   :  { %2627 = shalt.err (!%p2624_p6)
}
 0x490   :  { %2014 = dma.vmem_to_hbm [thread:$0]  %s2009_s30, 8192, %s4258_s2, [#allocation4], %s2635_s1, %s2635_s1, %s2636_s22  }
 0x491   :  { %2632 = dma.done.wait [#allocation4], 8192  }
 0x492   :  { %2633 = vsyncadd [#allocation4], 4294959104 }
 0x493   :  { %2018 = vsyncpa [#allocation3], 1 }
 0x494   :  { %2019 = vsyncpa [#allocation4], 1 }
 0x495   :  { %2020 = vsyncpa [#allocation5], 1 }

</bundles_post_ra>
